<compile_context>
chip_gen: v7x
topology: tpu7x:2x2x1
jax: 0.10.0
libtpu: 0.0.40
codegen_flags: <defaults>
</compile_context>

<pallas_src>
import jax
import jax.numpy as jnp
from jax.experimental import pallas as pl
from jax.experimental.pallas import tpu as pltpu


def _round_up(x, m):
    return (x + m - 1) // m * m


def _choose_batch_tile(B, max_tile=512):
    """Pick (bt, B_pad): bt is a multiple of 8, <= max_tile, minimizing
    padding waste; prefers multiples of 128 and larger tiles; guarantees
    >= 2 grid steps once B >= 256 (so v7x's second TensorCore isn't idle)."""
    B8 = _round_up(max(B, 8), 8)
    if B8 < 256:
        return B8, B8  # single tile, no waste beyond 8-row alignment
    best_key, best_bt = None, None
    for bt in range(8, min(max_tile, B8) + 1, 8):
        steps = -(-B8 // bt)
        if steps < 2:
            continue  # enforce >= 2 grid steps for megacore sharding
        pad = steps * bt - B8
        key = (pad, 0 if bt % 128 == 0 else 1, -bt)
        if best_key is None or key < best_key:
            best_key, best_bt = key, bt
    return best_bt, _round_up(B8, best_bt)


def _generator_kernel(x_ref,
                      w1_ref, b1_ref,
                      w2_ref, b2_ref,
                      w3_ref, b3_ref,
                      w4_ref, b4_ref,
                      o_ref):
    # x/weights are already in the compute dtype (bf16 by default); MXU
    # accumulates in f32; bias add / ReLU / tanh happen on the f32 accumulator.
    cd = w1_ref.dtype

    h = x_ref[...]

    h = jnp.dot(h, w1_ref[...], preferred_element_type=jnp.float32) + b1_ref[...]
    h = jnp.maximum(h, 0.0).astype(cd)                       # ReLU

    h = jnp.dot(h, w2_ref[...], preferred_element_type=jnp.float32) + b2_ref[...]
    h = jnp.maximum(h, 0.0).astype(cd)                       # ReLU

    h = jnp.dot(h, w3_ref[...], preferred_element_type=jnp.float32) + b3_ref[...]
    h = jnp.maximum(h, 0.0).astype(cd)                       # ReLU

    h = jnp.dot(h, w4_ref[...], preferred_element_type=jnp.float32) + b4_ref[...]
    o_ref[...] = jnp.tanh(h).astype(o_ref.dtype)             # Tanh


def my_generator_forward(x, params, *, max_batch_tile=512,
                         weights_dtype=jnp.bfloat16, out_dtype=jnp.float32):
    """x: (B, 128) float. params: dict of w1..w4 (in,out) and b1..b4. -> (B, 784)."""
    B, D_in = x.shape
    assert D_in == 128

    bt, B_pad = _choose_batch_tile(B, max_batch_tile)
    if B_pad != B:
        x = jnp.pad(x, ((0, B_pad - B), (0, 0)))
    # Cast input to the MXU compute dtype in the wrapper: halves input DMA and
    # removes a per-step VPU cast inside the kernel.
    x = x.astype(weights_dtype)

    # Weights in bf16 (or f32); biases stay f32, added on the f32 accumulator.
    w1 = params["w1"].astype(weights_dtype)
    w2 = params["w2"].astype(weights_dtype)
    w3 = params["w3"].astype(weights_dtype)
    w4 = params["w4"].astype(weights_dtype)
    b1 = params["b1"].reshape(1, -1).astype(jnp.float32)
    b2 = params["b2"].reshape(1, -1).astype(jnp.float32)
    b3 = params["b3"].reshape(1, -1).astype(jnp.float32)
    b4 = params["b4"].reshape(1, -1).astype(jnp.float32)

    D_out = w4.shape[1]  # 784: kept un-padded (full-array last dim is a legal
    #                      BlockSpec); avoids 12.5% extra layer-4 work and the
    #                      post-kernel column-slice copy of the old 896 pad.

    grid = (B_pad // bt,)

    def const_spec(arr):
        # Whole-array block, same block every grid step (weights stay resident).
        return pl.BlockSpec(arr.shape, lambda i: (0, 0))

    consts = (w1, b1, w2, b2, w3, b3, w4, b4)
    flops = 2 * B_pad * (128 * 256 + 256 * 512 + 512 * 1024 + 1024 * D_out)
    transcendentals = B_pad * D_out  # tanh
    bytes_accessed = (
        x.size * x.dtype.itemsize
        + sum(a.size * a.dtype.itemsize for a in consts)
        + B_pad * D_out * jnp.dtype(out_dtype).itemsize
    )

    out = pl.pallas_call(
        _generator_kernel,
        out_shape=jax.ShapeDtypeStruct((B_pad, D_out), out_dtype),
        grid_spec=pltpu.PrefetchScalarGridSpec(
            num_scalar_prefetch=0,
            grid=grid,
            in_specs=[
                pl.BlockSpec((bt, D_in), lambda i: (i, 0)),   # x batch tile
                const_spec(w1), const_spec(b1),
                const_spec(w2), const_spec(b2),
                const_spec(w3), const_spec(b3),
                const_spec(w4), const_spec(b4),
            ],
            out_specs=pl.BlockSpec((bt, D_out), lambda i: (i, 0)),
        ),
        compiler_params=pltpu.CompilerParams(
            dimension_semantics=("parallel",),
        ),
        cost_estimate=pl.CostEstimate(
            flops=flops,
            transcendentals=transcendentals,
            bytes_accessed=bytes_accessed,
        ),
    )(x, w1, b1, w2, b2, w3, b3, w4, b4)

    if B_pad != B:
        out = out[:B]
    return out


def init_params(key):
    """Deterministic init mimicking nn.Linear default (uniform +/- 1/sqrt(fan_in)).
    Weights are stored (in_features, out_features) so y = x @ W + b == PyTorch Linear."""
    dims = [128, 256, 512, 1024, 784]
    params = {}
    keys = jax.random.split(key, 2 * (len(dims) - 1))
    for layer in range(len(dims) - 1):
        fan_in, fan_out = dims[layer], dims[layer + 1]
        bound = 1.0 / jnp.sqrt(fan_in)
        wk, bk = keys[2 * layer], keys[2 * layer + 1]
        params[f"w{layer+1}"] = jax.random.uniform(
            wk, (fan_in, fan_out), jnp.float32, minval=-bound, maxval=bound)
        params[f"b{layer+1}"] = jax.random.uniform(
            bk, (fan_out,), jnp.float32, minval=-bound, maxval=bound)
    return params


def reference_forward(x, params, weights_dtype=jnp.bfloat16):
    """Pure-JAX reference mirroring the kernel's precision choices
    (bf16 matmul inputs, f32 accumulate, f32 bias/activation)."""
    def layer(h, w, b):
        y = jnp.dot(h.astype(weights_dtype), w.astype(weights_dtype),
                    preferred_element_type=jnp.float32)
        return y + b.astype(jnp.float32)

    h = jnp.maximum(layer(x, params["w1"], params["b1"]), 0.0)
    h = jnp.maximum(layer(h, params["w2"], params["b2"]), 0.0)
    h = jnp.maximum(layer(h, params["w3"], params["b3"]), 0.0)
    return jnp.tanh(layer(h, params["w4"], params["b4"]))


if __name__ == "__main__":
    key = jax.random.PRNGKey(0)
    pkey, xkey1, xkey2 = jax.random.split(key, 3)
    params = init_params(pkey)

    # Small batch (noise vector dim implied by the module is 128).
    B_small = 8
    x_small = jax.random.normal(xkey1, (B_small, 128), jnp.float32)
    out_small = jax.block_until_ready(my_generator_forward(x_small, params))
    ref_small = reference_forward(x_small, params)
    assert out_small.shape == (B_small, 784)
    assert jnp.allclose(out_small, ref_small, atol=2e-3, rtol=2e-3), \
        "mismatch vs reference (small batch)"

    # Larger batch: new tile policy picks bt=128, 3 grid steps, ZERO padding
    # (old policy padded 384 -> 512), and >= 2 steps for v7x megacore.
    B_big = 384
    x_big = jax.random.normal(xkey2, (B_big, 128), jnp.float32)
    out_big = jax.block_until_ready(my_generator_forward(x_big, params))
    ref_big = reference_forward(x_big, params)
    assert out_big.shape == (B_big, 784)
    assert jnp.allclose(out_big, ref_big, atol=2e-3, rtol=2e-3), \
        "mismatch vs reference (large batch)"

    print("KERNEL_OK")
</pallas_src>

<mosaic_0001>
module attributes {stable_mosaic.version = 11 : i64} {
  func.func @_generator_kernel(%arg0: i32, %arg1: memref<8x128xbf16, #tpu.memory_space<vmem>>, %arg2: memref<128x256xbf16, #tpu.memory_space<vmem>>, %arg3: memref<1x256xf32, #tpu.memory_space<vmem>>, %arg4: memref<256x512xbf16, #tpu.memory_space<vmem>>, %arg5: memref<1x512xf32, #tpu.memory_space<vmem>>, %arg6: memref<512x1024xbf16, #tpu.memory_space<vmem>>, %arg7: memref<1x1024xf32, #tpu.memory_space<vmem>>, %arg8: memref<1024x784xbf16, #tpu.memory_space<vmem>>, %arg9: memref<1x784xf32, #tpu.memory_space<vmem>>, %arg10: memref<8x784xf32, #tpu.memory_space<vmem>>) attributes {dimension_semantics = [#tpu.dimension_semantics<parallel>], iteration_bounds = array<i64: 1>, scalar_prefetch = 0 : i64, scratch_operands = 0 : i64, tpu.core_type = #tpu.core_type<tc>, window_params = [{transform_indices = @transform_0, window_bounds = array<i64: 8, 128>}, {pipeline_mode = #tpu.pipeline_mode<synchronous>, transform_indices = @transform_1, window_bounds = array<i64: 128, 256>}, {pipeline_mode = #tpu.pipeline_mode<synchronous>, transform_indices = @transform_2, window_bounds = array<i64: 1, 256>}, {pipeline_mode = #tpu.pipeline_mode<synchronous>, transform_indices = @transform_3, window_bounds = array<i64: 256, 512>}, {pipeline_mode = #tpu.pipeline_mode<synchronous>, transform_indices = @transform_4, window_bounds = array<i64: 1, 512>}, {pipeline_mode = #tpu.pipeline_mode<synchronous>, transform_indices = @transform_5, window_bounds = array<i64: 512, 1024>}, {pipeline_mode = #tpu.pipeline_mode<synchronous>, transform_indices = @transform_6, window_bounds = array<i64: 1, 1024>}, {pipeline_mode = #tpu.pipeline_mode<synchronous>, transform_indices = @transform_7, window_bounds = array<i64: 1024, 784>}, {pipeline_mode = #tpu.pipeline_mode<synchronous>, transform_indices = @transform_8, window_bounds = array<i64: 1, 784>}, {transform_indices = @transform_9, window_bounds = array<i64: 8, 784>}]} {
    %c0 = arith.constant 0 : index
    %c0_0 = arith.constant 0 : index
    %0 = vector.load %arg1[%c0, %c0_0] : memref<8x128xbf16, #tpu.memory_space<vmem>>, vector<8x128xbf16>
    %c0_1 = arith.constant 0 : index
    %c0_2 = arith.constant 0 : index
    %1 = vector.load %arg2[%c0_1, %c0_2] : memref<128x256xbf16, #tpu.memory_space<vmem>>, vector<128x256xbf16>
    %cst = arith.constant dense<0.000000e+00> : vector<8x256xf32>
    %2 = tpu.matmul %0, %1, %cst {dimension_numbers = #tpu.dot_dimension_numbers<[1], [0], [0], [1], [0, 0, 1, 1], [], []>} : vector<8x128xbf16>, vector<128x256xbf16>, vector<8x256xf32> -> vector<8x256xf32>
    %c0_3 = arith.constant 0 : index
    %c0_4 = arith.constant 0 : index
    %3 = vector.load %arg3[%c0_3, %c0_4] : memref<1x256xf32, #tpu.memory_space<vmem>>, vector<1x256xf32>
    %4 = vector.broadcast %3 : vector<1x256xf32> to vector<8x256xf32>
    %5 = arith.addf %2, %4 : vector<8x256xf32>
    %cst_5 = arith.constant 0.000000e+00 : f32
    %6 = vector.broadcast %cst_5 : f32 to vector<8x256xf32>
    %7 = arith.maximumf %5, %6 : vector<8x256xf32>
    %8 = arith.truncf %7 : vector<8x256xf32> to vector<8x256xbf16>
    %c0_6 = arith.constant 0 : index
    %c0_7 = arith.constant 0 : index
    %9 = vector.load %arg4[%c0_6, %c0_7] : memref<256x512xbf16, #tpu.memory_space<vmem>>, vector<256x512xbf16>
    %cst_8 = arith.constant dense<0.000000e+00> : vector<8x512xf32>
    %10 = tpu.matmul %8, %9, %cst_8 {dimension_numbers = #tpu.dot_dimension_numbers<[1], [0], [0], [1], [0, 0, 1, 1], [], []>} : vector<8x256xbf16>, vector<256x512xbf16>, vector<8x512xf32> -> vector<8x512xf32>
    %c0_9 = arith.constant 0 : index
    %c0_10 = arith.constant 0 : index
    %11 = vector.load %arg5[%c0_9, %c0_10] : memref<1x512xf32, #tpu.memory_space<vmem>>, vector<1x512xf32>
    %12 = vector.broadcast %11 : vector<1x512xf32> to vector<8x512xf32>
    %13 = arith.addf %10, %12 : vector<8x512xf32>
    %cst_11 = arith.constant 0.000000e+00 : f32
    %14 = vector.broadcast %cst_11 : f32 to vector<8x512xf32>
    %15 = arith.maximumf %13, %14 : vector<8x512xf32>
    %16 = arith.truncf %15 : vector<8x512xf32> to vector<8x512xbf16>
    %c0_12 = arith.constant 0 : index
    %c0_13 = arith.constant 0 : index
    %17 = vector.load %arg6[%c0_12, %c0_13] : memref<512x1024xbf16, #tpu.memory_space<vmem>>, vector<512x1024xbf16>
    %cst_14 = arith.constant dense<0.000000e+00> : vector<8x1024xf32>
    %18 = tpu.matmul %16, %17, %cst_14 {dimension_numbers = #tpu.dot_dimension_numbers<[1], [0], [0], [1], [0, 0, 1, 1], [], []>} : vector<8x512xbf16>, vector<512x1024xbf16>, vector<8x1024xf32> -> vector<8x1024xf32>
    %c0_15 = arith.constant 0 : index
    %c0_16 = arith.constant 0 : index
    %19 = vector.load %arg7[%c0_15, %c0_16] : memref<1x1024xf32, #tpu.memory_space<vmem>>, vector<1x1024xf32>
    %20 = vector.broadcast %19 : vector<1x1024xf32> to vector<8x1024xf32>
    %21 = arith.addf %18, %20 : vector<8x1024xf32>
    %cst_17 = arith.constant 0.000000e+00 : f32
    %22 = vector.broadcast %cst_17 : f32 to vector<8x1024xf32>
    %23 = arith.maximumf %21, %22 : vector<8x1024xf32>
    %24 = arith.truncf %23 : vector<8x1024xf32> to vector<8x1024xbf16>
    %c0_18 = arith.constant 0 : index
    %c0_19 = arith.constant 0 : index
    %25 = vector.load %arg8[%c0_18, %c0_19] : memref<1024x784xbf16, #tpu.memory_space<vmem>>, vector<1024x784xbf16>
    %cst_20 = arith.constant dense<0.000000e+00> : vector<8x784xf32>
    %26 = tpu.matmul %24, %25, %cst_20 {dimension_numbers = #tpu.dot_dimension_numbers<[1], [0], [0], [1], [0, 0, 1, 1], [], []>} : vector<8x1024xbf16>, vector<1024x784xbf16>, vector<8x784xf32> -> vector<8x784xf32>
    %c0_21 = arith.constant 0 : index
    %c0_22 = arith.constant 0 : index
    %27 = vector.load %arg9[%c0_21, %c0_22] : memref<1x784xf32, #tpu.memory_space<vmem>>, vector<1x784xf32>
    %28 = vector.broadcast %27 : vector<1x784xf32> to vector<8x784xf32>
    %29 = arith.addf %26, %28 : vector<8x784xf32>
    %30 = math.tanh %29 : vector<8x784xf32>
    %c0_23 = arith.constant 0 : index
    %c0_24 = arith.constant 0 : index
    %31 = vector.load %arg10[%c0_23, %c0_24] : memref<8x784xf32, #tpu.memory_space<vmem>>, vector<8x784xf32>
    tpu.vector_store %arg10[%c0_23, %c0_24], %30 {strides = array<i32>} : memref<8x784xf32, #tpu.memory_space<vmem>>, vector<8x784xf32>,
    return
  }
  func.func @transform_0(%arg0: i32) -> (i32, i32) {
    %c0_i32 = arith.constant 0 : i32
    %c0_i32_0 = arith.constant 0 : i32
    return %arg0, %c0_i32 : i32, i32
  }
  func.func @transform_1(%arg0: i32) -> (i32, i32) {
    %c0_i32 = arith.constant 0 : i32
    %c0_i32_0 = arith.constant 0 : i32
    %c0_i32_1 = arith.constant 0 : i32
    return %c0_i32, %c0_i32_0 : i32, i32
  }
  func.func @transform_2(%arg0: i32) -> (i32, i32) {
    %c0_i32 = arith.constant 0 : i32
    %c0_i32_0 = arith.constant 0 : i32
    %c0_i32_1 = arith.constant 0 : i32
    return %c0_i32, %c0_i32_0 : i32, i32
  }
  func.func @transform_3(%arg0: i32) -> (i32, i32) {
    %c0_i32 = arith.constant 0 : i32
    %c0_i32_0 = arith.constant 0 : i32
    %c0_i32_1 = arith.constant 0 : i32
    return %c0_i32, %c0_i32_0 : i32, i32
  }
  func.func @transform_4(%arg0: i32) -> (i32, i32) {
    %c0_i32 = arith.constant 0 : i32
    %c0_i32_0 = arith.constant 0 : i32
    %c0_i32_1 = arith.constant 0 : i32
    return %c0_i32, %c0_i32_0 : i32, i32
  }
  func.func @transform_5(%arg0: i32) -> (i32, i32) {
    %c0_i32 = arith.constant 0 : i32
    %c0_i32_0 = arith.constant 0 : i32
    %c0_i32_1 = arith.constant 0 : i32
    return %c0_i32, %c0_i32_0 : i32, i32
  }
  func.func @transform_6(%arg0: i32) -> (i32, i32) {
    %c0_i32 = arith.constant 0 : i32
    %c0_i32_0 = arith.constant 0 : i32
    %c0_i32_1 = arith.constant 0 : i32
    return %c0_i32, %c0_i32_0 : i32, i32
  }
  func.func @transform_7(%arg0: i32) -> (i32, i32) {
    %c0_i32 = arith.constant 0 : i32
    %c0_i32_0 = arith.constant 0 : i32
    %c0_i32_1 = arith.constant 0 : i32
    return %c0_i32, %c0_i32_0 : i32, i32
  }
  func.func @transform_8(%arg0: i32) -> (i32, i32) {
    %c0_i32 = arith.constant 0 : i32
    %c0_i32_0 = arith.constant 0 : i32
    %c0_i32_1 = arith.constant 0 : i32
    return %c0_i32, %c0_i32_0 : i32, i32
  }
  func.func @transform_9(%arg0: i32) -> (i32, i32) {
    %c0_i32 = arith.constant 0 : i32
    %c0_i32_0 = arith.constant 0 : i32
    return %arg0, %c0_i32 : i32, i32
  }
}

</mosaic_0001>

<bundles_post_ra>
// kernel: tpu_custom_call.1
= control target key start
LH: loop header
LB: loop body
LE: loop exit
PB: predicated region body
PF: predicated region fallthrough
CT: control target
= control target key end

     0   :  { %v7878_v2 = vmov 0   ;;  %s10482_s0 = inlined_call_operand.vmem [shape: bf16[8,128], index: 0, kind: input, shape index: {}]   ;;  %s10483_s1 = inlined_call_operand.vmem [shape: bf16[128,256], index: 1, kind: input, shape index: {}]   ;;  %s10484_s2 = inlined_call_operand.vmem [shape: f32[1,256], index: 2, kind: input, shape index: {}]   ;;  %s10485_s3 = inlined_call_operand.vmem [shape: bf16[256,512], index: 3, kind: input, shape index: {}]   ;;  %s10486_s4 = inlined_call_operand.vmem [shape: f32[1,512], index: 4, kind: input, shape index: {}]   ;;  %s10487_s5 = inlined_call_operand.vmem [shape: bf16[512,1024], index: 5, kind: input, shape index: {}]   ;;  %s10488_s6 = inlined_call_operand.vmem [shape: f32[1,1024], index: 6, kind: input, shape index: {}]   ;;  %s10489_s7 = inlined_call_operand.vmem [shape: bf16[1024,784], index: 7, kind: input, shape index: {}]   ;;  %s10490_s8 = inlined_call_operand.vmem [shape: f32[1,784], index: 8, kind: input, shape index: {}]   ;;  %s10491_s9 = inlined_call_operand.hbm [shape: f32[8,784], index: 9, kind: output, shape index: {}]  }
   0x1   :  { %v7080_v0 = vld [vmem:[%s10483_s1 + $0x4] ss:$8 sps:$4 sm:$0xff]   ;;  %v7082_v1 = vld [vmem:[%s10483_s1] ss:$8 sps:$4 sm:$0xff]   ;;  %175 = vmatprep.mubr.bf16.mxu0 %v7878_v2  ;;  %v7083_v3 = vld [vmem:[%s10483_s1 + $0x14] ss:$8 sps:$4 sm:$0xff]  }
   0x2   :  { %143 = vmatprep.subr.bf16.mxu0 %v7080_v0  ;;  %v7085_v4 = vld [vmem:[%s10483_s1 + $0x10] ss:$8 sps:$4 sm:$0xff]   ;;  %v7086_v5 = vld [vmem:[%s10483_s1 + $0x24] ss:$8 sps:$4 sm:$0xff]   ;;  %v7088_v6 = vld [vmem:[%s10483_s1 + $0x20] ss:$8 sps:$4 sm:$0xff]  }
   0x3   :  { %144 = vmatpush1.bf16.msra.mxu0 %v7082_v1  ;;  %v7089_v7 = vld [vmem:[%s10483_s1 + $0x34] ss:$8 sps:$4 sm:$0xff]   ;;  %v7091_v8 = vld [vmem:[%s10483_s1 + $0x30] ss:$8 sps:$4 sm:$0xff]   ;;  %v7092_v9 = vld [vmem:[%s10483_s1 + $0x44] ss:$8 sps:$4 sm:$0xff]  }
   0x4   :  { %145 = vmatprep.subr.bf16.mxu0 %v7083_v3  ;;  %v7094_v10 = vld [vmem:[%s10483_s1 + $0x40] ss:$8 sps:$4 sm:$0xff]   ;;  %v7095_v11 = vld [vmem:[%s10483_s1 + $0x54] ss:$8 sps:$4 sm:$0xff]   ;;  %v7097_v12 = vld [vmem:[%s10483_s1 + $0x50] ss:$8 sps:$4 sm:$0xff]  }
   0x5   :  { %v7098_v13 = vld [vmem:[%s10483_s1 + $0x64] ss:$8 sps:$4 sm:$0xff]   ;;  %v7100_v14 = vld [vmem:[%s10483_s1 + $0x60] ss:$8 sps:$4 sm:$0xff]   ;;  %v7101_v15 = vld [vmem:[%s10483_s1 + $0x74] ss:$8 sps:$4 sm:$0xff]  }
   0x6   :  { %v7103_v16 = vld [vmem:[%s10483_s1 + $0x70] ss:$8 sps:$4 sm:$0xff]   ;;  %v7106_v17 = vld [vmem:[%s10485_s3 + $0x4] ss:$16 sps:$4 sm:$0xff]   ;;  %v34_v18 = vld [vmem:[%s10482_s0] sm:$0xf] }
   0x7   :  { %146 = vmatpush1.bf16.msra.mxu0 %v7085_v4  ;;  %v7104_v19 = vld [vmem:[%s10485_s3] ss:$16 sps:$4 sm:$0xff]   ;;  %v7109_v20 = vld [vmem:[%s10485_s3 + $0x24] ss:$16 sps:$4 sm:$0xff]   ;;  %v7154_v50 = vld [vmem:[%s10485_s3 + $0xc] ss:$16 sps:$4 sm:$0xff]  }
   0x8   :  { %147 = vmatprep.subr.bf16.mxu0 %v7086_v5  ;;  %v7107_v21 = vld [vmem:[%s10485_s3 + $0x20] ss:$16 sps:$4 sm:$0xff]   ;;  %v7112_v22 = vld [vmem:[%s10485_s3 + $0x44] ss:$16 sps:$4 sm:$0xff]  }
   0x9   :  { %v7110_v23 = vld [vmem:[%s10485_s3 + $0x40] ss:$16 sps:$4 sm:$0xff]   ;;  %v7115_v24 = vld [vmem:[%s10485_s3 + $0x64] ss:$16 sps:$4 sm:$0xff]  }
   0xa   :  { %v7113_v25 = vld [vmem:[%s10485_s3 + $0x60] ss:$16 sps:$4 sm:$0xff]   ;;  %v7118_v26 = vld [vmem:[%s10485_s3 + $0x84] ss:$16 sps:$4 sm:$0xff]  }
   0xb   :  { %148 = vmatpush1.bf16.msra.mxu0 %v7088_v6  ;;  %v7116_v27 = vld [vmem:[%s10485_s3 + $0x80] ss:$16 sps:$4 sm:$0xff]   ;;  %v7121_v28 = vld [vmem:[%s10485_s3 + $0xa4] ss:$16 sps:$4 sm:$0xff]  }
   0xc   :  { %149 = vmatprep.subr.bf16.mxu0 %v7089_v7  ;;  %v7119_v29 = vld [vmem:[%s10485_s3 + $0xa0] ss:$16 sps:$4 sm:$0xff]   ;;  %v7124_v30 = vld [vmem:[%s10485_s3 + $0xc4] ss:$16 sps:$4 sm:$0xff]  }
   0xd   :  { %v7122_v31 = vld [vmem:[%s10485_s3 + $0xc0] ss:$16 sps:$4 sm:$0xff]   ;;  %v7127_v32 = vld [vmem:[%s10485_s3 + $0xe4] ss:$16 sps:$4 sm:$0xff]  }
   0xe   :  { %v7125_v33 = vld [vmem:[%s10485_s3 + $0xe0] ss:$16 sps:$4 sm:$0xff]   ;;  %v7130_v34 = vld [vmem:[%s10485_s3 + $0x104] ss:$16 sps:$4 sm:$0xff]  }
   0xf   :  { %150 = vmatpush1.bf16.msra.mxu0 %v7091_v8  ;;  %v7128_v35 = vld [vmem:[%s10485_s3 + $0x100] ss:$16 sps:$4 sm:$0xff]   ;;  %v7133_v36 = vld [vmem:[%s10485_s3 + $0x124] ss:$16 sps:$4 sm:$0xff]  }
  0x10   :  { %151 = vmatprep.subr.bf16.mxu0 %v7092_v9  ;;  %v7131_v37 = vld [vmem:[%s10485_s3 + $0x120] ss:$16 sps:$4 sm:$0xff]   ;;  %v7136_v38 = vld [vmem:[%s10485_s3 + $0x144] ss:$16 sps:$4 sm:$0xff]  }
  0x11   :  { %v7134_v39 = vld [vmem:[%s10485_s3 + $0x140] ss:$16 sps:$4 sm:$0xff]   ;;  %v7139_v40 = vld [vmem:[%s10485_s3 + $0x164] ss:$16 sps:$4 sm:$0xff]  }
  0x12   :  { %v7137_v41 = vld [vmem:[%s10485_s3 + $0x160] ss:$16 sps:$4 sm:$0xff]   ;;  %v7142_v42 = vld [vmem:[%s10485_s3 + $0x184] ss:$16 sps:$4 sm:$0xff]  }
  0x13   :  { %152 = vmatpush1.bf16.msra.mxu0 %v7094_v10  ;;  %v7140_v43 = vld [vmem:[%s10485_s3 + $0x180] ss:$16 sps:$4 sm:$0xff]   ;;  %v7145_v44 = vld [vmem:[%s10485_s3 + $0x1a4] ss:$16 sps:$4 sm:$0xff]  }
  0x14   :  { %153 = vmatprep.subr.bf16.mxu0 %v7095_v11  ;;  %v7143_v45 = vld [vmem:[%s10485_s3 + $0x1a0] ss:$16 sps:$4 sm:$0xff]   ;;  %v7148_v46 = vld [vmem:[%s10485_s3 + $0x1c4] ss:$16 sps:$4 sm:$0xff]  }
  0x15   :  { %v7146_v47 = vld [vmem:[%s10485_s3 + $0x1c0] ss:$16 sps:$4 sm:$0xff]   ;;  %v7151_v48 = vld [vmem:[%s10485_s3 + $0x1e4] ss:$16 sps:$4 sm:$0xff]  }
  0x16   :  { %v7149_v49 = vld [vmem:[%s10485_s3 + $0x1e0] ss:$16 sps:$4 sm:$0xff]  }
  0x17   :  { %154 = vmatpush1.bf16.msra.mxu0 %v7097_v12  ;;  %v684_v51 = vld [vmem:[%s10487_s5] sm:$0xff] }
  0x18   :  { %155 = vmatprep.subr.bf16.mxu0 %v7098_v13  ;;  %v688_v52 = vld [vmem:[%s10487_s5 + $0x20] sm:$0xff] }
  0x19   :  { %v6221_v53 = vcombine.high %v684_v51, %v688_v52  ;;  %v6220_v54 = vcombine.low %v684_v51, %v688_v52  ;;  %v692_v55 = vld [vmem:[%s10487_s5 + $0x40] sm:$0xff] }
  0x1a   :  { %v696_v56 = vld [vmem:[%s10487_s5 + $0x60] sm:$0xff] }
  0x1b   :  { %156 = vmatpush1.bf16.msra.mxu0 %v7100_v14  ;;  %v6229_v57 = vcombine.high %v692_v55, %v696_v56  ;;  %2262 = vmatprep.subr.bf16.mxu1 %v6221_v53  ;;  %v6228_v58 = vcombine.low %v692_v55, %v696_v56  ;;  %v700_v59 = vld [vmem:[%s10487_s5 + $0x80] sm:$0xff] }
  0x1c   :  { %157 = vmatprep.subr.bf16.mxu0 %v7101_v15  ;;  %2263 = vmatpush1.bf16.msra.mxu1 %v6220_v54  ;;  %v704_v60 = vld [vmem:[%s10487_s5 + $0xa0] sm:$0xff] }
  0x1d   :  { %2264 = vmatprep.subr.bf16.mxu1 %v6229_v57  ;;  %v6237_v61 = vcombine.high %v700_v59, %v704_v60  ;;  %v6236_v62 = vcombine.low %v700_v59, %v704_v60  ;;  %v708_v63 = vld [vmem:[%s10487_s5 + $0xc0] sm:$0xff] }
  0x1e   :  { %v712_v0 = vld [vmem:[%s10487_s5 + $0xe0] sm:$0xff] }
  0x1f   :  { %158 = vmatpush1.bf16.msra.mxu0 %v7103_v16  ;;  %v6245_v1 = vcombine.high %v708_v63, %v712_v0  ;;  %v6244_v2 = vcombine.low %v708_v63, %v712_v0  ;;  %v716_v3 = vld [vmem:[%s10487_s5 + $0x100] sm:$0xff] }
  0x20   :  { %594 = vmatprep.subr.bf16.mxu0 %v7106_v17  ;;  %2265 = vmatpush1.bf16.msra.mxu1 %v6228_v58  ;;  %v720_v4 = vld [vmem:[%s10487_s5 + $0x120] sm:$0xff] }
  0x21   :  { %2266 = vmatprep.subr.bf16.mxu1 %v6237_v61  ;;  %v6253_v5 = vcombine.high %v716_v3, %v720_v4  ;;  %v6252_v6 = vcombine.low %v716_v3, %v720_v4  ;;  %v724_v7 = vld [vmem:[%s10487_s5 + $0x140] sm:$0xff] }
  0x22   :  { %176 = vmatmul.mubr.bf16.vlgmr.msra.gmra.mrb[0].mxu0 %v34_v18  ;;  %v728_v8 = vld [vmem:[%s10487_s5 + $0x160] sm:$0xff] }
  0x23   :  { %595 = vmatpush1.bf16.msra.mxu0 %v7104_v19  ;;  %v6261_v9 = vcombine.high %v724_v7, %v728_v8  ;;  %v6260_v10 = vcombine.low %v724_v7, %v728_v8  ;;  %v732_v11 = vld [vmem:[%s10487_s5 + $0x180] sm:$0xff] }
  0x24   :  { %596 = vmatprep.subr.bf16.mxu0 %v7109_v20  ;;  %2267 = vmatpush1.bf16.msra.mxu1 %v6236_v62  ;;  %v736_v12 = vld [vmem:[%s10487_s5 + $0x1a0] sm:$0xff] }
  0x25   :  { %2268 = vmatprep.subr.bf16.mxu1 %v6245_v1  ;;  %v6269_v13 = vcombine.high %v732_v11, %v736_v12  ;;  %v6268_v14 = vcombine.low %v732_v11, %v736_v12  ;;  %v740_v15 = vld [vmem:[%s10487_s5 + $0x1c0] sm:$0xff] }
  0x26   :  { %v744_v16 = vld [vmem:[%s10487_s5 + $0x1e0] sm:$0xff] }
  0x27   :  { %597 = vmatpush1.bf16.msra.mxu0 %v7107_v21  ;;  %v6277_v17 = vcombine.high %v740_v15, %v744_v16  ;;  %v6276_v18 = vcombine.low %v740_v15, %v744_v16  ;;  %v748_v19 = vld [vmem:[%s10487_s5 + $0x200] sm:$0xff] }
  0x28   :  { %598 = vmatprep.subr.bf16.mxu0 %v7112_v22  ;;  %2269 = vmatpush1.bf16.msra.mxu1 %v6244_v2  ;;  %v752_v20 = vld [vmem:[%s10487_s5 + $0x220] sm:$0xff] }
  0x29   :  { %2270 = vmatprep.subr.bf16.mxu1 %v6253_v5  ;;  %v6285_v21 = vcombine.high %v748_v19, %v752_v20  ;;  %v6284_v22 = vcombine.low %v748_v19, %v752_v20 }
  0x2b   :  { %599 = vmatpush1.bf16.msra.mxu0 %v7110_v23  ;;  %v756_v23 = vld [vmem:[%s10487_s5 + $0x240] sm:$0xff] }
  0x2c   :  { %600 = vmatprep.subr.bf16.mxu0 %v7115_v24  ;;  %2271 = vmatpush1.bf16.msra.mxu1 %v6252_v6  ;;  %v760_v24 = vld [vmem:[%s10487_s5 + $0x260] sm:$0xff] }
  0x2d   :  { %2272 = vmatprep.subr.bf16.mxu1 %v6261_v9 }
  0x2f   :  { %601 = vmatpush1.bf16.msra.mxu0 %v7113_v25  ;;  %v6293_v25 = vcombine.high %v756_v23, %v760_v24 }
  0x30   :  { %602 = vmatprep.subr.bf16.mxu0 %v7118_v26  ;;  %2273 = vmatpush1.bf16.msra.mxu1 %v6260_v10  ;;  %v6292_v26 = vcombine.low %v756_v23, %v760_v24 }
  0x31   :  { %2274 = vmatprep.subr.bf16.mxu1 %v6269_v13 }
  0x33   :  { %603 = vmatpush1.bf16.msra.mxu0 %v7116_v27  ;;  %v764_v27 = vld [vmem:[%s10487_s5 + $0x280] sm:$0xff] }
  0x34   :  { %604 = vmatprep.subr.bf16.mxu0 %v7121_v28  ;;  %2275 = vmatpush1.bf16.msra.mxu1 %v6268_v14  ;;  %v768_v28 = vld [vmem:[%s10487_s5 + $0x2a0] sm:$0xff] }
  0x35   :  { %2276 = vmatprep.subr.bf16.mxu1 %v6277_v17 }
  0x37   :  { %605 = vmatpush1.bf16.msra.mxu0 %v7119_v29  ;;  %v6301_v29 = vcombine.high %v764_v27, %v768_v28 }
  0x38   :  { %606 = vmatprep.subr.bf16.mxu0 %v7124_v30  ;;  %2277 = vmatpush1.bf16.msra.mxu1 %v6276_v18  ;;  %v53_v30 = vlaneseq }
  0x39   :  { %2278 = vmatprep.subr.bf16.mxu1 %v6285_v21 }
  0x3b   :  { %607 = vmatpush1.bf16.msra.mxu0 %v7122_v31  ;;  %v6300_v31 = vcombine.low %v764_v27, %v768_v28 }
  0x3c   :  { %608 = vmatprep.subr.bf16.mxu0 %v7127_v32  ;;  %2279 = vmatpush1.bf16.msra.mxu1 %v6284_v22  ;;  %v772_v32 = vld [vmem:[%s10487_s5 + $0x2c0] sm:$0xff] }
  0x3d   :  { %2280 = vmatprep.subr.bf16.mxu1 %v6293_v25 }
  0x3f   :  { %609 = vmatpush1.bf16.msra.mxu0 %v7125_v33  ;;  %v776_v33 = vld [vmem:[%s10487_s5 + $0x2e0] sm:$0xff] }
  0x40   :  { %610 = vmatprep.subr.bf16.mxu0 %v7130_v34  ;;  %2281 = vmatpush1.bf16.msra.mxu1 %v6292_v26  ;;  %v6309_v34 = vcombine.high %v772_v32, %v776_v33 }
  0x41   :  { %2282 = vmatprep.subr.bf16.mxu1 %v6301_v29 }
  0x43   :  { %611 = vmatpush1.bf16.msra.mxu0 %v7128_v35  ;;  %v8152_v35 = vshrl.u32 %v53_v30, 7 }
  0x44   :  { %612 = vmatprep.subr.bf16.mxu0 %v7133_v36  ;;  %2283 = vmatpush1.bf16.msra.mxu1 %v6300_v31  ;;  %v6308_v36 = vcombine.low %v772_v32, %v776_v33 }
  0x45   :  { %2284 = vmatprep.subr.bf16.mxu1 %v6309_v34 }
  0x47   :  { %613 = vmatpush1.bf16.msra.mxu0 %v7131_v37  ;;  %v780_v37 = vld [vmem:[%s10487_s5 + $0x300] sm:$0xff] }
  0x48   :  { %614 = vmatprep.subr.bf16.mxu0 %v7136_v38  ;;  %v784_v38 = vld [vmem:[%s10487_s5 + $0x320] sm:$0xff]  ;;  %2285 = vmatpush1.bf16.msra.mxu1 %v6308_v36 }
  0x4b   :  { %615 = vmatpush1.bf16.msra.mxu0 %v7134_v39  ;;  %v6317_v39 = vcombine.high %v780_v37, %v784_v38 }
  0x4c   :  { %616 = vmatprep.subr.bf16.mxu0 %v7139_v40  ;;  %v8161_v40 = vsub.s32 0, %v8152_v35 }
  0x4d   :  { %2286 = vmatprep.subr.bf16.mxu1 %v6317_v39 }
  0x4f   :  { %617 = vmatpush1.bf16.msra.mxu0 %v7137_v41  ;;  %v6316_v41 = vcombine.low %v780_v37, %v784_v38 }
  0x50   :  { %618 = vmatprep.subr.bf16.mxu0 %v7142_v42  ;;  %v51_v42 = vld [vmem:[%s10484_s2] sm:$0x3] }
  0x51   :  { %2287 = vmatpush1.bf16.msra.mxu1 %v6316_v41 }
  0x53   :  { %619 = vmatpush1.bf16.msra.mxu0 %v7140_v43  ;;  %v8167_v43 = vsub.s32 1, %v8152_v35 }
  0x54   :  { %620 = vmatprep.subr.bf16.mxu0 %v7145_v44  ;;  %v788_v44 = vld [vmem:[%s10487_s5 + $0x340] sm:$0xff] }
  0x57   :  { %621 = vmatpush1.bf16.msra.mxu0 %v7143_v45  ;;  %v792_v45 = vld [vmem:[%s10487_s5 + $0x360] sm:$0xff] }
  0x58   :  { %622 = vmatprep.subr.bf16.mxu0 %v7148_v46  ;;  %v6325_v46 = vcombine.high %v788_v44, %v792_v45 }
  0x5a   :  { %2288 = vmatprep.subr.bf16.mxu1 %v6325_v46 }
  0x5b   :  { %623 = vmatpush1.bf16.msra.mxu0 %v7146_v47  ;;  %v56_v47 = vrot.slane %v51_v42, %v8161_v40 }
  0x5c   :  { %624 = vmatprep.subr.bf16.mxu0 %v7151_v48  ;;  %v6324_v48 = vcombine.low %v788_v44, %v792_v45 }
  0x5f   :  { %625 = vmatpush1.bf16.msra.mxu0 %v7149_v49  ;;  %v60_v49 = vrot.slane %v51_v42, %v8167_v43 }
  0x60   :  { %635 = vmatprep.subr.bf16.mxu0 %v7154_v50 }
  0x61   :  { %14 = vsyncpa [#allocation3], 0  ;;  %2289 = vmatpush1.bf16.msra.mxu1 %v6324_v48  ;;  %v7152_v59 = vld [vmem:[%s10485_s3 + $0x8] ss:$16 sps:$4 sm:$0xff]   ;;  %v7157_v61 = vld [vmem:[%s10485_s3 + $0x2c] ss:$16 sps:$4 sm:$0xff]  }
  0x62   :  { %v7155_v62 = vld [vmem:[%s10485_s3 + $0x28] ss:$16 sps:$4 sm:$0xff]   ;;  %v7160_v63 = vld [vmem:[%s10485_s3 + $0x4c] ss:$16 sps:$4 sm:$0xff]   ;;  %vm6124_vm0 = vcmask 130048  }
  0x63   :  { %v7158_v0 = vld [vmem:[%s10485_s3 + $0x48] ss:$16 sps:$4 sm:$0xff]   ;;  %v7163_v1 = vld [vmem:[%s10485_s3 + $0x6c] ss:$16 sps:$4 sm:$0xff]  }
  0x64   :  { %v7161_v2 = vld [vmem:[%s10485_s3 + $0x68] ss:$16 sps:$4 sm:$0xff]   ;;  %v7166_v3 = vld [vmem:[%s10485_s3 + $0x8c] ss:$16 sps:$4 sm:$0xff]  }
  0x65   :  { %v7164_v4 = vld [vmem:[%s10485_s3 + $0x88] ss:$16 sps:$4 sm:$0xff]   ;;  %v7169_v5 = vld [vmem:[%s10485_s3 + $0xac] ss:$16 sps:$4 sm:$0xff]  }
  0x66   :  { %v7167_v6 = vld [vmem:[%s10485_s3 + $0xa8] ss:$16 sps:$4 sm:$0xff]   ;;  %v7172_v7 = vld [vmem:[%s10485_s3 + $0xcc] ss:$16 sps:$4 sm:$0xff]  }
  0x67   :  { %v7170_v8 = vld [vmem:[%s10485_s3 + $0xc8] ss:$16 sps:$4 sm:$0xff]   ;;  %v7175_v9 = vld [vmem:[%s10485_s3 + $0xec] ss:$16 sps:$4 sm:$0xff]  }
  0x68   :  { %v7173_v10 = vld [vmem:[%s10485_s3 + $0xe8] ss:$16 sps:$4 sm:$0xff]   ;;  %v7178_v11 = vld [vmem:[%s10485_s3 + $0x10c] ss:$16 sps:$4 sm:$0xff]  }
  0x69   :  { %v7176_v12 = vld [vmem:[%s10485_s3 + $0x108] ss:$16 sps:$4 sm:$0xff]   ;;  %v7181_v13 = vld [vmem:[%s10485_s3 + $0x12c] ss:$16 sps:$4 sm:$0xff]  }
  0x6a   :  { %v7179_v14 = vld [vmem:[%s10485_s3 + $0x128] ss:$16 sps:$4 sm:$0xff]   ;;  %v7184_v15 = vld [vmem:[%s10485_s3 + $0x14c] ss:$16 sps:$4 sm:$0xff]  }
  0x6b   :  { %v7182_v16 = vld [vmem:[%s10485_s3 + $0x148] ss:$16 sps:$4 sm:$0xff]   ;;  %v7187_v17 = vld [vmem:[%s10485_s3 + $0x16c] ss:$16 sps:$4 sm:$0xff]  }
  0x6c   :  { %v7185_v18 = vld [vmem:[%s10485_s3 + $0x168] ss:$16 sps:$4 sm:$0xff]   ;;  %v7190_v19 = vld [vmem:[%s10485_s3 + $0x18c] ss:$16 sps:$4 sm:$0xff]  }
  0x6d   :  { %v7188_v20 = vld [vmem:[%s10485_s3 + $0x188] ss:$16 sps:$4 sm:$0xff]   ;;  %v7193_v21 = vld [vmem:[%s10485_s3 + $0x1ac] ss:$16 sps:$4 sm:$0xff]  }
  0x6e   :  { %v7191_v22 = vld [vmem:[%s10485_s3 + $0x1a8] ss:$16 sps:$4 sm:$0xff]   ;;  %v7196_v23 = vld [vmem:[%s10485_s3 + $0x1cc] ss:$16 sps:$4 sm:$0xff]  }
  0x6f   :  { %v7194_v24 = vld [vmem:[%s10485_s3 + $0x1c8] ss:$16 sps:$4 sm:$0xff]   ;;  %v7199_v25 = vld [vmem:[%s10485_s3 + $0x1ec] ss:$16 sps:$4 sm:$0xff]  }
  0x70   :  { %v685_v26 = vld [vmem:[%s10487_s5 + $0x8] sm:$0xff] }
  0x71   :  { %v689_v27 = vld [vmem:[%s10487_s5 + $0x28] sm:$0xff] }
  0x72   :  { %v7197_v28 = vld [vmem:[%s10485_s3 + $0x1e8] ss:$16 sps:$4 sm:$0xff]   ;;  %v6223_v29 = vcombine.high %v685_v26, %v689_v27  ;;  %v6222_v32 = vcombine.low %v685_v26, %v689_v27 }
  0x73   :  { %v693_v30 = vld [vmem:[%s10487_s5 + $0x48] sm:$0xff] }
  0x74   :  { %v697_v31 = vld [vmem:[%s10487_s5 + $0x68] sm:$0xff] }
  0x75   :  { %v6231_v33 = vcombine.high %v693_v30, %v697_v31  ;;  %v701_v34 = vld [vmem:[%s10487_s5 + $0x88] sm:$0xff]  ;;  %v6230_v37 = vcombine.low %v693_v30, %v697_v31 }
  0x76   :  { %v705_v36 = vld [vmem:[%s10487_s5 + $0xa8] sm:$0xff] }
  0x77   :  { %v6239_v38 = vcombine.high %v701_v34, %v705_v36  ;;  %v709_v39 = vld [vmem:[%s10487_s5 + $0xc8] sm:$0xff]  ;;  %v6238_v42 = vcombine.low %v701_v34, %v705_v36 }
  0x78   :  { %v713_v41 = vld [vmem:[%s10487_s5 + $0xe8] sm:$0xff] }
  0x79   :  { %v6247_v44 = vcombine.high %v709_v39, %v713_v41  ;;  %v717_v45 = vld [vmem:[%s10487_s5 + $0x108] sm:$0xff] }
  0x7a   :  { %v721_v46 = vld [vmem:[%s10487_s5 + $0x128] sm:$0xff] }
  0x7b   :  { %v6255_v48 = vcombine.high %v717_v45, %v721_v46 }
  0xf5   :  { %v177_v50 = vpop.f32.mrb[0].mxu0 }
  0xf6   :  { %v178_v51 = vadd.f32 %v177_v50, %v56_v47  ;;  %v179_v52 = vpop.f32.mrb[1].mxu0  ;;  %v6246_v47 = vcombine.low %v709_v39, %v713_v41  ;;  %v729_v50 = vld [vmem:[%s10487_s5 + $0x168] sm:$0xff] }
  0xf7   :  { %v180_v53 = vadd.f32 %v179_v52, %v60_v49  ;;  %v181_v54 = vpop.f32.mrb[2].mxu0  ;;  %v725_v49 = vld [vmem:[%s10487_s5 + $0x148] sm:$0xff] }
  0xf8   :  { %v184_v55 = vmax.f32 %v178_v51, 0.0  ;;  %v182_v56 = vpop.f32.mrb[3].mxu0  ;;  %v6254_v51 = vcombine.low %v717_v45, %v721_v46  ;;  %v6263_v52 = vcombine.high %v725_v49, %v729_v50  ;;  %v737_v54 = vld [vmem:[%s10487_s5 + $0x1a8] sm:$0xff] }
  0xf9   :  { %v185_v57 = vmax.f32 %v180_v53, 0.0  ;;  %v733_v53 = vld [vmem:[%s10487_s5 + $0x188] sm:$0xff]  ;;  %v796_v56 = vld [vmem:[%s10487_s5 + $0x380] sm:$0xff] }
  0xfa   :  { %v8180_v60 = vpack.c.bf16 %v184_v55, %v184_v55  ;;  %v6262_v55 = vcombine.low %v725_v49, %v729_v50  ;;  %v8413_v49 = vld [vmem:[%s10486_s4] sm:$0xf] }
  0xfb   :  { %v187_v58 = vpack.c.bf16 %v185_v57, %v185_v57  ;;  %v800_v57 = vld [vmem:[%s10487_s5 + $0x3a0] sm:$0xff]  ;;  %v257_v50 = vrot.slane %v8413_v49, %v8161_v40 }
  0xfd   :  { %626 = vmatprep.mubr.bf16.mxu0 %v187_v58 }
  0xfe   :  { %627 = vmatmul.mubr.bf16.vlgmr.msra.gmra.mrb[4].mxu0 %v8180_v60 }
  0xff   :  { %636 = vmatpush1.bf16.msra.mxu0 %v7152_v59  ;;  %667 = vmatprep.mubr.bf16.mxu0 %v187_v58  ;;  %v6271_v58 = vcombine.high %v733_v53, %v737_v54  ;;  %v6333_v59 = vcombine.high %v796_v56, %v800_v57 }
 0x100   :  { %637 = vmatprep.subr.bf16.mxu0 %v7157_v61  ;;  %v745_v61 = vld [vmem:[%s10487_s5 + $0x1e8] sm:$0xff] }
 0x101   :  { %2290 = vmatprep.subr.bf16.mxu1 %v6333_v59  ;;  %v820_v59 = vld [vmem:[%s10487_s5 + $0x440] sm:$0xff] }
 0x103   :  { %638 = vmatpush1.bf16.msra.mxu0 %v7155_v62  ;;  %v6332_v62 = vcombine.low %v796_v56, %v800_v57 }
 0x104   :  { %639 = vmatprep.subr.bf16.mxu0 %v7160_v63  ;;  %v6270_v63 = vcombine.low %v733_v53, %v737_v54 }
 0x105   :  { %2291 = vmatpush1.bf16.msra.mxu1 %v6332_v62  ;;  %v821_v62 = vld [vmem:[%s10487_s5 + $0x448] sm:$0xff] }
 0x107   :  { %640 = vmatpush1.bf16.msra.mxu0 %v7158_v0  ;;  %v804_v0 = vld [vmem:[%s10487_s5 + $0x3c0] sm:$0xff] }
 0x108   :  { %641 = vmatprep.subr.bf16.mxu0 %v7163_v1  ;;  %v808_v1 = vld [vmem:[%s10487_s5 + $0x3e0] sm:$0xff] }
 0x10b   :  { %642 = vmatpush1.bf16.msra.mxu0 %v7161_v2 }
 0x10c   :  { %643 = vmatprep.subr.bf16.mxu0 %v7166_v3  ;;  %v6341_v3 = vcombine.high %v804_v0, %v808_v1 }
 0x10e   :  { %2292 = vmatprep.subr.bf16.mxu1 %v6341_v3 }
 0x10f   :  { %644 = vmatpush1.bf16.msra.mxu0 %v7164_v4  ;;  %v749_v4 = vld [vmem:[%s10487_s5 + $0x208] sm:$0xff] }
 0x110   :  { %645 = vmatprep.subr.bf16.mxu0 %v7169_v5  ;;  %v753_v5 = vld [vmem:[%s10487_s5 + $0x228] sm:$0xff] }
 0x113   :  { %646 = vmatpush1.bf16.msra.mxu0 %v7167_v6  ;;  %v6340_v6 = vcombine.low %v804_v0, %v808_v1 }
 0x114   :  { %647 = vmatprep.subr.bf16.mxu0 %v7172_v7 }
 0x115   :  { %2293 = vmatpush1.bf16.msra.mxu1 %v6340_v6  ;;  %v829_v6 = vld [vmem:[%s10487_s5 + $0x488] sm:$0xff] }
 0x117   :  { %648 = vmatpush1.bf16.msra.mxu0 %v7170_v8  ;;  %v8343_v8 = vld [vmem:[%s10487_s5 + $0x400] sm:$0xff] }
 0x118   :  { %649 = vmatprep.subr.bf16.mxu0 %v7175_v9  ;;  %v8348_v9 = vld [vmem:[%s10487_s5 + $0x420] sm:$0xff] }
 0x11b   :  { %650 = vmatpush1.bf16.msra.mxu0 %v7173_v10  ;;  %v8353_v10 = vld [vmem:[%s10487_s5 + $0x408] sm:$0xff] }
 0x11c   :  { %651 = vmatprep.subr.bf16.mxu0 %v7178_v11  ;;  %v6287_v11 = vcombine.high %v749_v4, %v753_v5 }
 0x11f   :  { %652 = vmatpush1.bf16.msra.mxu0 %v7176_v12  ;;  %v6349_v12 = vcombine.high %v8343_v8, %v8348_v9 }
 0x120   :  { %653 = vmatprep.subr.bf16.mxu0 %v7181_v13  ;;  %v8360_v13 = vld [vmem:[%s10487_s5 + $0x428] sm:$0xff] }
 0x121   :  { %2303 = vmatprep.subr.bf16.mxu1 %v6349_v12 }
 0x123   :  { %654 = vmatpush1.bf16.msra.mxu0 %v7179_v14  ;;  %v757_v14 = vld [vmem:[%s10487_s5 + $0x248] sm:$0xff] }
 0x124   :  { %655 = vmatprep.subr.bf16.mxu0 %v7184_v15  ;;  %v761_v15 = vld [vmem:[%s10487_s5 + $0x268] sm:$0xff] }
 0x127   :  { %656 = vmatpush1.bf16.msra.mxu0 %v7182_v16  ;;  %v6348_v16 = vcombine.low %v8343_v8, %v8348_v9  ;;  %v837_v8 = vld [vmem:[%s10487_s5 + $0x4c8] sm:$0xff] }
 0x128   :  { %657 = vmatprep.subr.bf16.mxu0 %v7187_v17  ;;  %v6350_v17 = vcombine.low %v8353_v10, %v8360_v13  ;;  %v841_v9 = vld [vmem:[%s10487_s5 + $0x4e8] sm:$0xff] }
 0x12b   :  { %658 = vmatpush1.bf16.msra.mxu0 %v7185_v18  ;;  %v6286_v18 = vcombine.low %v749_v4, %v753_v5  ;;  %v828_v4 = vld [vmem:[%s10487_s5 + $0x480] sm:$0xff] }
 0x12c   :  { %659 = vmatprep.subr.bf16.mxu0 %v7190_v19  ;;  %v6295_v19 = vcombine.high %v757_v14, %v761_v15  ;;  %v832_v5 = vld [vmem:[%s10487_s5 + $0x4a0] sm:$0xff] }
 0x12f   :  { %660 = vmatpush1.bf16.msra.mxu0 %v7188_v20  ;;  %v765_v20 = vld [vmem:[%s10487_s5 + $0x288] sm:$0xff] }
 0x130   :  { %661 = vmatprep.subr.bf16.mxu0 %v7193_v21  ;;  %v769_v21 = vld [vmem:[%s10487_s5 + $0x2a8] sm:$0xff] }
 0x131   :  { %v6302_v26 = vcombine.low %v765_v20, %v769_v21 }
 0x133   :  { %662 = vmatpush1.bf16.msra.mxu0 %v7191_v22  ;;  %v6294_v22 = vcombine.low %v757_v14, %v761_v15  ;;  %v6365_v14 = vcombine.high %v828_v4, %v832_v5 }
 0x134   :  { %663 = vmatprep.subr.bf16.mxu0 %v7196_v23  ;;  %v6303_v23 = vcombine.high %v765_v20, %v769_v21  ;;  %v844_v20 = vld [vmem:[%s10487_s5 + $0x500] sm:$0xff] }
 0x135   :  { %v848_v21 = vld [vmem:[%s10487_s5 + $0x520] sm:$0xff] }
 0x137   :  { %664 = vmatpush1.bf16.msra.mxu0 %v7194_v24  ;;  %v773_v24 = vld [vmem:[%s10487_s5 + $0x2c8] sm:$0xff] }
 0x138   :  { %665 = vmatprep.subr.bf16.mxu0 %v7199_v25  ;;  %v777_v25 = vld [vmem:[%s10487_s5 + $0x2e8] sm:$0xff] }
 0x139   :  { %v6311_v27 = vcombine.high %v773_v24, %v777_v25  ;;  %v6310_v30 = vcombine.low %v773_v24, %v777_v25  ;;  %v6374_v25 = vcombine.low %v837_v8, %v841_v9 }
 0x13b   :  { %666 = vmatpush1.bf16.msra.mxu0 %v7197_v28  ;;  %v781_v28 = vld [vmem:[%s10487_s5 + $0x308] sm:$0xff] }
 0x13c   :  { %2344 = vmatprep.subr.bf16.mxu0 %v6223_v29  ;;  %v785_v29 = vld [vmem:[%s10487_s5 + $0x328] sm:$0xff] }
 0x13d   :  { %v6319_v31 = vcombine.high %v781_v28, %v785_v29  ;;  %v6318_v34 = vcombine.low %v781_v28, %v785_v29  ;;  %v852_v28 = vld [vmem:[%s10487_s5 + $0x540] sm:$0xff] }
 0x13e   :  { %668 = vmatmul.mubr.bf16.vlgmr.msra.gmra.mrb[8].mxu0 %v8180_v60  ;;  %v741_v60 = vld [vmem:[%s10487_s5 + $0x1c8] sm:$0xff]  ;;  %v856_v29 = vld [vmem:[%s10487_s5 + $0x560] sm:$0xff] }
 0x13f   :  { %2345 = vmatpush1.bf16.msra.mxu0 %v6222_v32  ;;  %v6279_v2 = vcombine.high %v741_v60, %v745_v61  ;;  %v6278_v7 = vcombine.low %v741_v60, %v745_v61  ;;  %v789_v32 = vld [vmem:[%s10487_s5 + $0x348] sm:$0xff]  ;;  %v824_v61 = vld [vmem:[%s10487_s5 + $0x460] sm:$0xff] }
 0x140   :  { %2346 = vmatprep.subr.bf16.mxu0 %v6231_v33  ;;  %v793_v33 = vld [vmem:[%s10487_s5 + $0x368] sm:$0xff] }
 0x141   :  { %v6327_v36 = vcombine.high %v789_v32, %v793_v33  ;;  %v6326_v39 = vcombine.low %v789_v32, %v793_v33  ;;  %v6380_v32 = vcombine.low %v844_v20, %v848_v21 }
 0x143   :  { %2347 = vmatpush1.bf16.msra.mxu0 %v6230_v37  ;;  %v797_v37 = vld [vmem:[%s10487_s5 + $0x388] sm:$0xff] }
 0x144   :  { %2348 = vmatprep.subr.bf16.mxu0 %v6239_v38  ;;  %v801_v38 = vld [vmem:[%s10487_s5 + $0x3a8] sm:$0xff] }
 0x145   :  { %v6335_v41 = vcombine.high %v797_v37, %v801_v38  ;;  %v6334_v45 = vcombine.low %v797_v37, %v801_v38  ;;  %v860_v37 = vld [vmem:[%s10487_s5 + $0x580] sm:$0xff] }
 0x146   :  { %v864_v38 = vld [vmem:[%s10487_s5 + $0x5a0] sm:$0xff] }
 0x147   :  { %2349 = vmatpush1.bf16.msra.mxu0 %v6238_v42  ;;  %v805_v42 = vld [vmem:[%s10487_s5 + $0x3c8] sm:$0xff] }
 0x148   :  { %2350 = vmatprep.subr.bf16.mxu0 %v6247_v44  ;;  %v809_v44 = vld [vmem:[%s10487_s5 + $0x3e8] sm:$0xff] }
 0x149   :  { %v6343_v46 = vcombine.high %v805_v42, %v809_v44 }
 0x14b   :  { %2351 = vmatpush1.bf16.msra.mxu0 %v6246_v47  ;;  %v6342_v47 = vcombine.low %v805_v42, %v809_v44  ;;  %v6388_v42 = vcombine.low %v852_v28, %v856_v29 }
 0x14c   :  { %2352 = vmatprep.subr.bf16.mxu0 %v6255_v48  ;;  %v6351_v48 = vcombine.high %v8353_v10, %v8360_v13  ;;  %v6364_v10 = vcombine.low %v828_v4, %v832_v5  ;;  %v885_v4 = vld [vmem:[%s10487_s5 + $0x648] sm:$0xff] }
 0x14d   :  { %v889_v5 = vld [vmem:[%s10487_s5 + $0x668] sm:$0xff] }
 0x14f   :  { %2353 = vmatpush1.bf16.msra.mxu0 %v6254_v51  ;;  %v261_v51 = vrot.slane %v8413_v49, %v8167_v43 }
 0x150   :  { %2354 = vmatprep.subr.bf16.mxu0 %v6263_v52 }
 0x153   :  { %2355 = vmatpush1.bf16.msra.mxu0 %v6262_v55 }
 0x154   :  { %2356 = vmatprep.subr.bf16.mxu0 %v6271_v58 }
 0x157   :  { %2357 = vmatpush1.bf16.msra.mxu0 %v6270_v63  ;;  %v825_v63 = vld [vmem:[%s10487_s5 + $0x468] sm:$0xff] }
 0x158   :  { %2358 = vmatprep.subr.bf16.mxu0 %v6279_v2  ;;  %v6357_v2 = vcombine.high %v820_v59, %v824_v61  ;;  %v6359_v3 = vcombine.high %v821_v62, %v825_v63  ;;  %v6358_v12 = vcombine.low %v821_v62, %v825_v63 }
 0x15b   :  { %2359 = vmatpush1.bf16.msra.mxu0 %v6278_v7  ;;  %v833_v7 = vld [vmem:[%s10487_s5 + $0x4a8] sm:$0xff] }
 0x15c   :  { %2360 = vmatprep.subr.bf16.mxu0 %v6287_v11  ;;  %v6356_v11 = vcombine.low %v820_v59, %v824_v61  ;;  %v6367_v15 = vcombine.high %v829_v6, %v833_v7  ;;  %v6366_v13 = vcombine.low %v829_v6, %v833_v7  ;;  %v881_v59 = vld [vmem:[%s10487_s5 + $0x628] sm:$0xff] }
 0x15f   :  { %2361 = vmatpush1.bf16.msra.mxu0 %v6286_v18  ;;  %v836_v18 = vld [vmem:[%s10487_s5 + $0x4c0] sm:$0xff] }
 0x160   :  { %2362 = vmatprep.subr.bf16.mxu0 %v6295_v19  ;;  %v840_v19 = vld [vmem:[%s10487_s5 + $0x4e0] sm:$0xff] }
 0x161   :  { %v6372_v24 = vcombine.low %v836_v18, %v840_v19 }
 0x163   :  { %2363 = vmatpush1.bf16.msra.mxu0 %v6294_v22  ;;  %v845_v22 = vld [vmem:[%s10487_s5 + $0x508] sm:$0xff] }
 0x164   :  { %2364 = vmatprep.subr.bf16.mxu0 %v6303_v23  ;;  %v849_v23 = vld [vmem:[%s10487_s5 + $0x528] sm:$0xff] }
 0x165   :  { %v6382_v33 = vcombine.low %v845_v22, %v849_v23 }
 0x167   :  { %2365 = vmatpush1.bf16.msra.mxu0 %v6302_v26  ;;  %v6381_v26 = vcombine.high %v844_v20, %v848_v21  ;;  %v901_v20 = vld [vmem:[%s10487_s5 + $0x6c8] sm:$0xff] }
 0x168   :  { %2366 = vmatprep.subr.bf16.mxu0 %v6311_v27  ;;  %v6383_v27 = vcombine.high %v845_v22, %v849_v23  ;;  %v905_v21 = vld [vmem:[%s10487_s5 + $0x6e8] sm:$0xff] }
 0x16b   :  { %2367 = vmatpush1.bf16.msra.mxu0 %v6310_v30  ;;  %v853_v30 = vld [vmem:[%s10487_s5 + $0x548] sm:$0xff] }
 0x16c   :  { %2368 = vmatprep.subr.bf16.mxu0 %v6319_v31  ;;  %v857_v31 = vld [vmem:[%s10487_s5 + $0x568] sm:$0xff] }
 0x16d   :  { %v6390_v44 = vcombine.low %v853_v30, %v857_v31 }
 0x16f   :  { %2369 = vmatpush1.bf16.msra.mxu0 %v6318_v34  ;;  %v6389_v34 = vcombine.high %v852_v28, %v856_v29  ;;  %v909_v28 = vld [vmem:[%s10487_s5 + $0x708] sm:$0xff] }
 0x170   :  { %2370 = vmatprep.subr.bf16.mxu0 %v6327_v36  ;;  %v6391_v36 = vcombine.high %v853_v30, %v857_v31  ;;  %v913_v29 = vld [vmem:[%s10487_s5 + $0x728] sm:$0xff]  ;;  %v6438_v31 = vcombine.low %v901_v20, %v905_v21 }
 0x173   :  { %2371 = vmatpush1.bf16.msra.mxu0 %v6326_v39  ;;  %v861_v39 = vld [vmem:[%s10487_s5 + $0x588] sm:$0xff] }
 0x174   :  { %2372 = vmatprep.subr.bf16.mxu0 %v6335_v41  ;;  %v865_v41 = vld [vmem:[%s10487_s5 + $0x5a8] sm:$0xff] }
 0x177   :  { %2373 = vmatpush1.bf16.msra.mxu0 %v6334_v45  ;;  %v6397_v45 = vcombine.high %v860_v37, %v864_v38 }
 0x178   :  { %2374 = vmatprep.subr.bf16.mxu0 %v6343_v46  ;;  %v6399_v46 = vcombine.high %v861_v39, %v865_v41 }
 0x17b   :  { %2375 = vmatpush1.bf16.msra.mxu0 %v6342_v47  ;;  %v868_v47 = vld [vmem:[%s10487_s5 + $0x5c0] sm:$0xff] }
 0x17c   :  { %2385 = vmatprep.subr.bf16.mxu0 %v6351_v48  ;;  %v872_v48 = vld [vmem:[%s10487_s5 + $0x5e0] sm:$0xff] }
 0x1d1   :  { %v628_v52 = vpop.f32.mrb[4].mxu0 }
 0x1d2   :  { %v629_v53 = vadd.f32 %v628_v52, %v257_v50  ;;  %v630_v54 = vpop.f32.mrb[5].mxu0  ;;  %v869_v50 = vld [vmem:[%s10487_s5 + $0x5c8] sm:$0xff]  ;;  %v6396_v52 = vcombine.low %v860_v37, %v864_v38 }
 0x1d3   :  { %v631_v55 = vadd.f32 %v630_v54, %v261_v51  ;;  %v632_v56 = vpop.f32.mrb[6].mxu0  ;;  %v873_v51 = vld [vmem:[%s10487_s5 + $0x5e8] sm:$0xff]  ;;  %v6405_v54 = vcombine.high %v868_v47, %v872_v48 }
 0x1d4   :  { %v676_v57 = vmax.f32 %v629_v53, 0.0  ;;  %v633_v58 = vpop.f32.mrb[7].mxu0  ;;  %v6398_v53 = vcombine.low %v861_v39, %v865_v41  ;;  %v876_v56 = vld [vmem:[%s10487_s5 + $0x600] sm:$0xff]  ;;  %v6406_v61 = vcombine.low %v869_v50, %v873_v51  ;;  %v917_v37 = vld [vmem:[%s10487_s5 + $0x748] sm:$0xff]  ;;  %v6446_v41 = vcombine.low %v909_v28, %v913_v29 }
 0x1d5   :  { %v677_v60 = vmax.f32 %v631_v55, 0.0  ;;  %v6407_v55 = vcombine.high %v869_v50, %v873_v51  ;;  %v877_v58 = vld [vmem:[%s10487_s5 + $0x608] sm:$0xff]  ;;  %v8602_v50 = vsub.s32 2, %v8152_v35 }
 0x1d6   :  { %v8433_v1 = vpack.c.bf16 %v676_v57, %v676_v57  ;;  %v880_v57 = vld [vmem:[%s10487_s5 + $0x620] sm:$0xff]  ;;  %v6415_v63 = vcombine.high %v877_v58, %v881_v59  ;;  %v6414_v7 = vcombine.low %v877_v58, %v881_v59  ;;  %v921_v38 = vld [vmem:[%s10487_s5 + $0x768] sm:$0xff] }
 0x1d7   :  { %v8431_v0 = vpack.c.bf16 %v677_v60, %v677_v60  ;;  %v6404_v60 = vcombine.low %v868_v47, %v872_v48  ;;  %v6413_v62 = vcombine.high %v876_v56, %v880_v57  ;;  %v6412_v6 = vcombine.low %v876_v56, %v880_v57  ;;  %v925_v47 = vld [vmem:[%s10487_s5 + $0x788] sm:$0xff]  ;;  %v932_v56 = vld [vmem:[%s10487_s5 + $0x7c0] sm:$0xff] }
 0x1d8   :  { %v929_v48 = vld [vmem:[%s10487_s5 + $0x7a8] sm:$0xff]  ;;  %v936_v57 = vld [vmem:[%s10487_s5 + $0x7e0] sm:$0xff] }
 0x1d9   :  { %2294 = vmatprep.mubr.bf16.mxu1 %v8431_v0  ;;  %2376 = vmatprep.mubr.bf16.mxu0 %v8431_v0  ;;  %v933_v58 = vld [vmem:[%s10487_s5 + $0x7c8] sm:$0xff] }
 0x1da   :  { %2295 = vmatmul.mubr.bf16.vlgmr.msra.gmra.mrb[0].mxu1 %v8433_v1  ;;  %2377 = vmatmul.mubr.bf16.vlgmr.msra.gmra.mrb[12].mxu0 %v8433_v1  ;;  %v937_v59 = vld [vmem:[%s10487_s5 + $0x7e8] sm:$0xff] }
 0x1db   :  { %2304 = vmatpush1.bf16.msra.mxu1 %v6348_v16  ;;  %2386 = vmatpush1.bf16.msra.mxu0 %v6350_v17  ;;  %v6373_v16 = vcombine.high %v836_v18, %v840_v19  ;;  %v6375_v17 = vcombine.high %v837_v8, %v841_v9  ;;  %v893_v18 = vld [vmem:[%s10487_s5 + $0x688] sm:$0xff]  ;;  %v6422_v9 = vcombine.low %v885_v4, %v889_v5 }
 0x1dc   :  { %2305 = vmatprep.subr.bf16.mxu1 %v6357_v2  ;;  %2387 = vmatprep.subr.bf16.mxu0 %v6359_v3  ;;  %v884_v2 = vld [vmem:[%s10487_s5 + $0x640] sm:$0xff]  ;;  %v897_v19 = vld [vmem:[%s10487_s5 + $0x6a8] sm:$0xff] }
 0x1dd   :  { %v888_v3 = vld [vmem:[%s10487_s5 + $0x660] sm:$0xff]  ;;  %v6430_v23 = vcombine.low %v893_v18, %v897_v19 }
 0x1de   :  { %v6420_v8 = vcombine.low %v884_v2, %v888_v3 }
 0x1df   :  { %2306 = vmatpush1.bf16.msra.mxu1 %v6356_v11  ;;  %2388 = vmatpush1.bf16.msra.mxu0 %v6358_v12  ;;  %v6421_v11 = vcombine.high %v884_v2, %v888_v3  ;;  %v6423_v12 = vcombine.high %v885_v4, %v889_v5  ;;  %v6469_v2 = vcombine.high %v932_v56, %v936_v57  ;;  %v686_v4 = vld [vmem:[%s10487_s5 + $0x10] sm:$0xff] }
 0x1e0   :  { %2307 = vmatprep.subr.bf16.mxu1 %v6365_v14  ;;  %2389 = vmatprep.subr.bf16.mxu0 %v6367_v15  ;;  %v892_v14 = vld [vmem:[%s10487_s5 + $0x680] sm:$0xff]  ;;  %v6471_v3 = vcombine.high %v933_v58, %v937_v59 }
 0x1e1   :  { %v896_v15 = vld [vmem:[%s10487_s5 + $0x6a0] sm:$0xff] }
 0x1e2   :  { %v6428_v22 = vcombine.low %v892_v14, %v896_v15 }
 0x1e3   :  { %2308 = vmatpush1.bf16.msra.mxu1 %v6364_v10  ;;  %2390 = vmatpush1.bf16.msra.mxu0 %v6366_v13  ;;  %v6429_v10 = vcombine.high %v892_v14, %v896_v15  ;;  %v6431_v13 = vcombine.high %v893_v18, %v897_v19  ;;  %v6468_v18 = vcombine.low %v932_v56, %v936_v57 }
 0x1e4   :  { %2309 = vmatprep.subr.bf16.mxu1 %v6373_v16  ;;  %2391 = vmatprep.subr.bf16.mxu0 %v6375_v17  ;;  %v900_v16 = vld [vmem:[%s10487_s5 + $0x6c0] sm:$0xff]  ;;  %v6470_v19 = vcombine.low %v933_v58, %v937_v59  ;;  %v726_v58 = vld [vmem:[%s10487_s5 + $0x150] sm:$0xff] }
 0x1e5   :  { %v904_v17 = vld [vmem:[%s10487_s5 + $0x6e0] sm:$0xff]  ;;  %v730_v59 = vld [vmem:[%s10487_s5 + $0x170] sm:$0xff] }
 0x1e6   :  { %v6436_v30 = vcombine.low %v900_v16, %v904_v17 }
 0x1e7   :  { %2310 = vmatpush1.bf16.msra.mxu1 %v6372_v24  ;;  %2392 = vmatpush1.bf16.msra.mxu0 %v6374_v25  ;;  %v6437_v24 = vcombine.high %v900_v16, %v904_v17  ;;  %v6439_v25 = vcombine.high %v901_v20, %v905_v21  ;;  %v694_v17 = vld [vmem:[%s10487_s5 + $0x50] sm:$0xff]  ;;  %v695_v21 = vld [vmem:[%s10487_s5 + $0x58] sm:$0xff] }
 0x1e8   :  { %2311 = vmatprep.subr.bf16.mxu1 %v6381_v26  ;;  %2393 = vmatprep.subr.bf16.mxu0 %v6383_v27  ;;  %v908_v26 = vld [vmem:[%s10487_s5 + $0x700] sm:$0xff]  ;;  %v698_v20 = vld [vmem:[%s10487_s5 + $0x70] sm:$0xff] }
 0x1e9   :  { %v912_v27 = vld [vmem:[%s10487_s5 + $0x720] sm:$0xff] }
 0x1ea   :  { %v6444_v39 = vcombine.low %v908_v26, %v912_v27 }
 0x1eb   :  { %2312 = vmatpush1.bf16.msra.mxu1 %v6380_v32  ;;  %2394 = vmatpush1.bf16.msra.mxu0 %v6382_v33  ;;  %v6445_v32 = vcombine.high %v908_v26, %v912_v27  ;;  %v6447_v33 = vcombine.high %v909_v28, %v913_v29  ;;  %v6233_v27 = vcombine.high %v694_v17, %v698_v20  ;;  %v702_v29 = vld [vmem:[%s10487_s5 + $0x90] sm:$0xff] }
 0x1ec   :  { %2313 = vmatprep.subr.bf16.mxu1 %v6389_v34  ;;  %2395 = vmatprep.subr.bf16.mxu0 %v6391_v36  ;;  %v916_v34 = vld [vmem:[%s10487_s5 + $0x740] sm:$0xff] }
 0x1ed   :  { %v920_v36 = vld [vmem:[%s10487_s5 + $0x760] sm:$0xff] }
 0x1ee   :  { %v6452_v51 = vcombine.low %v916_v34, %v920_v36 }
 0x1ef   :  { %2314 = vmatpush1.bf16.msra.mxu1 %v6388_v42  ;;  %2396 = vmatpush1.bf16.msra.mxu0 %v6390_v44  ;;  %v6453_v42 = vcombine.high %v916_v34, %v920_v36  ;;  %v6455_v44 = vcombine.high %v917_v37, %v921_v38 }
 0x1f0   :  { %2315 = vmatprep.subr.bf16.mxu1 %v6397_v45  ;;  %2397 = vmatprep.subr.bf16.mxu0 %v6399_v46  ;;  %v924_v45 = vld [vmem:[%s10487_s5 + $0x780] sm:$0xff] }
 0x1f1   :  { %v928_v46 = vld [vmem:[%s10487_s5 + $0x7a0] sm:$0xff] }
 0x1f3   :  { %2316 = vmatpush1.bf16.msra.mxu1 %v6396_v52  ;;  %2398 = vmatpush1.bf16.msra.mxu0 %v6398_v53  ;;  %v6454_v52 = vcombine.low %v917_v37, %v921_v38  ;;  %v8605_v53 = vsub.s32 3, %v8152_v35  ;;  %v710_v38 = vld [vmem:[%s10487_s5 + $0xd0] sm:$0xff] }
 0x1f4   :  { %2317 = vmatprep.subr.bf16.mxu1 %v6405_v54  ;;  %2399 = vmatprep.subr.bf16.mxu0 %v6407_v55  ;;  %v6461_v54 = vcombine.high %v924_v45, %v928_v46  ;;  %v6463_v55 = vcombine.high %v925_v47, %v929_v48 }
 0x1f7   :  { %2318 = vmatpush1.bf16.msra.mxu1 %v6404_v60  ;;  %2400 = vmatpush1.bf16.msra.mxu0 %v6406_v61  ;;  %v265_v60 = vrot.slane %v8413_v49, %v8602_v50  ;;  %v269_v61 = vrot.slane %v8413_v49, %v8605_v53  ;;  %v691_v49 = vld [vmem:[%s10487_s5 + $0x38] sm:$0xff] }
 0x1f8   :  { %2319 = vmatprep.subr.bf16.mxu1 %v6413_v62  ;;  %2401 = vmatprep.subr.bf16.mxu0 %v6415_v63  ;;  %v6460_v62 = vcombine.low %v924_v45, %v928_v46  ;;  %v6462_v63 = vcombine.low %v925_v47, %v929_v48  ;;  %v718_v47 = vld [vmem:[%s10487_s5 + $0x110] sm:$0xff] }
 0x1f9   :  { %v722_v48 = vld [vmem:[%s10487_s5 + $0x130] sm:$0xff] }
 0x1fa   :  { %v6257_v56 = vcombine.high %v718_v47, %v722_v48 }
 0x1fb   :  { %2320 = vmatpush1.bf16.msra.mxu1 %v6412_v6  ;;  %2402 = vmatpush1.bf16.msra.mxu0 %v6414_v7  ;;  %v690_v6 = vld [vmem:[%s10487_s5 + $0x30] sm:$0xff]  ;;  %v687_v7 = vld [vmem:[%s10487_s5 + $0x18] sm:$0xff] }
 0x1fc   :  { %2321 = vmatprep.subr.bf16.mxu1 %v6421_v11  ;;  %2403 = vmatprep.subr.bf16.mxu0 %v6423_v12  ;;  %v6226_v26 = vcombine.low %v687_v7, %v691_v49 }
 0x1ff   :  { %2322 = vmatpush1.bf16.msra.mxu1 %v6420_v8  ;;  %2404 = vmatpush1.bf16.msra.mxu0 %v6422_v9 }
 0x200   :  { %2323 = vmatprep.subr.bf16.mxu1 %v6429_v10  ;;  %2405 = vmatprep.subr.bf16.mxu0 %v6431_v13  ;;  %v6225_v10 = vcombine.high %v686_v4, %v690_v6  ;;  %v6227_v13 = vcombine.high %v687_v7, %v691_v49  ;;  %v739_v7 = vld [vmem:[%s10487_s5 + $0x1b8] sm:$0xff]  ;;  %v6264_v49 = vcombine.low %v726_v58, %v730_v59 }
 0x203   :  { %2324 = vmatpush1.bf16.msra.mxu1 %v6428_v22  ;;  %2406 = vmatpush1.bf16.msra.mxu0 %v6430_v23  ;;  %v699_v22 = vld [vmem:[%s10487_s5 + $0x78] sm:$0xff] }
 0x204   :  { %2325 = vmatprep.subr.bf16.mxu1 %v6437_v24  ;;  %2407 = vmatprep.subr.bf16.mxu0 %v6439_v25  ;;  %v6224_v24 = vcombine.low %v686_v4, %v690_v6  ;;  %v6235_v28 = vcombine.high %v695_v21, %v699_v22  ;;  %v6234_v34 = vcombine.low %v695_v21, %v699_v22  ;;  %v734_v4 = vld [vmem:[%s10487_s5 + $0x190] sm:$0xff]  ;;  %v735_v6 = vld [vmem:[%s10487_s5 + $0x198] sm:$0xff] }
 0x205   :  { %v751_v21 = vld [vmem:[%s10487_s5 + $0x218] sm:$0xff] }
 0x206   :  { %v755_v22 = vld [vmem:[%s10487_s5 + $0x238] sm:$0xff] }
 0x207   :  { %2326 = vmatpush1.bf16.msra.mxu1 %v6436_v30  ;;  %2408 = vmatpush1.bf16.msra.mxu0 %v6438_v31  ;;  %v706_v30 = vld [vmem:[%s10487_s5 + $0xb0] sm:$0xff]  ;;  %v703_v31 = vld [vmem:[%s10487_s5 + $0x98] sm:$0xff] }
 0x208   :  { %2327 = vmatprep.subr.bf16.mxu1 %v6445_v32  ;;  %2409 = vmatprep.subr.bf16.mxu0 %v6447_v33  ;;  %v707_v32 = vld [vmem:[%s10487_s5 + $0xb8] sm:$0xff]  ;;  %v6232_v33 = vcombine.low %v694_v17, %v698_v20  ;;  %v6241_v36 = vcombine.high %v702_v29, %v706_v30  ;;  %v750_v17 = vld [vmem:[%s10487_s5 + $0x210] sm:$0xff] }
 0x209   :  { %v6243_v37 = vcombine.high %v703_v31, %v707_v32  ;;  %v754_v20 = vld [vmem:[%s10487_s5 + $0x230] sm:$0xff] }
 0x20b   :  { %2328 = vmatpush1.bf16.msra.mxu1 %v6444_v39  ;;  %2410 = vmatpush1.bf16.msra.mxu0 %v6446_v41  ;;  %v714_v39 = vld [vmem:[%s10487_s5 + $0xf0] sm:$0xff]  ;;  %v711_v41 = vld [vmem:[%s10487_s5 + $0xd8] sm:$0xff] }
 0x20c   :  { %2329 = vmatprep.subr.bf16.mxu1 %v6453_v42  ;;  %2411 = vmatprep.subr.bf16.mxu0 %v6455_v44  ;;  %v6240_v42 = vcombine.low %v702_v29, %v706_v30  ;;  %v6242_v44 = vcombine.low %v703_v31, %v707_v32  ;;  %v6249_v45 = vcombine.high %v710_v38, %v714_v39  ;;  %v758_v29 = vld [vmem:[%s10487_s5 + $0x250] sm:$0xff]  ;;  %v759_v31 = vld [vmem:[%s10487_s5 + $0x258] sm:$0xff] }
 0x20d   :  { %v762_v30 = vld [vmem:[%s10487_s5 + $0x270] sm:$0xff]  ;;  %v763_v32 = vld [vmem:[%s10487_s5 + $0x278] sm:$0xff] }
 0x20f   :  { %2330 = vmatpush1.bf16.msra.mxu1 %v6452_v51  ;;  %2412 = vmatpush1.bf16.msra.mxu0 %v6454_v52  ;;  %v719_v51 = vld [vmem:[%s10487_s5 + $0x118] sm:$0xff] }
 0x210   :  { %2331 = vmatprep.subr.bf16.mxu1 %v6461_v54  ;;  %2413 = vmatprep.subr.bf16.mxu0 %v6463_v55  ;;  %v723_v52 = vld [vmem:[%s10487_s5 + $0x138] sm:$0xff]  ;;  %v6248_v54 = vcombine.low %v710_v38, %v714_v39  ;;  %v766_v38 = vld [vmem:[%s10487_s5 + $0x290] sm:$0xff] }
 0x211   :  { %v669_v5 = vpop.f32.mrb[8].mxu0  ;;  %v6259_v57 = vcombine.high %v719_v51, %v723_v52  ;;  %v770_v39 = vld [vmem:[%s10487_s5 + $0x2b0] sm:$0xff] }
 0x212   :  { %v670_v11 = vadd.f32 %v669_v5, %v265_v60  ;;  %v671_v12 = vpop.f32.mrb[9].mxu0  ;;  %v727_v60 = vld [vmem:[%s10487_s5 + $0x158] sm:$0xff]  ;;  %v738_v5 = vld [vmem:[%s10487_s5 + $0x1b0] sm:$0xff] }
 0x213   :  { %v672_v14 = vadd.f32 %v671_v12, %v269_v61  ;;  %v673_v15 = vpop.f32.mrb[10].mxu0  ;;  %2332 = vmatpush1.bf16.msra.mxu1 %v6460_v62  ;;  %2414 = vmatpush1.bf16.msra.mxu0 %v6462_v63  ;;  %v731_v61 = vld [vmem:[%s10487_s5 + $0x178] sm:$0xff]  ;;  %v6256_v62 = vcombine.low %v718_v47, %v722_v48  ;;  %v6258_v63 = vcombine.low %v719_v51, %v723_v52  ;;  %v774_v47 = vld [vmem:[%s10487_s5 + $0x2d0] sm:$0xff] }
 0x214   :  { %v678_v8 = vmax.f32 %v670_v11, 0.0  ;;  %v674_v9 = vpop.f32.mrb[11].mxu0  ;;  %2333 = vmatprep.subr.bf16.mxu1 %v6469_v2  ;;  %2415 = vmatprep.subr.bf16.mxu0 %v6471_v3  ;;  %v6265_v2 = vcombine.high %v726_v58, %v730_v59  ;;  %v6267_v3 = vcombine.high %v727_v60, %v731_v61  ;;  %v6266_v11 = vcombine.low %v727_v60, %v731_v61  ;;  %v742_v15 = vld [vmem:[%s10487_s5 + $0x1d0] sm:$0xff]  ;;  %v775_v51 = vld [vmem:[%s10487_s5 + $0x2d8] sm:$0xff] }
 0x215   :  { %v679_v16 = vmax.f32 %v672_v14, 0.0  ;;  %v6273_v12 = vcombine.high %v734_v4, %v738_v5  ;;  %v6275_v14 = vcombine.high %v735_v6, %v739_v7  ;;  %v6272_v9 = vcombine.low %v734_v4, %v738_v5  ;;  %v778_v48 = vld [vmem:[%s10487_s5 + $0x2f0] sm:$0xff]  ;;  %v779_v52 = vld [vmem:[%s10487_s5 + $0x2f8] sm:$0xff] }
 0x216   :  { %v8649_v25 = vpack.c.bf16 %v678_v8, %v678_v8  ;;  %v747_v8 = vld [vmem:[%s10487_s5 + $0x1f8] sm:$0xff]  ;;  %v782_v58 = vld [vmem:[%s10487_s5 + $0x310] sm:$0xff] }
 0x217   :  { %v8647_v23 = vpack.c.bf16 %v679_v16, %v679_v16  ;;  %2334 = vmatpush1.bf16.msra.mxu1 %v6468_v18  ;;  %2416 = vmatpush1.bf16.msra.mxu0 %v6470_v19  ;;  %v746_v18 = vld [vmem:[%s10487_s5 + $0x1f0] sm:$0xff]  ;;  %v743_v19 = vld [vmem:[%s10487_s5 + $0x1d8] sm:$0xff] }
 0x218   :  { %2426 = vmatprep.subr.bf16.mxu1 %v6225_v10  ;;  %2508 = vmatprep.subr.bf16.mxu0 %v6227_v13  ;;  %v6274_v10 = vcombine.low %v735_v6, %v739_v7  ;;  %v6281_v13 = vcombine.high %v742_v15, %v746_v18  ;;  %v6283_v16 = vcombine.high %v743_v19, %v747_v8  ;;  %v786_v59 = vld [vmem:[%s10487_s5 + $0x330] sm:$0xff]  ;;  %v783_v60 = vld [vmem:[%s10487_s5 + $0x318] sm:$0xff] }
 0x219   :  { %2335 = vmatprep.mubr.bf16.mxu1 %v8647_v23  ;;  %2417 = vmatprep.mubr.bf16.mxu0 %v8647_v23  ;;  %v787_v61 = vld [vmem:[%s10487_s5 + $0x338] sm:$0xff]  ;;  %v790_v4 = vld [vmem:[%s10487_s5 + $0x350] sm:$0xff] }
 0x21a   :  { %2336 = vmatmul.mubr.bf16.vlgmr.msra.gmra.mrb[0].mxu1 %v8649_v25  ;;  %2418 = vmatmul.mubr.bf16.vlgmr.msra.gmra.mrb[12].mxu0 %v8649_v25  ;;  %v794_v5 = vld [vmem:[%s10487_s5 + $0x370] sm:$0xff]  ;;  %v791_v6 = vld [vmem:[%s10487_s5 + $0x358] sm:$0xff] }
 0x21b   :  { %2427 = vmatpush1.bf16.msra.mxu1 %v6224_v24  ;;  %2458 = vmatprep.mubr.bf16.mxu1 %v8431_v0  ;;  %v6280_v24 = vcombine.low %v742_v15, %v746_v18  ;;  %v795_v7 = vld [vmem:[%s10487_s5 + $0x378] sm:$0xff]  ;;  %v798_v15 = vld [vmem:[%s10487_s5 + $0x390] sm:$0xff] }
 0x21c   :  { %2509 = vmatpush1.bf16.msra.mxu0 %v6226_v26  ;;  %2540 = vmatprep.mubr.bf16.mxu0 %v8431_v0  ;;  %v715_v0 = vld [vmem:[%s10487_s5 + $0xf8] sm:$0xff]  ;;  %v6282_v26 = vcombine.low %v743_v19, %v747_v8  ;;  %v802_v18 = vld [vmem:[%s10487_s5 + $0x3b0] sm:$0xff] }
 0x21d   :  { %2428 = vmatprep.subr.bf16.mxu1 %v6233_v27  ;;  %2510 = vmatprep.subr.bf16.mxu0 %v6235_v28  ;;  %v6251_v46 = vcombine.high %v711_v41, %v715_v0  ;;  %v6250_v55 = vcombine.low %v711_v41, %v715_v0  ;;  %v6289_v27 = vcombine.high %v750_v17, %v754_v20  ;;  %v767_v41 = vld [vmem:[%s10487_s5 + $0x298] sm:$0xff] }
 0x21e   :  { %v6291_v28 = vcombine.high %v751_v21, %v755_v22  ;;  %v771_v0 = vld [vmem:[%s10487_s5 + $0x2b8] sm:$0xff] }
 0x21f   :  { %2429 = vmatpush1.bf16.msra.mxu1 %v6232_v33  ;;  %v6288_v33 = vcombine.low %v750_v17, %v754_v20  ;;  %v799_v19 = vld [vmem:[%s10487_s5 + $0x398] sm:$0xff]  ;;  %v806_v17 = vld [vmem:[%s10487_s5 + $0x3d0] sm:$0xff] }
 0x220   :  { %2511 = vmatpush1.bf16.msra.mxu0 %v6234_v34  ;;  %2430 = vmatprep.subr.bf16.mxu1 %v6241_v36  ;;  %v6290_v34 = vcombine.low %v751_v21, %v755_v22  ;;  %v6297_v36 = vcombine.high %v758_v29, %v762_v30  ;;  %v803_v8 = vld [vmem:[%s10487_s5 + $0x3b8] sm:$0xff]  ;;  %v810_v20 = vld [vmem:[%s10487_s5 + $0x3f0] sm:$0xff] }
 0x221   :  { %2512 = vmatprep.subr.bf16.mxu0 %v6243_v37  ;;  %v6299_v37 = vcombine.high %v759_v31, %v763_v32  ;;  %v807_v21 = vld [vmem:[%s10487_s5 + $0x3d8] sm:$0xff] }
 0x222   :  { %v811_v22 = vld [vmem:[%s10487_s5 + $0x3f8] sm:$0xff] }
 0x223   :  { %2431 = vmatpush1.bf16.msra.mxu1 %v6240_v42  ;;  %v6296_v42 = vcombine.low %v758_v29, %v762_v30  ;;  %v814_v29 = vld [vmem:[%s10487_s5 + $0x410] sm:$0xff] }
 0x224   :  { %2513 = vmatpush1.bf16.msra.mxu0 %v6242_v44  ;;  %2432 = vmatprep.subr.bf16.mxu1 %v6249_v45  ;;  %v6298_v44 = vcombine.low %v759_v31, %v763_v32  ;;  %v6305_v45 = vcombine.high %v766_v38, %v770_v39  ;;  %v818_v30 = vld [vmem:[%s10487_s5 + $0x430] sm:$0xff]  ;;  %v815_v31 = vld [vmem:[%s10487_s5 + $0x418] sm:$0xff] }
 0x225   :  { %2514 = vmatprep.subr.bf16.mxu0 %v6251_v46  ;;  %v6307_v46 = vcombine.high %v767_v41, %v771_v0  ;;  %v819_v32 = vld [vmem:[%s10487_s5 + $0x438] sm:$0xff] }
 0x227   :  { %2433 = vmatpush1.bf16.msra.mxu1 %v6248_v54  ;;  %v6304_v54 = vcombine.low %v766_v38, %v770_v39  ;;  %v822_v38 = vld [vmem:[%s10487_s5 + $0x450] sm:$0xff] }
 0x228   :  { %2515 = vmatpush1.bf16.msra.mxu0 %v6250_v55  ;;  %2434 = vmatprep.subr.bf16.mxu1 %v6257_v56  ;;  %v6306_v55 = vcombine.low %v767_v41, %v771_v0  ;;  %v6313_v56 = vcombine.high %v774_v47, %v778_v48  ;;  %v826_v39 = vld [vmem:[%s10487_s5 + $0x470] sm:$0xff]  ;;  %v6352_v41 = vcombine.low %v814_v29, %v818_v30  ;;  %v823_v0 = vld [vmem:[%s10487_s5 + $0x458] sm:$0xff] }
 0x229   :  { %2516 = vmatprep.subr.bf16.mxu0 %v6259_v57  ;;  %v6315_v57 = vcombine.high %v775_v51, %v779_v52 }
 0x22b   :  { %2435 = vmatpush1.bf16.msra.mxu1 %v6256_v62  ;;  %v6312_v62 = vcombine.low %v774_v47, %v778_v48  ;;  %v834_v47 = vld [vmem:[%s10487_s5 + $0x4b0] sm:$0xff] }
 0x22c   :  { %2517 = vmatpush1.bf16.msra.mxu0 %v6258_v63  ;;  %2436 = vmatprep.subr.bf16.mxu1 %v6265_v2  ;;  %v6314_v63 = vcombine.low %v775_v51, %v779_v52  ;;  %v6321_v2 = vcombine.high %v782_v58, %v786_v59  ;;  %v831_v51 = vld [vmem:[%s10487_s5 + $0x498] sm:$0xff] }
 0x22d   :  { %2518 = vmatprep.subr.bf16.mxu0 %v6267_v3  ;;  %v6323_v3 = vcombine.high %v783_v60, %v787_v61  ;;  %v835_v52 = vld [vmem:[%s10487_s5 + $0x4b8] sm:$0xff] }
 0x22f   :  { %2437 = vmatpush1.bf16.msra.mxu1 %v6264_v49  ;;  %v6320_v49 = vcombine.low %v782_v58, %v786_v59  ;;  %v838_v58 = vld [vmem:[%s10487_s5 + $0x4d0] sm:$0xff] }
 0x230   :  { %2519 = vmatpush1.bf16.msra.mxu0 %v6266_v11  ;;  %2438 = vmatprep.subr.bf16.mxu1 %v6273_v12  ;;  %v6322_v11 = vcombine.low %v783_v60, %v787_v61  ;;  %v6329_v12 = vcombine.high %v790_v4, %v794_v5  ;;  %v842_v59 = vld [vmem:[%s10487_s5 + $0x4f0] sm:$0xff]  ;;  %v843_v60 = vld [vmem:[%s10487_s5 + $0x4f8] sm:$0xff]  ;;  %v6370_v61 = vcombine.low %v831_v51, %v835_v52 }
 0x231   :  { %2520 = vmatprep.subr.bf16.mxu0 %v6275_v14  ;;  %v6331_v14 = vcombine.high %v791_v6, %v795_v7 }
 0x233   :  { %2439 = vmatpush1.bf16.msra.mxu1 %v6272_v9  ;;  %v6328_v9 = vcombine.low %v790_v4, %v794_v5  ;;  %v847_v4 = vld [vmem:[%s10487_s5 + $0x518] sm:$0xff] }
 0x234   :  { %2521 = vmatpush1.bf16.msra.mxu0 %v6274_v10  ;;  %2440 = vmatprep.subr.bf16.mxu1 %v6281_v13  ;;  %v6330_v10 = vcombine.low %v791_v6, %v795_v7  ;;  %v6337_v13 = vcombine.high %v798_v15, %v802_v18  ;;  %v851_v5 = vld [vmem:[%s10487_s5 + $0x538] sm:$0xff]  ;;  %v6376_v6 = vcombine.low %v838_v58, %v842_v59 }
 0x235   :  { %2522 = vmatprep.subr.bf16.mxu0 %v6283_v16  ;;  %v6339_v16 = vcombine.high %v799_v19, %v803_v8 }
 0x237   :  { %2441 = vmatpush1.bf16.msra.mxu1 %v6280_v24  ;;  %v6336_v24 = vcombine.low %v798_v15, %v802_v18  ;;  %v855_v15 = vld [vmem:[%s10487_s5 + $0x558] sm:$0xff] }
 0x238   :  { %2523 = vmatpush1.bf16.msra.mxu0 %v6282_v26  ;;  %2442 = vmatprep.subr.bf16.mxu1 %v6289_v27  ;;  %v6338_v26 = vcombine.low %v799_v19, %v803_v8  ;;  %v6345_v27 = vcombine.high %v806_v17, %v810_v20  ;;  %v859_v18 = vld [vmem:[%s10487_s5 + $0x578] sm:$0xff]  ;;  %v6386_v8 = vcombine.low %v847_v4, %v851_v5 }
 0x239   :  { %2524 = vmatprep.subr.bf16.mxu0 %v6291_v28  ;;  %v6347_v28 = vcombine.high %v807_v21, %v811_v22 }
 0x23b   :  { %2443 = vmatpush1.bf16.msra.mxu1 %v6288_v33  ;;  %v6344_v33 = vcombine.low %v806_v17, %v810_v20  ;;  %v863_v17 = vld [vmem:[%s10487_s5 + $0x598] sm:$0xff] }
 0x23c   :  { %2525 = vmatpush1.bf16.msra.mxu0 %v6290_v34  ;;  %2444 = vmatprep.subr.bf16.mxu1 %v6297_v36  ;;  %v6346_v34 = vcombine.low %v807_v21, %v811_v22  ;;  %v6353_v36 = vcombine.high %v814_v29, %v818_v30  ;;  %v867_v20 = vld [vmem:[%s10487_s5 + $0x5b8] sm:$0xff]  ;;  %v6394_v22 = vcombine.low %v855_v15, %v859_v18 }
 0x23d   :  { %2526 = vmatprep.subr.bf16.mxu0 %v6299_v37  ;;  %v6355_v37 = vcombine.high %v815_v31, %v819_v32  ;;  %v871_v29 = vld [vmem:[%s10487_s5 + $0x5d8] sm:$0xff] }
 0x23e   :  { %v875_v30 = vld [vmem:[%s10487_s5 + $0x5f8] sm:$0xff] }
 0x23f   :  { %2445 = vmatpush1.bf16.msra.mxu1 %v6296_v42  ;;  %v827_v42 = vld [vmem:[%s10487_s5 + $0x478] sm:$0xff] }
 0x240   :  { %2527 = vmatpush1.bf16.msra.mxu0 %v6298_v44  ;;  %2446 = vmatprep.subr.bf16.mxu1 %v6305_v45  ;;  %v6354_v44 = vcombine.low %v815_v31, %v819_v32  ;;  %v6361_v45 = vcombine.high %v822_v38, %v826_v39  ;;  %v6363_v48 = vcombine.high %v823_v0, %v827_v42 }
 0x241   :  { %2528 = vmatprep.subr.bf16.mxu0 %v6307_v46  ;;  %v830_v46 = vld [vmem:[%s10487_s5 + $0x490] sm:$0xff]  ;;  %v6402_v32 = vcombine.low %v863_v17, %v867_v20 }
 0x243   :  { %2447 = vmatpush1.bf16.msra.mxu1 %v6304_v54  ;;  %v6360_v54 = vcombine.low %v822_v38, %v826_v39  ;;  %v879_v38 = vld [vmem:[%s10487_s5 + $0x618] sm:$0xff] }
 0x244   :  { %2529 = vmatpush1.bf16.msra.mxu0 %v6306_v55  ;;  %2448 = vmatprep.subr.bf16.mxu1 %v6313_v56  ;;  %v6362_v55 = vcombine.low %v823_v0, %v827_v42  ;;  %v6369_v56 = vcombine.high %v830_v46, %v834_v47  ;;  %v883_v39 = vld [vmem:[%s10487_s5 + $0x638] sm:$0xff]  ;;  %v6410_v0 = vcombine.low %v871_v29, %v875_v30 }
 0x245   :  { %2530 = vmatprep.subr.bf16.mxu0 %v6315_v57  ;;  %v6371_v57 = vcombine.high %v831_v51, %v835_v52  ;;  %v6418_v52 = vcombine.low %v879_v38, %v883_v39 }
 0x247   :  { %2449 = vmatpush1.bf16.msra.mxu1 %v6312_v62  ;;  %v6377_v62 = vcombine.high %v838_v58, %v842_v59  ;;  %v895_v58 = vld [vmem:[%s10487_s5 + $0x698] sm:$0xff] }
 0x248   :  { %2531 = vmatpush1.bf16.msra.mxu0 %v6314_v63  ;;  %2450 = vmatprep.subr.bf16.mxu1 %v6321_v2  ;;  %v846_v2 = vld [vmem:[%s10487_s5 + $0x510] sm:$0xff]  ;;  %v899_v59 = vld [vmem:[%s10487_s5 + $0x6b8] sm:$0xff] }
 0x249   :  { %2532 = vmatprep.subr.bf16.mxu0 %v6323_v3  ;;  %v850_v3 = vld [vmem:[%s10487_s5 + $0x530] sm:$0xff] }
 0x24a   :  { %v6384_v19 = vcombine.low %v846_v2, %v850_v3 }
 0x24b   :  { %2451 = vmatpush1.bf16.msra.mxu1 %v6320_v49  ;;  %v6385_v49 = vcombine.high %v846_v2, %v850_v3  ;;  %v903_v2 = vld [vmem:[%s10487_s5 + $0x6d8] sm:$0xff] }
 0x24c   :  { %2533 = vmatpush1.bf16.msra.mxu0 %v6322_v11  ;;  %2452 = vmatprep.subr.bf16.mxu1 %v6329_v12  ;;  %v6387_v11 = vcombine.high %v847_v4, %v851_v5  ;;  %v854_v12 = vld [vmem:[%s10487_s5 + $0x550] sm:$0xff]  ;;  %v907_v3 = vld [vmem:[%s10487_s5 + $0x6f8] sm:$0xff]  ;;  %v6434_v5 = vcombine.low %v895_v58, %v899_v59 }
 0x24d   :  { %2534 = vmatprep.subr.bf16.mxu0 %v6331_v14  ;;  %v858_v14 = vld [vmem:[%s10487_s5 + $0x570] sm:$0xff] }
 0x24e   :  { %v6392_v21 = vcombine.low %v854_v12, %v858_v14 }
 0x24f   :  { %2453 = vmatpush1.bf16.msra.mxu1 %v6328_v9  ;;  %v6393_v9 = vcombine.high %v854_v12, %v858_v14  ;;  %v911_v12 = vld [vmem:[%s10487_s5 + $0x718] sm:$0xff] }
 0x250   :  { %2535 = vmatpush1.bf16.msra.mxu0 %v6330_v10  ;;  %2454 = vmatprep.subr.bf16.mxu1 %v6337_v13  ;;  %v6395_v10 = vcombine.high %v855_v15, %v859_v18  ;;  %v862_v13 = vld [vmem:[%s10487_s5 + $0x590] sm:$0xff]  ;;  %v915_v14 = vld [vmem:[%s10487_s5 + $0x738] sm:$0xff]  ;;  %v6442_v18 = vcombine.low %v903_v2, %v907_v3 }
 0x251   :  { %2536 = vmatprep.subr.bf16.mxu0 %v6339_v16  ;;  %v866_v16 = vld [vmem:[%s10487_s5 + $0x5b0] sm:$0xff] }
 0x252   :  { %v6400_v31 = vcombine.low %v862_v13, %v866_v16 }
 0x253   :  { %2455 = vmatpush1.bf16.msra.mxu1 %v6336_v24  ;;  %v6401_v24 = vcombine.high %v862_v13, %v866_v16  ;;  %v919_v13 = vld [vmem:[%s10487_s5 + $0x758] sm:$0xff] }
 0x254   :  { %2537 = vmatpush1.bf16.msra.mxu0 %v6338_v26  ;;  %2456 = vmatprep.subr.bf16.mxu1 %v6345_v27  ;;  %v6403_v26 = vcombine.high %v863_v17, %v867_v20  ;;  %v870_v27 = vld [vmem:[%s10487_s5 + $0x5d0] sm:$0xff]  ;;  %v923_v16 = vld [vmem:[%s10487_s5 + $0x778] sm:$0xff]  ;;  %v6450_v20 = vcombine.low %v911_v12, %v915_v14 }
 0x255   :  { %2538 = vmatprep.subr.bf16.mxu0 %v6347_v28  ;;  %v874_v28 = vld [vmem:[%s10487_s5 + $0x5f0] sm:$0xff] }
 0x257   :  { %2457 = vmatpush1.bf16.msra.mxu1 %v6344_v33  ;;  %v6409_v33 = vcombine.high %v870_v27, %v874_v28 }
 0x258   :  { %2539 = vmatpush1.bf16.msra.mxu0 %v6346_v34  ;;  %2467 = vmatprep.subr.bf16.mxu1 %v6353_v36  ;;  %v6411_v34 = vcombine.high %v871_v29, %v875_v30  ;;  %v878_v36 = vld [vmem:[%s10487_s5 + $0x610] sm:$0xff]  ;;  %v6458_v30 = vcombine.low %v919_v13, %v923_v16 }
 0x259   :  { %2549 = vmatprep.subr.bf16.mxu0 %v6355_v37  ;;  %v882_v37 = vld [vmem:[%s10487_s5 + $0x630] sm:$0xff] }
 0x25a   :  { %2459 = vmatmul.mubr.bf16.vlgmr.msra.gmra.mrb[4].mxu1 %v8433_v1  ;;  %v6417_v42 = vcombine.high %v878_v36, %v882_v37  ;;  %v6416_v51 = vcombine.low %v878_v36, %v882_v37  ;;  %v935_v36 = vld [vmem:[%s10487_s5 + $0x7d8] sm:$0xff] }
 0x25b   :  { %2541 = vmatmul.mubr.bf16.vlgmr.msra.gmra.mrb[16].mxu0 %v8433_v1  ;;  %2468 = vmatpush1.bf16.msra.mxu1 %v6352_v41  ;;  %v839_v1 = vld [vmem:[%s10487_s5 + $0x4d8] sm:$0xff]  ;;  %v6408_v41 = vcombine.low %v870_v27, %v874_v28 }
 0x25c   :  { %2499 = vmatprep.mubr.bf16.mxu1 %v8647_v23  ;;  %2550 = vmatpush1.bf16.msra.mxu0 %v6354_v44  ;;  %v6379_v63 = vcombine.high %v839_v1, %v843_v60  ;;  %v6378_v7 = vcombine.low %v839_v1, %v843_v60  ;;  %v6419_v44 = vcombine.high %v879_v38, %v883_v39  ;;  %v927_v27 = vld [vmem:[%s10487_s5 + $0x798] sm:$0xff] }
 0x25d   :  { %2581 = vmatprep.mubr.bf16.mxu0 %v8647_v23  ;;  %2469 = vmatprep.subr.bf16.mxu1 %v6361_v45  ;;  %v6368_v23 = vcombine.low %v830_v46, %v834_v47  ;;  %v886_v45 = vld [vmem:[%s10487_s5 + $0x650] sm:$0xff]  ;;  %v887_v47 = vld [vmem:[%s10487_s5 + $0x658] sm:$0xff] }
 0x25e   :  { %2551 = vmatprep.subr.bf16.mxu0 %v6363_v48  ;;  %v890_v46 = vld [vmem:[%s10487_s5 + $0x670] sm:$0xff]  ;;  %v891_v48 = vld [vmem:[%s10487_s5 + $0x678] sm:$0xff] }
 0x25f   :  { %2470 = vmatpush1.bf16.msra.mxu1 %v6360_v54  ;;  %v6425_v54 = vcombine.high %v886_v45, %v890_v46  ;;  %v6424_v1 = vcombine.low %v886_v45, %v890_v46  ;;  %v6426_v60 = vcombine.low %v887_v47, %v891_v48  ;;  %v931_v28 = vld [vmem:[%s10487_s5 + $0x7b8] sm:$0xff]  ;;  %v7202_v45 = vld [vmem:[%s10489_s7 + $0x4] ss:$28 sps:$4 sm:$0xff]   ;;  %v7205_v46 = vld [vmem:[%s10489_s7 + $0xc] ss:$28 sps:$4 sm:$0xff]  }
 0x260   :  { %2552 = vmatpush1.bf16.msra.mxu0 %v6362_v55  ;;  %2471 = vmatprep.subr.bf16.mxu1 %v6369_v56  ;;  %v6427_v55 = vcombine.high %v887_v47, %v891_v48  ;;  %v894_v56 = vld [vmem:[%s10487_s5 + $0x690] sm:$0xff]  ;;  %v939_v37 = vld [vmem:[%s10487_s5 + $0x7f8] sm:$0xff]  ;;  %v6466_v39 = vcombine.low %v927_v27, %v931_v28  ;;  %v7203_v48 = vld [vmem:[%s10489_s7 + $0x8] ss:$28 sps:$4 sm:$0xff]  }
 0x261   :  { %2553 = vmatprep.subr.bf16.mxu0 %v6371_v57  ;;  %v898_v57 = vld [vmem:[%s10487_s5 + $0x6b0] sm:$0xff]  ;;  %v7200_v47 = vld [vmem:[%s10489_s7] ss:$28 sps:$4 sm:$0xff]  }
 0x262   :  { %v6432_v4 = vcombine.low %v894_v56, %v898_v57 }
 0x263   :  { %2472 = vmatpush1.bf16.msra.mxu1 %v6368_v23  ;;  %v6433_v23 = vcombine.high %v894_v56, %v898_v57  ;;  %v7214_v56 = vld [vmem:[%s10489_s7 + $0x74] ss:$28 sps:$4 sm:$0xff]  }
 0x264   :  { %2554 = vmatpush1.bf16.msra.mxu0 %v6370_v61  ;;  %2473 = vmatprep.subr.bf16.mxu1 %v6377_v62  ;;  %v6435_v61 = vcombine.high %v895_v58, %v899_v59  ;;  %v902_v62 = vld [vmem:[%s10487_s5 + $0x6d0] sm:$0xff]  ;;  %v7220_v59 = vld [vmem:[%s10489_s7 + $0xac] ss:$28 sps:$4 sm:$0xff]  }
 0x265   :  { %2555 = vmatprep.subr.bf16.mxu0 %v6379_v63  ;;  %v906_v63 = vld [vmem:[%s10487_s5 + $0x6f0] sm:$0xff] }
 0x266   :  { %v6440_v15 = vcombine.low %v902_v62, %v906_v63  ;;  %v7212_v57 = vld [vmem:[%s10489_s7 + $0x70] ss:$28 sps:$4 sm:$0xff]   ;;  %v7215_v58 = vld [vmem:[%s10489_s7 + $0x78] ss:$28 sps:$4 sm:$0xff]  }
 0x267   :  { %2474 = vmatpush1.bf16.msra.mxu1 %v6376_v6  ;;  %v6441_v6 = vcombine.high %v902_v62, %v906_v63  ;;  %v7229_v62 = vld [vmem:[%s10489_s7 + $0xec] ss:$28 sps:$4 sm:$0xff]   ;;  %v7224_v63 = vld [vmem:[%s10489_s7 + $0xe0] ss:$28 sps:$4 sm:$0xff]  }
 0x268   :  { %2556 = vmatpush1.bf16.msra.mxu0 %v6378_v7  ;;  %2475 = vmatprep.subr.bf16.mxu1 %v6385_v49  ;;  %v6443_v7 = vcombine.high %v903_v2, %v907_v3  ;;  %v910_v49 = vld [vmem:[%s10487_s5 + $0x710] sm:$0xff]  ;;  %v7227_v2 = vld [vmem:[%s10489_s7 + $0xe8] ss:$28 sps:$4 sm:$0xff]   ;;  %v7232_v3 = vld [vmem:[%s10489_s7 + $0x11c] ss:$28 sps:$4 sm:$0xff]  }
 0x269   :  { %2557 = vmatprep.subr.bf16.mxu0 %v6387_v11  ;;  %v914_v11 = vld [vmem:[%s10487_s5 + $0x730] sm:$0xff] }
 0x26a   :  { %v6448_v17 = vcombine.low %v910_v49, %v914_v11 }
 0x26b   :  { %2476 = vmatpush1.bf16.msra.mxu1 %v6384_v19  ;;  %v6449_v19 = vcombine.high %v910_v49, %v914_v11  ;;  %v7241_v49 = vld [vmem:[%s10489_s7 + $0x15c] ss:$28 sps:$4 sm:$0xff]   ;;  %v7236_v11 = vld [vmem:[%s10489_s7 + $0x150] ss:$28 sps:$4 sm:$0xff]  }
 0x26c   :  { %2558 = vmatpush1.bf16.msra.mxu0 %v6386_v8  ;;  %2477 = vmatprep.subr.bf16.mxu1 %v6393_v9  ;;  %v6451_v8 = vcombine.high %v911_v12, %v915_v14  ;;  %v918_v9 = vld [vmem:[%s10487_s5 + $0x750] sm:$0xff]  ;;  %v7244_v14 = vld [vmem:[%s10489_s7 + $0x18c] ss:$28 sps:$4 sm:$0xff]  }
 0x26d   :  { %2559 = vmatprep.subr.bf16.mxu0 %v6395_v10  ;;  %v922_v10 = vld [vmem:[%s10487_s5 + $0x770] sm:$0xff] }
 0x26e   :  { %v6456_v29 = vcombine.low %v918_v9, %v922_v10  ;;  %v7239_v12 = vld [vmem:[%s10489_s7 + $0x158] ss:$28 sps:$4 sm:$0xff]  }
 0x26f   :  { %2478 = vmatpush1.bf16.msra.mxu1 %v6392_v21  ;;  %v6457_v21 = vcombine.high %v918_v9, %v922_v10  ;;  %v7253_v9 = vld [vmem:[%s10489_s7 + $0x1cc] ss:$28 sps:$4 sm:$0xff]   ;;  %v7248_v10 = vld [vmem:[%s10489_s7 + $0x1c0] ss:$28 sps:$4 sm:$0xff]  }
 0x270   :  { %2560 = vmatpush1.bf16.msra.mxu0 %v6394_v22  ;;  %2479 = vmatprep.subr.bf16.mxu1 %v6401_v24  ;;  %v6459_v22 = vcombine.high %v919_v13, %v923_v16  ;;  %v926_v24 = vld [vmem:[%s10487_s5 + $0x790] sm:$0xff]  ;;  %v7251_v13 = vld [vmem:[%s10489_s7 + $0x1c8] ss:$28 sps:$4 sm:$0xff]   ;;  %v7256_v16 = vld [vmem:[%s10489_s7 + $0x1fc] ss:$28 sps:$4 sm:$0xff]  }
 0x271   :  { %2561 = vmatprep.subr.bf16.mxu0 %v6403_v26  ;;  %v930_v26 = vld [vmem:[%s10487_s5 + $0x7b0] sm:$0xff] }
 0x272   :  { %v6464_v38 = vcombine.low %v926_v24, %v930_v26 }
 0x273   :  { %2480 = vmatpush1.bf16.msra.mxu1 %v6400_v31  ;;  %v6465_v31 = vcombine.high %v926_v24, %v930_v26  ;;  %v7265_v24 = vld [vmem:[%s10489_s7 + $0x23c] ss:$28 sps:$4 sm:$0xff]   ;;  %v7260_v26 = vld [vmem:[%s10489_s7 + $0x230] ss:$28 sps:$4 sm:$0xff]  }
 0x274   :  { %2562 = vmatpush1.bf16.msra.mxu0 %v6402_v32  ;;  %2481 = vmatprep.subr.bf16.mxu1 %v6409_v33  ;;  %v6467_v32 = vcombine.high %v927_v27, %v931_v28  ;;  %v934_v33 = vld [vmem:[%s10487_s5 + $0x7d0] sm:$0xff]  ;;  %v7268_v28 = vld [vmem:[%s10489_s7 + $0x26c] ss:$28 sps:$4 sm:$0xff]  }
 0x275   :  { %2563 = vmatprep.subr.bf16.mxu0 %v6411_v34  ;;  %v938_v34 = vld [vmem:[%s10487_s5 + $0x7f0] sm:$0xff] }
 0x276   :  { %v7263_v27 = vld [vmem:[%s10489_s7 + $0x238] ss:$28 sps:$4 sm:$0xff]  }
 0x277   :  { %2482 = vmatpush1.bf16.msra.mxu1 %v6408_v41  ;;  %v6473_v41 = vcombine.high %v934_v33, %v938_v34 }
 0x278   :  { %2564 = vmatpush1.bf16.msra.mxu0 %v6410_v0  ;;  %2483 = vmatprep.subr.bf16.mxu1 %v6417_v42  ;;  %v6475_v0 = vcombine.high %v935_v36, %v939_v37  ;;  %v6472_v42 = vcombine.low %v934_v33, %v938_v34  ;;  %v7277_v33 = vld [vmem:[%s10489_s7 + $0x2ac] ss:$28 sps:$4 sm:$0xff]   ;;  %v7272_v34 = vld [vmem:[%s10489_s7 + $0x2a0] ss:$28 sps:$4 sm:$0xff]  }
 0x279   :  { %2565 = vmatprep.subr.bf16.mxu0 %v6419_v44  ;;  %v6474_v44 = vcombine.low %v935_v36, %v939_v37  ;;  %v7275_v36 = vld [vmem:[%s10489_s7 + $0x2a8] ss:$28 sps:$4 sm:$0xff]   ;;  %v7280_v37 = vld [vmem:[%s10489_s7 + $0x2dc] ss:$28 sps:$4 sm:$0xff]  }
 0x27b   :  { %2484 = vmatpush1.bf16.msra.mxu1 %v6416_v51  ;;  %v7208_v51 = vld [vmem:[%s10489_s7 + $0x3c] ss:$28 sps:$4 sm:$0xff]  }
 0x27c   :  { %2566 = vmatpush1.bf16.msra.mxu0 %v6418_v52  ;;  %2485 = vmatprep.subr.bf16.mxu1 %v6425_v54  ;;  %v7211_v52 = vld [vmem:[%s10489_s7 + $0x44] ss:$28 sps:$4 sm:$0xff]   ;;  %v7206_v54 = vld [vmem:[%s10489_s7 + $0x38] ss:$28 sps:$4 sm:$0xff]  }
 0x27d   :  { %2567 = vmatprep.subr.bf16.mxu0 %v6427_v55  ;;  %v7209_v55 = vld [vmem:[%s10489_s7 + $0x40] ss:$28 sps:$4 sm:$0xff]  }
 0x27f   :  { %2486 = vmatpush1.bf16.msra.mxu1 %v6424_v1  ;;  %v7223_v1 = vld [vmem:[%s10489_s7 + $0xb4] ss:$28 sps:$4 sm:$0xff]  }
 0x280   :  { %2568 = vmatpush1.bf16.msra.mxu0 %v6426_v60  ;;  %2487 = vmatprep.subr.bf16.mxu1 %v6433_v23  ;;  %v7218_v60 = vld [vmem:[%s10489_s7 + $0xa8] ss:$28 sps:$4 sm:$0xff]   ;;  %v7221_v23 = vld [vmem:[%s10489_s7 + $0xb0] ss:$28 sps:$4 sm:$0xff]  }
 0x281   :  { %2569 = vmatprep.subr.bf16.mxu0 %v6435_v61  ;;  %v7226_v61 = vld [vmem:[%s10489_s7 + $0xe4] ss:$28 sps:$4 sm:$0xff]  }
 0x283   :  { %2488 = vmatpush1.bf16.msra.mxu1 %v6432_v4  ;;  %v7235_v4 = vld [vmem:[%s10489_s7 + $0x124] ss:$28 sps:$4 sm:$0xff]  }
 0x284   :  { %2570 = vmatpush1.bf16.msra.mxu0 %v6434_v5  ;;  %2489 = vmatprep.subr.bf16.mxu1 %v6441_v6  ;;  %v7230_v5 = vld [vmem:[%s10489_s7 + $0x118] ss:$28 sps:$4 sm:$0xff]   ;;  %v7233_v6 = vld [vmem:[%s10489_s7 + $0x120] ss:$28 sps:$4 sm:$0xff]  }
 0x285   :  { %2571 = vmatprep.subr.bf16.mxu0 %v6443_v7  ;;  %v7238_v7 = vld [vmem:[%s10489_s7 + $0x154] ss:$28 sps:$4 sm:$0xff]  }
 0x287   :  { %2490 = vmatpush1.bf16.msra.mxu1 %v6440_v15  ;;  %v7247_v15 = vld [vmem:[%s10489_s7 + $0x194] ss:$28 sps:$4 sm:$0xff]  }
 0x288   :  { %2572 = vmatpush1.bf16.msra.mxu0 %v6442_v18  ;;  %2491 = vmatprep.subr.bf16.mxu1 %v6449_v19  ;;  %v7242_v18 = vld [vmem:[%s10489_s7 + $0x188] ss:$28 sps:$4 sm:$0xff]   ;;  %v7245_v19 = vld [vmem:[%s10489_s7 + $0x190] ss:$28 sps:$4 sm:$0xff]  }
 0x289   :  { %2573 = vmatprep.subr.bf16.mxu0 %v6451_v8  ;;  %v7250_v8 = vld [vmem:[%s10489_s7 + $0x1c4] ss:$28 sps:$4 sm:$0xff]  }
 0x28b   :  { %2492 = vmatpush1.bf16.msra.mxu1 %v6448_v17  ;;  %v7259_v17 = vld [vmem:[%s10489_s7 + $0x204] ss:$28 sps:$4 sm:$0xff]  }
 0x28c   :  { %2574 = vmatpush1.bf16.msra.mxu0 %v6450_v20  ;;  %2493 = vmatprep.subr.bf16.mxu1 %v6457_v21  ;;  %v7254_v20 = vld [vmem:[%s10489_s7 + $0x1f8] ss:$28 sps:$4 sm:$0xff]   ;;  %v7257_v21 = vld [vmem:[%s10489_s7 + $0x200] ss:$28 sps:$4 sm:$0xff]  }
 0x28d   :  { %2575 = vmatprep.subr.bf16.mxu0 %v6459_v22  ;;  %v7262_v22 = vld [vmem:[%s10489_s7 + $0x234] ss:$28 sps:$4 sm:$0xff]  }
 0x28f   :  { %2494 = vmatpush1.bf16.msra.mxu1 %v6456_v29  ;;  %v7271_v29 = vld [vmem:[%s10489_s7 + $0x274] ss:$28 sps:$4 sm:$0xff]  }
 0x290   :  { %2576 = vmatpush1.bf16.msra.mxu0 %v6458_v30  ;;  %2495 = vmatprep.subr.bf16.mxu1 %v6465_v31  ;;  %v7266_v30 = vld [vmem:[%s10489_s7 + $0x268] ss:$28 sps:$4 sm:$0xff]   ;;  %v7269_v31 = vld [vmem:[%s10489_s7 + $0x270] ss:$28 sps:$4 sm:$0xff]  }
 0x291   :  { %2577 = vmatprep.subr.bf16.mxu0 %v6467_v32  ;;  %v7274_v32 = vld [vmem:[%s10489_s7 + $0x2a4] ss:$28 sps:$4 sm:$0xff]  }
 0x293   :  { %2496 = vmatpush1.bf16.msra.mxu1 %v6464_v38  ;;  %v7283_v38 = vld [vmem:[%s10489_s7 + $0x2e4] ss:$28 sps:$4 sm:$0xff]  }
 0x294   :  { %2578 = vmatpush1.bf16.msra.mxu0 %v6466_v39  ;;  %2497 = vmatprep.subr.bf16.mxu1 %v6473_v41  ;;  %v7278_v39 = vld [vmem:[%s10489_s7 + $0x2d8] ss:$28 sps:$4 sm:$0xff]   ;;  %v7281_v41 = vld [vmem:[%s10489_s7 + $0x2e0] ss:$28 sps:$4 sm:$0xff]  }
 0x295   :  { %2579 = vmatprep.subr.bf16.mxu0 %v6475_v0  ;;  %v7286_v0 = vld [vmem:[%s10489_s7 + $0x314] ss:$28 sps:$4 sm:$0xff]  }
 0x297   :  { %2498 = vmatpush1.bf16.msra.mxu1 %v6472_v42  ;;  %v7289_v42 = vld [vmem:[%s10489_s7 + $0x31c] ss:$28 sps:$4 sm:$0xff]  }
 0x298   :  { %2580 = vmatpush1.bf16.msra.mxu0 %v6474_v44  ;;  %5459 = vmatprep.subr.bf16.mxu1 %v7202_v45  ;;  %v7284_v44 = vld [vmem:[%s10489_s7 + $0x310] ss:$28 sps:$4 sm:$0xff]   ;;  %v7287_v45 = vld [vmem:[%s10489_s7 + $0x318] ss:$28 sps:$4 sm:$0xff]  }
 0x299   :  { %5623 = vmatprep.subr.bf16.mxu0 %v7205_v46  ;;  %v7292_v46 = vld [vmem:[%s10489_s7 + $0x34c] ss:$28 sps:$4 sm:$0xff]  }
 0x29a   :  { %2500 = vmatmul.mubr.bf16.vlgmr.msra.gmra.mrb[4].mxu1 %v8649_v25 }
 0x29b   :  { %2582 = vmatmul.mubr.bf16.vlgmr.msra.gmra.mrb[16].mxu0 %v8649_v25  ;;  %5460 = vmatpush1.bf16.msra.mxu1 %v7200_v47  ;;  %v7217_v25 = vld [vmem:[%s10489_s7 + $0x7c] ss:$28 sps:$4 sm:$0xff]   ;;  %v7295_v47 = vld [vmem:[%s10489_s7 + $0x354] ss:$28 sps:$4 sm:$0xff]  }
 0x29c   :  { %5624 = vmatpush1.bf16.msra.mxu0 %v7203_v48  ;;  %5461 = vmatprep.subr.bf16.mxu1 %v7208_v51  ;;  %v7290_v48 = vld [vmem:[%s10489_s7 + $0x348] ss:$28 sps:$4 sm:$0xff]   ;;  %v7293_v51 = vld [vmem:[%s10489_s7 + $0x350] ss:$28 sps:$4 sm:$0xff]  }
 0x29d   :  { %5625 = vmatprep.subr.bf16.mxu0 %v7211_v52  ;;  %v7298_v52 = vld [vmem:[%s10489_s7 + $0x384] ss:$28 sps:$4 sm:$0xff]  }
 0x29f   :  { %5462 = vmatpush1.bf16.msra.mxu1 %v7206_v54  ;;  %v7301_v54 = vld [vmem:[%s10489_s7 + $0x38c] ss:$28 sps:$4 sm:$0xff]  }
 0x2a0   :  { %5626 = vmatpush1.bf16.msra.mxu0 %v7209_v55  ;;  %5463 = vmatprep.subr.bf16.mxu1 %v7214_v56  ;;  %v9224_v55 = vld [vmem:[%s10488_s6] sm:$0xff] }
 0x2a1   :  { %5627 = vmatprep.subr.bf16.mxu0 %v7217_v25  ;;  %v945_v56 = vrot.slane %v9224_v55, %v8161_v40  ;;  %v949_v25 = vrot.slane %v9224_v55, %v8167_v43 }
 0x2a3   :  { %5464 = vmatpush1.bf16.msra.mxu1 %v7212_v57  ;;  %v957_v57 = vrot.slane %v9224_v55, %v8605_v53 }
 0x2a4   :  { %5628 = vmatpush1.bf16.msra.mxu0 %v7215_v58  ;;  %5465 = vmatprep.subr.bf16.mxu1 %v7220_v59 }
 0x2a5   :  { %5629 = vmatprep.subr.bf16.mxu0 %v7223_v1 }
 0x2a7   :  { %5466 = vmatpush1.bf16.msra.mxu1 %v7218_v60 }
 0x2a8   :  { %5630 = vmatpush1.bf16.msra.mxu0 %v7221_v23  ;;  %5467 = vmatprep.subr.bf16.mxu1 %v7226_v61 }
 0x2a9   :  { %5631 = vmatprep.subr.bf16.mxu0 %v7229_v62 }
 0x2ab   :  { %5468 = vmatpush1.bf16.msra.mxu1 %v7224_v63 }
 0x2ac   :  { %5632 = vmatpush1.bf16.msra.mxu0 %v7227_v2  ;;  %5469 = vmatprep.subr.bf16.mxu1 %v7232_v3 }
 0x2ad   :  { %5633 = vmatprep.subr.bf16.mxu0 %v7235_v4 }
 0x2af   :  { %5470 = vmatpush1.bf16.msra.mxu1 %v7230_v5 }
 0x2b0   :  { %5634 = vmatpush1.bf16.msra.mxu0 %v7233_v6  ;;  %5471 = vmatprep.subr.bf16.mxu1 %v7238_v7 }
 0x2b1   :  { %5635 = vmatprep.subr.bf16.mxu0 %v7241_v49 }
 0x2b3   :  { %5472 = vmatpush1.bf16.msra.mxu1 %v7236_v11  ;;  %v7296_v11 = vld [vmem:[%s10489_s7 + $0x380] ss:$28 sps:$4 sm:$0xff]  }
 0x2b4   :  { %5636 = vmatpush1.bf16.msra.mxu0 %v7239_v12  ;;  %5473 = vmatprep.subr.bf16.mxu1 %v7244_v14  ;;  %v7299_v12 = vld [vmem:[%s10489_s7 + $0x388] ss:$28 sps:$4 sm:$0xff]  }
 0x2b5   :  { %5637 = vmatprep.subr.bf16.mxu0 %v7247_v15  ;;  %v7304_v15 = vld [vmem:[%s10489_s7 + $0x3bc] ss:$28 sps:$4 sm:$0xff]  }
 0x2b7   :  { %5474 = vmatpush1.bf16.msra.mxu1 %v7242_v18  ;;  %v7307_v18 = vld [vmem:[%s10489_s7 + $0x3c4] ss:$28 sps:$4 sm:$0xff]  }
 0x2b8   :  { %5638 = vmatpush1.bf16.msra.mxu0 %v7245_v19  ;;  %5475 = vmatprep.subr.bf16.mxu1 %v7250_v8  ;;  %v7302_v8 = vld [vmem:[%s10489_s7 + $0x3b8] ss:$28 sps:$4 sm:$0xff]  }
 0x2b9   :  { %5639 = vmatprep.subr.bf16.mxu0 %v7253_v9  ;;  %v7305_v9 = vld [vmem:[%s10489_s7 + $0x3c0] ss:$28 sps:$4 sm:$0xff]  }
 0x2bb   :  { %5476 = vmatpush1.bf16.msra.mxu1 %v7248_v10  ;;  %v7310_v10 = vld [vmem:[%s10489_s7 + $0x3f4] ss:$28 sps:$4 sm:$0xff]  }
 0x2bc   :  { %5640 = vmatpush1.bf16.msra.mxu0 %v7251_v13  ;;  %5477 = vmatprep.subr.bf16.mxu1 %v7256_v16  ;;  %v7313_v13 = vld [vmem:[%s10489_s7 + $0x3fc] ss:$28 sps:$4 sm:$0xff]   ;;  %v7308_v16 = vld [vmem:[%s10489_s7 + $0x3f0] ss:$28 sps:$4 sm:$0xff]  }
 0x2bd   :  { %5641 = vmatprep.subr.bf16.mxu0 %v7259_v17  ;;  %v7311_v17 = vld [vmem:[%s10489_s7 + $0x3f8] ss:$28 sps:$4 sm:$0xff]  }
 0x2bf   :  { %5478 = vmatpush1.bf16.msra.mxu1 %v7254_v20  ;;  %v7316_v20 = vld [vmem:[%s10489_s7 + $0x42c] ss:$28 sps:$4 sm:$0xff]  }
 0x2c0   :  { %5642 = vmatpush1.bf16.msra.mxu0 %v7257_v21  ;;  %5479 = vmatprep.subr.bf16.mxu1 %v7262_v22  ;;  %v7319_v21 = vld [vmem:[%s10489_s7 + $0x434] ss:$28 sps:$4 sm:$0xff]   ;;  %v7314_v22 = vld [vmem:[%s10489_s7 + $0x428] ss:$28 sps:$4 sm:$0xff]  }
 0x2c1   :  { %5643 = vmatprep.subr.bf16.mxu0 %v7265_v24  ;;  %v7317_v24 = vld [vmem:[%s10489_s7 + $0x430] ss:$28 sps:$4 sm:$0xff]  }
 0x2c3   :  { %5480 = vmatpush1.bf16.msra.mxu1 %v7260_v26  ;;  %v7322_v26 = vld [vmem:[%s10489_s7 + $0x464] ss:$28 sps:$4 sm:$0xff]  }
 0x2c4   :  { %5644 = vmatpush1.bf16.msra.mxu0 %v7263_v27  ;;  %5481 = vmatprep.subr.bf16.mxu1 %v7268_v28  ;;  %v7325_v27 = vld [vmem:[%s10489_s7 + $0x46c] ss:$28 sps:$4 sm:$0xff]   ;;  %v7320_v28 = vld [vmem:[%s10489_s7 + $0x460] ss:$28 sps:$4 sm:$0xff]  }
 0x2c5   :  { %5645 = vmatprep.subr.bf16.mxu0 %v7271_v29  ;;  %v7323_v29 = vld [vmem:[%s10489_s7 + $0x468] ss:$28 sps:$4 sm:$0xff]  }
 0x2c7   :  { %5482 = vmatpush1.bf16.msra.mxu1 %v7266_v30  ;;  %v7328_v30 = vld [vmem:[%s10489_s7 + $0x49c] ss:$28 sps:$4 sm:$0xff]  }
 0x2c8   :  { %5646 = vmatpush1.bf16.msra.mxu0 %v7269_v31  ;;  %5483 = vmatprep.subr.bf16.mxu1 %v7274_v32  ;;  %v7331_v31 = vld [vmem:[%s10489_s7 + $0x4a4] ss:$28 sps:$4 sm:$0xff]   ;;  %v7326_v32 = vld [vmem:[%s10489_s7 + $0x498] ss:$28 sps:$4 sm:$0xff]  }
 0x2c9   :  { %5647 = vmatprep.subr.bf16.mxu0 %v7277_v33  ;;  %v7329_v33 = vld [vmem:[%s10489_s7 + $0x4a0] ss:$28 sps:$4 sm:$0xff]  }
 0x2cb   :  { %5484 = vmatpush1.bf16.msra.mxu1 %v7272_v34  ;;  %v7334_v34 = vld [vmem:[%s10489_s7 + $0x4d4] ss:$28 sps:$4 sm:$0xff]  }
 0x2cc   :  { %5648 = vmatpush1.bf16.msra.mxu0 %v7275_v36  ;;  %5485 = vmatprep.subr.bf16.mxu1 %v7280_v37  ;;  %v7337_v36 = vld [vmem:[%s10489_s7 + $0x4dc] ss:$28 sps:$4 sm:$0xff]   ;;  %v7332_v37 = vld [vmem:[%s10489_s7 + $0x4d0] ss:$28 sps:$4 sm:$0xff]  }
 0x2cd   :  { %5649 = vmatprep.subr.bf16.mxu0 %v7283_v38  ;;  %v7335_v38 = vld [vmem:[%s10489_s7 + $0x4d8] ss:$28 sps:$4 sm:$0xff]  }
 0x2cf   :  { %5486 = vmatpush1.bf16.msra.mxu1 %v7278_v39  ;;  %v7340_v39 = vld [vmem:[%s10489_s7 + $0x50c] ss:$28 sps:$4 sm:$0xff]  }
 0x2d0   :  { %5650 = vmatpush1.bf16.msra.mxu0 %v7281_v41  ;;  %5487 = vmatprep.subr.bf16.mxu1 %v7286_v0  ;;  %v7343_v41 = vld [vmem:[%s10489_s7 + $0x514] ss:$28 sps:$4 sm:$0xff]   ;;  %v7338_v0 = vld [vmem:[%s10489_s7 + $0x508] ss:$28 sps:$4 sm:$0xff]  }
 0x2d1   :  { %5651 = vmatprep.subr.bf16.mxu0 %v7289_v42  ;;  %v7341_v42 = vld [vmem:[%s10489_s7 + $0x510] ss:$28 sps:$4 sm:$0xff]  }
 0x2d3   :  { %5488 = vmatpush1.bf16.msra.mxu1 %v7284_v44  ;;  %v7346_v44 = vld [vmem:[%s10489_s7 + $0x544] ss:$28 sps:$4 sm:$0xff]  }
 0x2d4   :  { %5652 = vmatpush1.bf16.msra.mxu0 %v7287_v45  ;;  %5489 = vmatprep.subr.bf16.mxu1 %v7292_v46  ;;  %v7349_v45 = vld [vmem:[%s10489_s7 + $0x54c] ss:$28 sps:$4 sm:$0xff]   ;;  %v7344_v46 = vld [vmem:[%s10489_s7 + $0x540] ss:$28 sps:$4 sm:$0xff]  }
 0x2d5   :  { %5653 = vmatprep.subr.bf16.mxu0 %v7295_v47  ;;  %v7347_v47 = vld [vmem:[%s10489_s7 + $0x548] ss:$28 sps:$4 sm:$0xff]  }
 0x2d7   :  { %5490 = vmatpush1.bf16.msra.mxu1 %v7290_v48  ;;  %v7352_v48 = vld [vmem:[%s10489_s7 + $0x57c] ss:$28 sps:$4 sm:$0xff]  }
 0x2d8   :  { %5654 = vmatpush1.bf16.msra.mxu0 %v7293_v51  ;;  %5500 = vmatprep.subr.bf16.mxu1 %v7298_v52  ;;  %v7355_v51 = vld [vmem:[%s10489_s7 + $0x584] ss:$28 sps:$4 sm:$0xff]   ;;  %v7350_v52 = vld [vmem:[%s10489_s7 + $0x578] ss:$28 sps:$4 sm:$0xff]  }
 0x2d9   :  { %5664 = vmatprep.subr.bf16.mxu0 %v7301_v54  ;;  %v7353_v54 = vld [vmem:[%s10489_s7 + $0x580] ss:$28 sps:$4 sm:$0xff]  }
 0x2ed   :  { %v2337_v58 = vpop.f32.mrb[0].mxu1  ;;  %v9232_v59 = vpop.f32.mrb[12].mxu0 }
 0x2ee   :  { %v7012_v1 = vadd.f32 %v2337_v58, %v945_v56  ;;  %v2339_v60 = vpop.f32.mrb[1].mxu1  ;;  %v2421_v23 = vpop.f32.mrb[13].mxu0  ;;  %v7358_v56 = vld [vmem:[%s10489_s7 + $0x5b4] ss:$28 sps:$4 sm:$0xff]  }
 0x2ef   :  { %v7013_v61 = vadd.f32 %v2339_v60, %v949_v25  ;;  %v7015_v62 = vadd.f32 %v2421_v23, %v957_v57  ;;  %v2341_v63 = vpop.f32.mrb[2].mxu1  ;;  %v2423_v2 = vpop.f32.mrb[14].mxu0  ;;  %v7361_v25 = vld [vmem:[%s10489_s7 + $0x5bc] ss:$28 sps:$4 sm:$0xff]   ;;  %v7356_v57 = vld [vmem:[%s10489_s7 + $0x5b0] ss:$28 sps:$4 sm:$0xff]  }
 0x2f0   :  { %v2590_v3 = vmax.f32 %v7012_v1, 0.0  ;;  %v2342_v4 = vpop.f32.mrb[3].mxu1  ;;  %v2424_v5 = vpop.f32.mrb[15].mxu0  ;;  %v7359_v58 = vld [vmem:[%s10489_s7 + $0x5b8] ss:$28 sps:$4 sm:$0xff]  }
 0x2f1   :  { %v2591_v6 = vmax.f32 %v7013_v61, 0.0  ;;  %v2593_v7 = vmax.f32 %v7015_v62, 0.0  ;;  %v7364_v1 = vld [vmem:[%s10489_s7 + $0x5ec] ss:$28 sps:$4 sm:$0xff]   ;;  %v7367_v60 = vld [vmem:[%s10489_s7 + $0x5f4] ss:$28 sps:$4 sm:$0xff]  }
 0x2f2   :  { %v9242_v14 = vpack.c.bf16 %v2590_v3, %v2590_v3  ;;  %v7362_v23 = vld [vmem:[%s10489_s7 + $0x5e8] ss:$28 sps:$4 sm:$0xff]   ;;  %v7365_v61 = vld [vmem:[%s10489_s7 + $0x5f0] ss:$28 sps:$4 sm:$0xff]   ;;  %v7368_v2 = vld [vmem:[%s10489_s7 + $0x620] ss:$28 sps:$4 sm:$0xff]  }
 0x2f3   :  { %v9234_v49 = vpack.c.bf16 %v2591_v6, %v2591_v6  ;;  %v9252_v19 = vpack.c.bf16 %v2593_v7, %v2593_v7  ;;  %v7370_v62 = vld [vmem:[%s10489_s7 + $0x624] ss:$28 sps:$4 sm:$0xff]   ;;  %v7373_v63 = vld [vmem:[%s10489_s7 + $0x62c] ss:$28 sps:$4 sm:$0xff]   ;;  %v7376_v4 = vld [vmem:[%s10489_s7 + $0x65c] ss:$28 sps:$4 sm:$0xff]  }
 0x2f4   :  { %v7371_v3 = vld [vmem:[%s10489_s7 + $0x628] ss:$28 sps:$4 sm:$0xff]   ;;  %v7374_v6 = vld [vmem:[%s10489_s7 + $0x658] ss:$28 sps:$4 sm:$0xff]   ;;  %v7377_v7 = vld [vmem:[%s10489_s7 + $0x660] ss:$28 sps:$4 sm:$0xff]  }
 0x2f5   :  { %5491 = vmatprep.mubr.bf16.mxu1 %v9234_v49  ;;  %5655 = vmatprep.mubr.bf16.mxu0 %v9234_v49  ;;  %v7379_v5 = vld [vmem:[%s10489_s7 + $0x664] ss:$28 sps:$4 sm:$0xff]  }
 0x2f6   :  { %5492 = vmatmul.mubr.bf16.vlgmr.msra.gmra.mrb[8].mxu1 %v9242_v14  ;;  %5656 = vmatmul.mubr.bf16.vlgmr.msra.gmra.mrb[20].mxu0 %v9242_v14 }
 0x2f7   :  { %5501 = vmatpush1.bf16.msra.mxu1 %v7296_v11  ;;  %5665 = vmatpush1.bf16.msra.mxu0 %v7299_v12  ;;  %v953_v11 = vrot.slane %v9224_v55, %v8602_v50  ;;  %v7382_v12 = vld [vmem:[%s10489_s7 + $0x694] ss:$28 sps:$4 sm:$0xff]  }
 0x2f8   :  { %5532 = vmatprep.mubr.bf16.mxu1 %v9252_v19  ;;  %5696 = vmatprep.mubr.bf16.mxu0 %v9252_v19 }
 0x2f9   :  { %5502 = vmatprep.subr.bf16.mxu1 %v7304_v15  ;;  %5666 = vmatprep.subr.bf16.mxu0 %v7307_v18  ;;  %v7385_v15 = vld [vmem:[%s10489_s7 + $0x69c] ss:$28 sps:$4 sm:$0xff]   ;;  %v7380_v18 = vld [vmem:[%s10489_s7 + $0x690] ss:$28 sps:$4 sm:$0xff]  }
 0x2fb   :  { %5503 = vmatpush1.bf16.msra.mxu1 %v7302_v8  ;;  %5667 = vmatpush1.bf16.msra.mxu0 %v7305_v9  ;;  %v7383_v8 = vld [vmem:[%s10489_s7 + $0x698] ss:$28 sps:$4 sm:$0xff]   ;;  %v7014_v9 = vadd.f32 %v9232_v59, %v953_v11  ;;  %v7389_v59 = vld [vmem:[%s10489_s7 + $0x6d0] ss:$28 sps:$4 sm:$0xff]  }
 0x2fc   :  { %5504 = vmatprep.subr.bf16.mxu1 %v7310_v10  ;;  %5668 = vmatprep.subr.bf16.mxu0 %v7313_v13  ;;  %v7388_v10 = vld [vmem:[%s10489_s7 + $0x6cc] ss:$28 sps:$4 sm:$0xff]   ;;  %v7391_v13 = vld [vmem:[%s10489_s7 + $0x6d4] ss:$28 sps:$4 sm:$0xff]  }
 0x2fd   :  { %v7455_v11 = vld [vmem:[%s10489_s7 + $0x938] ss:$28 sps:$4 sm:$0xff]  }
 0x2ff   :  { %5505 = vmatpush1.bf16.msra.mxu1 %v7308_v16  ;;  %5669 = vmatpush1.bf16.msra.mxu0 %v7311_v17  ;;  %v7386_v16 = vld [vmem:[%s10489_s7 + $0x6c8] ss:$28 sps:$4 sm:$0xff]   ;;  %v2592_v17 = vmax.f32 %v7014_v9, 0.0 }
 0x300   :  { %5506 = vmatprep.subr.bf16.mxu1 %v7316_v20  ;;  %5670 = vmatprep.subr.bf16.mxu0 %v7319_v21  ;;  %v7394_v20 = vld [vmem:[%s10489_s7 + $0x704] ss:$28 sps:$4 sm:$0xff]   ;;  %v7397_v21 = vld [vmem:[%s10489_s7 + $0x70c] ss:$28 sps:$4 sm:$0xff]  }
 0x301   :  { %v7466_v9 = vld [vmem:[%s10489_s7 + $0x9a4] ss:$28 sps:$4 sm:$0xff]  }
 0x303   :  { %5507 = vmatpush1.bf16.msra.mxu1 %v7314_v22  ;;  %5671 = vmatpush1.bf16.msra.mxu0 %v7317_v24  ;;  %v7392_v22 = vld [vmem:[%s10489_s7 + $0x700] ss:$28 sps:$4 sm:$0xff]   ;;  %v7395_v24 = vld [vmem:[%s10489_s7 + $0x708] ss:$28 sps:$4 sm:$0xff]  }
 0x304   :  { %5508 = vmatprep.subr.bf16.mxu1 %v7322_v26  ;;  %5672 = vmatprep.subr.bf16.mxu0 %v7325_v27  ;;  %v9447_v26 = vpack.c.bf16 %v2592_v17, %v2592_v17  ;;  %v7400_v27 = vld [vmem:[%s10489_s7 + $0x73c] ss:$28 sps:$4 sm:$0xff]   ;;  %v7475_v17 = vld [vmem:[%s10489_s7 + $0x9e4] ss:$28 sps:$4 sm:$0xff]  }
 0x307   :  { %5509 = vmatpush1.bf16.msra.mxu1 %v7320_v28  ;;  %5673 = vmatpush1.bf16.msra.mxu0 %v7323_v29  ;;  %v7403_v28 = vld [vmem:[%s10489_s7 + $0x744] ss:$28 sps:$4 sm:$0xff]   ;;  %v7398_v29 = vld [vmem:[%s10489_s7 + $0x738] ss:$28 sps:$4 sm:$0xff]  }
 0x308   :  { %5510 = vmatprep.subr.bf16.mxu1 %v7328_v30  ;;  %5674 = vmatprep.subr.bf16.mxu0 %v7331_v31  ;;  %v7401_v30 = vld [vmem:[%s10489_s7 + $0x740] ss:$28 sps:$4 sm:$0xff]   ;;  %v7406_v31 = vld [vmem:[%s10489_s7 + $0x774] ss:$28 sps:$4 sm:$0xff]  }
 0x30b   :  { %5511 = vmatpush1.bf16.msra.mxu1 %v7326_v32  ;;  %5675 = vmatpush1.bf16.msra.mxu0 %v7329_v33  ;;  %v7409_v32 = vld [vmem:[%s10489_s7 + $0x77c] ss:$28 sps:$4 sm:$0xff]   ;;  %v7404_v33 = vld [vmem:[%s10489_s7 + $0x770] ss:$28 sps:$4 sm:$0xff]  }
 0x30c   :  { %5512 = vmatprep.subr.bf16.mxu1 %v7334_v34  ;;  %5676 = vmatprep.subr.bf16.mxu0 %v7337_v36  ;;  %v7407_v34 = vld [vmem:[%s10489_s7 + $0x778] ss:$28 sps:$4 sm:$0xff]   ;;  %v7412_v36 = vld [vmem:[%s10489_s7 + $0x7ac] ss:$28 sps:$4 sm:$0xff]  }
 0x30f   :  { %5513 = vmatpush1.bf16.msra.mxu1 %v7332_v37  ;;  %5677 = vmatpush1.bf16.msra.mxu0 %v7335_v38  ;;  %v7415_v37 = vld [vmem:[%s10489_s7 + $0x7b4] ss:$28 sps:$4 sm:$0xff]   ;;  %v7410_v38 = vld [vmem:[%s10489_s7 + $0x7a8] ss:$28 sps:$4 sm:$0xff]  }
 0x310   :  { %5514 = vmatprep.subr.bf16.mxu1 %v7340_v39  ;;  %5678 = vmatprep.subr.bf16.mxu0 %v7343_v41  ;;  %v7413_v39 = vld [vmem:[%s10489_s7 + $0x7b0] ss:$28 sps:$4 sm:$0xff]   ;;  %v7418_v41 = vld [vmem:[%s10489_s7 + $0x7e4] ss:$28 sps:$4 sm:$0xff]  }
 0x313   :  { %5515 = vmatpush1.bf16.msra.mxu1 %v7338_v0  ;;  %5679 = vmatpush1.bf16.msra.mxu0 %v7341_v42  ;;  %v7421_v0 = vld [vmem:[%s10489_s7 + $0x7ec] ss:$28 sps:$4 sm:$0xff]   ;;  %v7416_v42 = vld [vmem:[%s10489_s7 + $0x7e0] ss:$28 sps:$4 sm:$0xff]  }
 0x314   :  { %5516 = vmatprep.subr.bf16.mxu1 %v7346_v44  ;;  %5680 = vmatprep.subr.bf16.mxu0 %v7349_v45  ;;  %v7419_v44 = vld [vmem:[%s10489_s7 + $0x7e8] ss:$28 sps:$4 sm:$0xff]   ;;  %v7424_v45 = vld [vmem:[%s10489_s7 + $0x81c] ss:$28 sps:$4 sm:$0xff]  }
 0x317   :  { %5517 = vmatpush1.bf16.msra.mxu1 %v7344_v46  ;;  %5681 = vmatpush1.bf16.msra.mxu0 %v7347_v47  ;;  %v7427_v46 = vld [vmem:[%s10489_s7 + $0x824] ss:$28 sps:$4 sm:$0xff]   ;;  %v7422_v47 = vld [vmem:[%s10489_s7 + $0x818] ss:$28 sps:$4 sm:$0xff]  }
 0x318   :  { %5518 = vmatprep.subr.bf16.mxu1 %v7352_v48  ;;  %5682 = vmatprep.subr.bf16.mxu0 %v7355_v51  ;;  %v7425_v48 = vld [vmem:[%s10489_s7 + $0x820] ss:$28 sps:$4 sm:$0xff]   ;;  %v7430_v51 = vld [vmem:[%s10489_s7 + $0x854] ss:$28 sps:$4 sm:$0xff]  }
 0x31b   :  { %5519 = vmatpush1.bf16.msra.mxu1 %v7350_v52  ;;  %5683 = vmatpush1.bf16.msra.mxu0 %v7353_v54  ;;  %v7433_v52 = vld [vmem:[%s10489_s7 + $0x85c] ss:$28 sps:$4 sm:$0xff]   ;;  %v7428_v54 = vld [vmem:[%s10489_s7 + $0x850] ss:$28 sps:$4 sm:$0xff]  }
 0x31c   :  { %5520 = vmatprep.subr.bf16.mxu1 %v7358_v56  ;;  %5684 = vmatprep.subr.bf16.mxu0 %v7361_v25  ;;  %v7431_v56 = vld [vmem:[%s10489_s7 + $0x858] ss:$28 sps:$4 sm:$0xff]   ;;  %v7436_v25 = vld [vmem:[%s10489_s7 + $0x88c] ss:$28 sps:$4 sm:$0xff]  }
 0x31f   :  { %5521 = vmatpush1.bf16.msra.mxu1 %v7356_v57  ;;  %5685 = vmatpush1.bf16.msra.mxu0 %v7359_v58  ;;  %v7439_v57 = vld [vmem:[%s10489_s7 + $0x894] ss:$28 sps:$4 sm:$0xff]   ;;  %v7434_v58 = vld [vmem:[%s10489_s7 + $0x888] ss:$28 sps:$4 sm:$0xff]  }
 0x320   :  { %5522 = vmatprep.subr.bf16.mxu1 %v7364_v1  ;;  %5686 = vmatprep.subr.bf16.mxu0 %v7367_v60  ;;  %v7437_v1 = vld [vmem:[%s10489_s7 + $0x890] ss:$28 sps:$4 sm:$0xff]   ;;  %v7442_v60 = vld [vmem:[%s10489_s7 + $0x8c4] ss:$28 sps:$4 sm:$0xff]  }
 0x323   :  { %5523 = vmatpush1.bf16.msra.mxu1 %v7362_v23  ;;  %5687 = vmatpush1.bf16.msra.mxu0 %v7365_v61  ;;  %v7445_v23 = vld [vmem:[%s10489_s7 + $0x8cc] ss:$28 sps:$4 sm:$0xff]   ;;  %v7440_v61 = vld [vmem:[%s10489_s7 + $0x8c0] ss:$28 sps:$4 sm:$0xff]  }
 0x324   :  { %5524 = vmatprep.subr.bf16.mxu1 %v7370_v62  ;;  %5688 = vmatprep.subr.bf16.mxu0 %v7373_v63  ;;  %v7443_v62 = vld [vmem:[%s10489_s7 + $0x8c8] ss:$28 sps:$4 sm:$0xff]   ;;  %v7448_v63 = vld [vmem:[%s10489_s7 + $0x8fc] ss:$28 sps:$4 sm:$0xff]  }
 0x327   :  { %5525 = vmatpush1.bf16.msra.mxu1 %v7368_v2  ;;  %5689 = vmatpush1.bf16.msra.mxu0 %v7371_v3  ;;  %v7451_v2 = vld [vmem:[%s10489_s7 + $0x904] ss:$28 sps:$4 sm:$0xff]   ;;  %v7446_v3 = vld [vmem:[%s10489_s7 + $0x8f8] ss:$28 sps:$4 sm:$0xff]  }
 0x328   :  { %5526 = vmatprep.subr.bf16.mxu1 %v7376_v4  ;;  %5690 = vmatprep.subr.bf16.mxu0 %v7379_v5  ;;  %v7449_v4 = vld [vmem:[%s10489_s7 + $0x900] ss:$28 sps:$4 sm:$0xff]   ;;  %v7454_v5 = vld [vmem:[%s10489_s7 + $0x934] ss:$28 sps:$4 sm:$0xff]  }
 0x32b   :  { %5527 = vmatpush1.bf16.msra.mxu1 %v7374_v6  ;;  %5691 = vmatpush1.bf16.msra.mxu0 %v7377_v7  ;;  %v7457_v6 = vld [vmem:[%s10489_s7 + $0x93c] ss:$28 sps:$4 sm:$0xff]   ;;  %v7452_v7 = vld [vmem:[%s10489_s7 + $0x930] ss:$28 sps:$4 sm:$0xff]  }
 0x32c   :  { %5528 = vmatprep.subr.bf16.mxu1 %v7382_v12  ;;  %5692 = vmatprep.subr.bf16.mxu0 %v7385_v15  ;;  %v7460_v12 = vld [vmem:[%s10489_s7 + $0x96c] ss:$28 sps:$4 sm:$0xff]   ;;  %v7463_v15 = vld [vmem:[%s10489_s7 + $0x974] ss:$28 sps:$4 sm:$0xff]  }
 0x32f   :  { %5529 = vmatpush1.bf16.msra.mxu1 %v7380_v18  ;;  %5693 = vmatpush1.bf16.msra.mxu0 %v7383_v8  ;;  %v7458_v18 = vld [vmem:[%s10489_s7 + $0x968] ss:$28 sps:$4 sm:$0xff]   ;;  %v7461_v8 = vld [vmem:[%s10489_s7 + $0x970] ss:$28 sps:$4 sm:$0xff]  }
 0x330   :  { %5530 = vmatprep.subr.bf16.mxu1 %v7388_v10  ;;  %5694 = vmatprep.subr.bf16.mxu0 %v7391_v13  ;;  %v7469_v10 = vld [vmem:[%s10489_s7 + $0x9ac] ss:$28 sps:$4 sm:$0xff]   ;;  %v7464_v13 = vld [vmem:[%s10489_s7 + $0x9a0] ss:$28 sps:$4 sm:$0xff]  }
 0x333   :  { %5531 = vmatpush1.bf16.msra.mxu1 %v7386_v16  ;;  %5695 = vmatpush1.bf16.msra.mxu0 %v7389_v59  ;;  %v7467_v16 = vld [vmem:[%s10489_s7 + $0x9a8] ss:$28 sps:$4 sm:$0xff]   ;;  %v7472_v59 = vld [vmem:[%s10489_s7 + $0x9dc] ss:$28 sps:$4 sm:$0xff]  }
 0x334   :  { %5541 = vmatprep.subr.bf16.mxu1 %v7394_v20  ;;  %5705 = vmatprep.subr.bf16.mxu0 %v7397_v21  ;;  %v960_v20 = vsub.s32 4, %v8152_v35  ;;  %v7470_v21 = vld [vmem:[%s10489_s7 + $0x9d8] ss:$28 sps:$4 sm:$0xff]  }
 0x336   :  { %5533 = vmatmul.mubr.bf16.vlgmr.msra.gmra.mrb[8].mxu1 %v9447_v26  ;;  %5697 = vmatmul.mubr.bf16.vlgmr.msra.gmra.mrb[20].mxu0 %v9447_v26 }
 0x337   :  { %5542 = vmatpush1.bf16.msra.mxu1 %v7392_v22  ;;  %5706 = vmatpush1.bf16.msra.mxu0 %v7395_v24  ;;  %v7473_v22 = vld [vmem:[%s10489_s7 + $0x9e0] ss:$28 sps:$4 sm:$0xff]   ;;  %v964_v24 = vsub.s32 5, %v8152_v35 }
 0x338   :  { %5543 = vmatprep.subr.bf16.mxu1 %v7400_v27  ;;  %5707 = vmatprep.subr.bf16.mxu0 %v7403_v28  ;;  %v7478_v27 = vld [vmem:[%s10489_s7 + $0xa14] ss:$28 sps:$4 sm:$0xff]   ;;  %v7481_v28 = vld [vmem:[%s10489_s7 + $0xa1c] ss:$28 sps:$4 sm:$0xff]  }
 0x33b   :  { %5544 = vmatpush1.bf16.msra.mxu1 %v7398_v29  ;;  %5708 = vmatpush1.bf16.msra.mxu0 %v7401_v30  ;;  %v972_v29 = vsub.s32 7, %v8152_v35  ;;  %v961_v30 = vrot.slane %v9224_v55, %v960_v20 }
 0x33c   :  { %5545 = vmatprep.subr.bf16.mxu1 %v7406_v31  ;;  %5709 = vmatprep.subr.bf16.mxu0 %v7409_v32  ;;  %v7476_v31 = vld [vmem:[%s10489_s7 + $0xa10] ss:$28 sps:$4 sm:$0xff]   ;;  %v7479_v32 = vld [vmem:[%s10489_s7 + $0xa18] ss:$28 sps:$4 sm:$0xff]  }
 0x33f   :  { %5546 = vmatpush1.bf16.msra.mxu1 %v7404_v33  ;;  %5710 = vmatpush1.bf16.msra.mxu0 %v7407_v34  ;;  %v965_v33 = vrot.slane %v9224_v55, %v964_v24  ;;  %v973_v34 = vrot.slane %v9224_v55, %v972_v29  ;;  %v7529_v29 = vld [vmem:[%s10489_s7 + $0xbdc] ss:$28 sps:$4 sm:$0xff]  }
 0x340   :  { %5547 = vmatprep.subr.bf16.mxu1 %v7412_v36  ;;  %5711 = vmatprep.subr.bf16.mxu0 %v7415_v37  ;;  %v7484_v36 = vld [vmem:[%s10489_s7 + $0xa4c] ss:$28 sps:$4 sm:$0xff]   ;;  %v7487_v37 = vld [vmem:[%s10489_s7 + $0xa54] ss:$28 sps:$4 sm:$0xff]  }
 0x343   :  { %5548 = vmatpush1.bf16.msra.mxu1 %v7410_v38  ;;  %5712 = vmatpush1.bf16.msra.mxu0 %v7413_v39 }
 0x344   :  { %5549 = vmatprep.subr.bf16.mxu1 %v7418_v41  ;;  %5713 = vmatprep.subr.bf16.mxu0 %v7421_v0 }
 0x347   :  { %5550 = vmatpush1.bf16.msra.mxu1 %v7416_v42  ;;  %5714 = vmatpush1.bf16.msra.mxu0 %v7419_v44  ;;  %v7482_v42 = vld [vmem:[%s10489_s7 + $0xa48] ss:$28 sps:$4 sm:$0xff]  }
 0x348   :  { %5551 = vmatprep.subr.bf16.mxu1 %v7424_v45  ;;  %5715 = vmatprep.subr.bf16.mxu0 %v7427_v46 }
 0x34b   :  { %5552 = vmatpush1.bf16.msra.mxu1 %v7422_v47  ;;  %5716 = vmatpush1.bf16.msra.mxu0 %v7425_v48  ;;  %v7485_v47 = vld [vmem:[%s10489_s7 + $0xa50] ss:$28 sps:$4 sm:$0xff]   ;;  %v7490_v48 = vld [vmem:[%s10489_s7 + $0xa84] ss:$28 sps:$4 sm:$0xff]  }
 0x34c   :  { %5553 = vmatprep.subr.bf16.mxu1 %v7430_v51  ;;  %5717 = vmatprep.subr.bf16.mxu0 %v7433_v52 }
 0x34f   :  { %5554 = vmatpush1.bf16.msra.mxu1 %v7428_v54  ;;  %5718 = vmatpush1.bf16.msra.mxu0 %v7431_v56 }
 0x350   :  { %5555 = vmatprep.subr.bf16.mxu1 %v7436_v25  ;;  %5719 = vmatprep.subr.bf16.mxu0 %v7439_v57  ;;  %v7493_v25 = vld [vmem:[%s10489_s7 + $0xa8c] ss:$28 sps:$4 sm:$0xff]  }
 0x353   :  { %5556 = vmatpush1.bf16.msra.mxu1 %v7434_v58  ;;  %5720 = vmatpush1.bf16.msra.mxu0 %v7437_v1 }
 0x354   :  { %5557 = vmatprep.subr.bf16.mxu1 %v7442_v60  ;;  %5721 = vmatprep.subr.bf16.mxu0 %v7445_v23  ;;  %v7488_v23 = vld [vmem:[%s10489_s7 + $0xa80] ss:$28 sps:$4 sm:$0xff]  }
 0x357   :  { %5558 = vmatpush1.bf16.msra.mxu1 %v7440_v61  ;;  %5722 = vmatpush1.bf16.msra.mxu0 %v7443_v62  ;;  %v7491_v61 = vld [vmem:[%s10489_s7 + $0xa88] ss:$28 sps:$4 sm:$0xff]  }
 0x358   :  { %5559 = vmatprep.subr.bf16.mxu1 %v7448_v63  ;;  %5723 = vmatprep.subr.bf16.mxu0 %v7451_v2  ;;  %v7496_v63 = vld [vmem:[%s10489_s7 + $0xabc] ss:$28 sps:$4 sm:$0xff]   ;;  %v7499_v2 = vld [vmem:[%s10489_s7 + $0xac4] ss:$28 sps:$4 sm:$0xff]  }
 0x35b   :  { %5560 = vmatpush1.bf16.msra.mxu1 %v7446_v3  ;;  %5724 = vmatpush1.bf16.msra.mxu0 %v7449_v4  ;;  %v7494_v4 = vld [vmem:[%s10489_s7 + $0xab8] ss:$28 sps:$4 sm:$0xff]  }
 0x35c   :  { %5561 = vmatprep.subr.bf16.mxu1 %v7454_v5  ;;  %5725 = vmatprep.subr.bf16.mxu0 %v7457_v6  ;;  %v7497_v5 = vld [vmem:[%s10489_s7 + $0xac0] ss:$28 sps:$4 sm:$0xff]   ;;  %v7502_v6 = vld [vmem:[%s10489_s7 + $0xaf4] ss:$28 sps:$4 sm:$0xff]  }
 0x35f   :  { %5562 = vmatpush1.bf16.msra.mxu1 %v7452_v7  ;;  %5726 = vmatpush1.bf16.msra.mxu0 %v7455_v11  ;;  %v7505_v7 = vld [vmem:[%s10489_s7 + $0xafc] ss:$28 sps:$4 sm:$0xff]   ;;  %v7500_v11 = vld [vmem:[%s10489_s7 + $0xaf0] ss:$28 sps:$4 sm:$0xff]  }
 0x360   :  { %5563 = vmatprep.subr.bf16.mxu1 %v7460_v12  ;;  %5727 = vmatprep.subr.bf16.mxu0 %v7463_v15  ;;  %v7503_v12 = vld [vmem:[%s10489_s7 + $0xaf8] ss:$28 sps:$4 sm:$0xff]   ;;  %v7508_v15 = vld [vmem:[%s10489_s7 + $0xb2c] ss:$28 sps:$4 sm:$0xff]  }
 0x363   :  { %5564 = vmatpush1.bf16.msra.mxu1 %v7458_v18  ;;  %5728 = vmatpush1.bf16.msra.mxu0 %v7461_v8  ;;  %v7511_v18 = vld [vmem:[%s10489_s7 + $0xb34] ss:$28 sps:$4 sm:$0xff]   ;;  %v7506_v8 = vld [vmem:[%s10489_s7 + $0xb28] ss:$28 sps:$4 sm:$0xff]  }
 0x364   :  { %5565 = vmatprep.subr.bf16.mxu1 %v7466_v9  ;;  %5729 = vmatprep.subr.bf16.mxu0 %v7469_v10  ;;  %v7509_v9 = vld [vmem:[%s10489_s7 + $0xb30] ss:$28 sps:$4 sm:$0xff]   ;;  %v7514_v10 = vld [vmem:[%s10489_s7 + $0xb64] ss:$28 sps:$4 sm:$0xff]  }
 0x367   :  { %5566 = vmatpush1.bf16.msra.mxu1 %v7464_v13  ;;  %5730 = vmatpush1.bf16.msra.mxu0 %v7467_v16  ;;  %v7517_v13 = vld [vmem:[%s10489_s7 + $0xb6c] ss:$28 sps:$4 sm:$0xff]   ;;  %v7512_v16 = vld [vmem:[%s10489_s7 + $0xb60] ss:$28 sps:$4 sm:$0xff]  }
 0x368   :  { %5567 = vmatprep.subr.bf16.mxu1 %v7472_v59  ;;  %5731 = vmatprep.subr.bf16.mxu0 %v7475_v17  ;;  %v7515_v59 = vld [vmem:[%s10489_s7 + $0xb68] ss:$28 sps:$4 sm:$0xff]   ;;  %v7520_v17 = vld [vmem:[%s10489_s7 + $0xb9c] ss:$28 sps:$4 sm:$0xff]  }
 0x36b   :  { %5568 = vmatpush1.bf16.msra.mxu1 %v7470_v21  ;;  %5732 = vmatpush1.bf16.msra.mxu0 %v7473_v22  ;;  %v7523_v21 = vld [vmem:[%s10489_s7 + $0xba4] ss:$28 sps:$4 sm:$0xff]   ;;  %v7518_v22 = vld [vmem:[%s10489_s7 + $0xb98] ss:$28 sps:$4 sm:$0xff]  }
 0x36c   :  { %5569 = vmatprep.subr.bf16.mxu1 %v7478_v27  ;;  %5733 = vmatprep.subr.bf16.mxu0 %v7481_v28  ;;  %v7521_v27 = vld [vmem:[%s10489_s7 + $0xba0] ss:$28 sps:$4 sm:$0xff]   ;;  %v7526_v28 = vld [vmem:[%s10489_s7 + $0xbd4] ss:$28 sps:$4 sm:$0xff]  }
 0x36d   :  { %v2501_v38 = vpop.f32.mrb[4].mxu1 }
 0x36e   :  { %v7016_v39 = vadd.f32 %v2501_v38, %v961_v30  ;;  %v9635_v41 = vpop.f32.mrb[16].mxu0  ;;  %v2503_v0 = vpop.f32.mrb[5].mxu1  ;;  %v7524_v30 = vld [vmem:[%s10489_s7 + $0xbd0] ss:$28 sps:$4 sm:$0xff]  }
 0x36f   :  { %v7017_v44 = vadd.f32 %v2503_v0, %v965_v33  ;;  %v2585_v45 = vpop.f32.mrb[17].mxu0  ;;  %5570 = vmatpush1.bf16.msra.mxu1 %v7476_v31  ;;  %5734 = vmatpush1.bf16.msra.mxu0 %v7479_v32  ;;  %v2505_v46 = vpop.f32.mrb[6].mxu1  ;;  %v7527_v31 = vld [vmem:[%s10489_s7 + $0xbd8] ss:$28 sps:$4 sm:$0xff]   ;;  %v7532_v32 = vld [vmem:[%s10489_s7 + $0xc0c] ss:$28 sps:$4 sm:$0xff]  }
 0x370   :  { %v2594_v51 = vmax.f32 %v7016_v39, 0.0  ;;  %v7019_v52 = vadd.f32 %v2585_v45, %v973_v34  ;;  %v2587_v54 = vpop.f32.mrb[18].mxu0  ;;  %v2506_v56 = vpop.f32.mrb[7].mxu1  ;;  %5571 = vmatprep.subr.bf16.mxu1 %v7484_v36  ;;  %5735 = vmatprep.subr.bf16.mxu0 %v7487_v37  ;;  %v7535_v33 = vld [vmem:[%s10489_s7 + $0xc14] ss:$28 sps:$4 sm:$0xff]  }
 0x371   :  { %v2595_v57 = vmax.f32 %v7017_v44, 0.0  ;;  %v2588_v58 = vpop.f32.mrb[19].mxu0  ;;  %v7530_v34 = vld [vmem:[%s10489_s7 + $0xc08] ss:$28 sps:$4 sm:$0xff]   ;;  %v7533_v36 = vld [vmem:[%s10489_s7 + $0xc10] ss:$28 sps:$4 sm:$0xff]  }
 0x372   :  { %v2597_v1 = vmax.f32 %v7019_v52, 0.0  ;;  %v9657_v62 = vpack.c.bf16 %v2594_v51, %v2594_v51  ;;  %v7538_v37 = vld [vmem:[%s10489_s7 + $0xc44] ss:$28 sps:$4 sm:$0xff]   ;;  %v7541_v38 = vld [vmem:[%s10489_s7 + $0xc4c] ss:$28 sps:$4 sm:$0xff]  }
 0x373   :  { %v9649_v60 = vpack.c.bf16 %v2595_v57, %v2595_v57  ;;  %5572 = vmatpush1.bf16.msra.mxu1 %v7482_v42  ;;  %5736 = vmatpush1.bf16.msra.mxu0 %v7485_v47  ;;  %v7536_v39 = vld [vmem:[%s10489_s7 + $0xc40] ss:$28 sps:$4 sm:$0xff]   ;;  %v7539_v0 = vld [vmem:[%s10489_s7 + $0xc48] ss:$28 sps:$4 sm:$0xff]   ;;  %v7542_v45 = vld [vmem:[%s10489_s7 + $0xc78] ss:$28 sps:$4 sm:$0xff]  }
 0x374   :  { %5582 = vmatprep.subr.bf16.mxu1 %v7490_v48  ;;  %5746 = vmatprep.subr.bf16.mxu0 %v7493_v25  ;;  %v9667_v3 = vpack.c.bf16 %v2597_v1, %v2597_v1  ;;  %v7544_v42 = vld [vmem:[%s10489_s7 + $0xc7c] ss:$28 sps:$4 sm:$0xff]   ;;  %v7547_v44 = vld [vmem:[%s10489_s7 + $0xc84] ss:$28 sps:$4 sm:$0xff]   ;;  %v7550_v47 = vld [vmem:[%s10489_s7 + $0xcb4] ss:$28 sps:$4 sm:$0xff]  }
 0x375   :  { %5573 = vmatprep.mubr.bf16.mxu1 %v9649_v60  ;;  %5737 = vmatprep.mubr.bf16.mxu0 %v9649_v60  ;;  %v7545_v46 = vld [vmem:[%s10489_s7 + $0xc80] ss:$28 sps:$4 sm:$0xff]   ;;  %v7548_v51 = vld [vmem:[%s10489_s7 + $0xcb0] ss:$28 sps:$4 sm:$0xff]   ;;  %v7551_v52 = vld [vmem:[%s10489_s7 + $0xcb8] ss:$28 sps:$4 sm:$0xff]  }
 0x376   :  { %5574 = vmatmul.mubr.bf16.vlgmr.msra.gmra.mrb[8].mxu1 %v9657_v62  ;;  %5738 = vmatmul.mubr.bf16.vlgmr.msra.gmra.mrb[20].mxu0 %v9657_v62  ;;  %v7553_v48 = vld [vmem:[%s10489_s7 + $0xcbc] ss:$28 sps:$4 sm:$0xff]   ;;  %v7556_v54 = vld [vmem:[%s10489_s7 + $0xcec] ss:$28 sps:$4 sm:$0xff]   ;;  %v7559_v56 = vld [vmem:[%s10489_s7 + $0xcf4] ss:$28 sps:$4 sm:$0xff]  }
 0x377   :  { %5583 = vmatpush1.bf16.msra.mxu1 %v7488_v23  ;;  %5747 = vmatpush1.bf16.msra.mxu0 %v7491_v61  ;;  %v7554_v25 = vld [vmem:[%s10489_s7 + $0xce8] ss:$28 sps:$4 sm:$0xff]   ;;  %v7557_v57 = vld [vmem:[%s10489_s7 + $0xcf0] ss:$28 sps:$4 sm:$0xff]   ;;  %v7560_v23 = vld [vmem:[%s10489_s7 + $0xd20] ss:$28 sps:$4 sm:$0xff]  }
 0x378   :  { %5614 = vmatprep.mubr.bf16.mxu1 %v9667_v3  ;;  %5778 = vmatprep.mubr.bf16.mxu0 %v9667_v3  ;;  %v7562_v58 = vld [vmem:[%s10489_s7 + $0xd24] ss:$28 sps:$4 sm:$0xff]   ;;  %v7565_v1 = vld [vmem:[%s10489_s7 + $0xd2c] ss:$28 sps:$4 sm:$0xff]  }
 0x379   :  { %5584 = vmatprep.subr.bf16.mxu1 %v7496_v63  ;;  %5748 = vmatprep.subr.bf16.mxu0 %v7499_v2  ;;  %v7563_v61 = vld [vmem:[%s10489_s7 + $0xd28] ss:$28 sps:$4 sm:$0xff]   ;;  %v968_v63 = vsub.s32 6, %v8152_v35  ;;  %v7568_v2 = vld [vmem:[%s10489_s7 + $0xd5c] ss:$28 sps:$4 sm:$0xff]  }
 0x37b   :  { %5585 = vmatpush1.bf16.msra.mxu1 %v7494_v4  ;;  %5749 = vmatpush1.bf16.msra.mxu0 %v7497_v5  ;;  %v7571_v4 = vld [vmem:[%s10489_s7 + $0xd64] ss:$28 sps:$4 sm:$0xff]   ;;  %v7566_v5 = vld [vmem:[%s10489_s7 + $0xd58] ss:$28 sps:$4 sm:$0xff]  }
 0x37c   :  { %5586 = vmatprep.subr.bf16.mxu1 %v7502_v6  ;;  %5750 = vmatprep.subr.bf16.mxu0 %v7505_v7  ;;  %v7569_v6 = vld [vmem:[%s10489_s7 + $0xd60] ss:$28 sps:$4 sm:$0xff]   ;;  %v969_v7 = vrot.slane %v9224_v55, %v968_v63  ;;  %v7575_v55 = vld [vmem:[%s10489_s7 + $0xd98] ss:$28 sps:$4 sm:$0xff]  }
 0x37f   :  { %5587 = vmatpush1.bf16.msra.mxu1 %v7500_v11  ;;  %5751 = vmatpush1.bf16.msra.mxu0 %v7503_v12  ;;  %v7574_v11 = vld [vmem:[%s10489_s7 + $0xd94] ss:$28 sps:$4 sm:$0xff]   ;;  %v7577_v12 = vld [vmem:[%s10489_s7 + $0xd9c] ss:$28 sps:$4 sm:$0xff]  }
 0x380   :  { %5588 = vmatprep.subr.bf16.mxu1 %v7508_v15  ;;  %5752 = vmatprep.subr.bf16.mxu0 %v7511_v18  ;;  %v7572_v15 = vld [vmem:[%s10489_s7 + $0xd90] ss:$28 sps:$4 sm:$0xff]   ;;  %v7018_v18 = vadd.f32 %v9635_v41, %v969_v7  ;;  %v7629_v7 = vld [vmem:[%s10489_s7 + $0x208] ss:$28 sps:$4 sm:$0xff]  }
 0x381   :  { %v7581_v41 = vld [vmem:[%s10489_s7 + $0xdd0] ss:$28 sps:$4 sm:$0xff]  }
 0x383   :  { %5589 = vmatpush1.bf16.msra.mxu1 %v7506_v8  ;;  %5753 = vmatpush1.bf16.msra.mxu0 %v7509_v9  ;;  %v7580_v8 = vld [vmem:[%s10489_s7 + $0xdcc] ss:$28 sps:$4 sm:$0xff]   ;;  %v7583_v9 = vld [vmem:[%s10489_s7 + $0xdd4] ss:$28 sps:$4 sm:$0xff]  }
 0x384   :  { %5590 = vmatprep.subr.bf16.mxu1 %v7514_v10  ;;  %5754 = vmatprep.subr.bf16.mxu0 %v7517_v13  ;;  %v7578_v10 = vld [vmem:[%s10489_s7 + $0xdc8] ss:$28 sps:$4 sm:$0xff]   ;;  %v2596_v13 = vmax.f32 %v7018_v18, 0.0 }
 0x385   :  { %v7638_v18 = vld [vmem:[%s10489_s7 + $0x408] ss:$28 sps:$4 sm:$0xff]  }
 0x387   :  { %5591 = vmatpush1.bf16.msra.mxu1 %v7512_v16  ;;  %5755 = vmatpush1.bf16.msra.mxu0 %v7515_v59  ;;  %v7586_v16 = vld [vmem:[%s10489_s7 + $0x14] ss:$28 sps:$4 sm:$0xff]  }
 0x388   :  { %5592 = vmatprep.subr.bf16.mxu1 %v7520_v17  ;;  %5756 = vmatprep.subr.bf16.mxu0 %v7523_v21  ;;  %v7587_v59 = vld [vmem:[%s10489_s7 + $0x1d8] ss:$28 sps:$4 sm:$0xff]   ;;  %v7584_v17 = vld [vmem:[%s10489_s7 + $0x10] ss:$28 sps:$4 sm:$0xff]   ;;  %v9861_v21 = vpack.c.bf16 %v2596_v13, %v2596_v13 }
 0x389   :  { %v7646_v13 = vld [vmem:[%s10489_s7 + $0x2b4] ss:$28 sps:$4 sm:$0xff]  }
 0x38b   :  { %5593 = vmatpush1.bf16.msra.mxu1 %v7518_v22  ;;  %5757 = vmatpush1.bf16.msra.mxu0 %v7521_v27  ;;  %v7588_v22 = vld [vmem:[%s10489_s7 + $0x18] ss:$28 sps:$4 sm:$0xff]   ;;  %v7591_v27 = vld [vmem:[%s10489_s7 + $0x4c] ss:$28 sps:$4 sm:$0xff]  }
 0x38c   :  { %5594 = vmatprep.subr.bf16.mxu1 %v7526_v28  ;;  %5758 = vmatprep.subr.bf16.mxu0 %v7529_v29  ;;  %v7592_v28 = vld [vmem:[%s10489_s7 + $0x210] ss:$28 sps:$4 sm:$0xff]   ;;  %v7589_v29 = vld [vmem:[%s10489_s7 + $0x48] ss:$28 sps:$4 sm:$0xff]  }
 0x38f   :  { %5595 = vmatpush1.bf16.msra.mxu1 %v7524_v30  ;;  %5759 = vmatpush1.bf16.msra.mxu0 %v7527_v31  ;;  %v7593_v30 = vld [vmem:[%s10489_s7 + $0x50] ss:$28 sps:$4 sm:$0xff]   ;;  %v7596_v31 = vld [vmem:[%s10489_s7 + $0x84] ss:$28 sps:$4 sm:$0xff]  }
 0x390   :  { %5596 = vmatprep.subr.bf16.mxu1 %v7532_v32  ;;  %5760 = vmatprep.subr.bf16.mxu0 %v7535_v33  ;;  %v7597_v32 = vld [vmem:[%s10489_s7 + $0x248] ss:$28 sps:$4 sm:$0xff]   ;;  %v7594_v33 = vld [vmem:[%s10489_s7 + $0x80] ss:$28 sps:$4 sm:$0xff]  }
 0x393   :  { %5597 = vmatpush1.bf16.msra.mxu1 %v7530_v34  ;;  %5761 = vmatpush1.bf16.msra.mxu0 %v7533_v36  ;;  %v7601_v34 = vld [vmem:[%s10489_s7 + $0xbc] ss:$28 sps:$4 sm:$0xff]  }
 0x394   :  { %5598 = vmatprep.subr.bf16.mxu1 %v7538_v37  ;;  %5762 = vmatprep.subr.bf16.mxu0 %v7541_v38  ;;  %v7602_v36 = vld [vmem:[%s10489_s7 + $0x280] ss:$28 sps:$4 sm:$0xff]   ;;  %v7599_v37 = vld [vmem:[%s10489_s7 + $0xb8] ss:$28 sps:$4 sm:$0xff]  }
 0x395   :  { %v7603_v38 = vld [vmem:[%s10489_s7 + $0xc0] ss:$28 sps:$4 sm:$0xff]  }
 0x397   :  { %5599 = vmatpush1.bf16.msra.mxu1 %v7536_v39  ;;  %5763 = vmatpush1.bf16.msra.mxu0 %v7539_v0  ;;  %v7606_v39 = vld [vmem:[%s10489_s7 + $0xf4] ss:$28 sps:$4 sm:$0xff]  }
 0x398   :  { %5600 = vmatprep.subr.bf16.mxu1 %v7544_v42  ;;  %5764 = vmatprep.subr.bf16.mxu0 %v7547_v44  ;;  %v7607_v0 = vld [vmem:[%s10489_s7 + $0x2b8] ss:$28 sps:$4 sm:$0xff]   ;;  %v7604_v42 = vld [vmem:[%s10489_s7 + $0xf0] ss:$28 sps:$4 sm:$0xff]  }
 0x399   :  { %v7608_v44 = vld [vmem:[%s10489_s7 + $0xf8] ss:$28 sps:$4 sm:$0xff]  }
 0x39b   :  { %5601 = vmatpush1.bf16.msra.mxu1 %v7542_v45  ;;  %5765 = vmatpush1.bf16.msra.mxu0 %v7545_v46  ;;  %v7611_v45 = vld [vmem:[%s10489_s7 + $0x12c] ss:$28 sps:$4 sm:$0xff]  }
 0x39c   :  { %5602 = vmatprep.subr.bf16.mxu1 %v7550_v47  ;;  %5766 = vmatprep.subr.bf16.mxu0 %v7553_v48  ;;  %v7612_v46 = vld [vmem:[%s10489_s7 + $0x2f0] ss:$28 sps:$4 sm:$0xff]   ;;  %v7609_v47 = vld [vmem:[%s10489_s7 + $0x128] ss:$28 sps:$4 sm:$0xff]  }
 0x39d   :  { %v7613_v48 = vld [vmem:[%s10489_s7 + $0x130] ss:$28 sps:$4 sm:$0xff]  }
 0x39f   :  { %5603 = vmatpush1.bf16.msra.mxu1 %v7548_v51  ;;  %5767 = vmatpush1.bf16.msra.mxu0 %v7551_v52  ;;  %v7616_v51 = vld [vmem:[%s10489_s7 + $0x164] ss:$28 sps:$4 sm:$0xff]  }
 0x3a0   :  { %5604 = vmatprep.subr.bf16.mxu1 %v7556_v54  ;;  %5768 = vmatprep.subr.bf16.mxu0 %v7559_v56  ;;  %v7617_v52 = vld [vmem:[%s10489_s7 + $0x328] ss:$28 sps:$4 sm:$0xff]   ;;  %v7614_v54 = vld [vmem:[%s10489_s7 + $0x160] ss:$28 sps:$4 sm:$0xff]  }
 0x3a1   :  { %v7618_v56 = vld [vmem:[%s10489_s7 + $0x168] ss:$28 sps:$4 sm:$0xff]  }
 0x3a3   :  { %5605 = vmatpush1.bf16.msra.mxu1 %v7554_v25  ;;  %5769 = vmatpush1.bf16.msra.mxu0 %v7557_v57  ;;  %v7621_v25 = vld [vmem:[%s10489_s7 + $0x19c] ss:$28 sps:$4 sm:$0xff]  }
 0x3a4   :  { %5606 = vmatprep.subr.bf16.mxu1 %v7562_v58  ;;  %5770 = vmatprep.subr.bf16.mxu0 %v7565_v1  ;;  %v7622_v57 = vld [vmem:[%s10489_s7 + $0x360] ss:$28 sps:$4 sm:$0xff]   ;;  %v7619_v58 = vld [vmem:[%s10489_s7 + $0x198] ss:$28 sps:$4 sm:$0xff]  }
 0x3a5   :  { %v7623_v1 = vld [vmem:[%s10489_s7 + $0x1a0] ss:$28 sps:$4 sm:$0xff]  }
 0x3a7   :  { %5607 = vmatpush1.bf16.msra.mxu1 %v7560_v23  ;;  %5771 = vmatpush1.bf16.msra.mxu0 %v7563_v61  ;;  %v7626_v23 = vld [vmem:[%s10489_s7 + $0x1d4] ss:$28 sps:$4 sm:$0xff]  }
 0x3a8   :  { %5608 = vmatprep.subr.bf16.mxu1 %v7568_v2  ;;  %5772 = vmatprep.subr.bf16.mxu0 %v7571_v4  ;;  %v7627_v61 = vld [vmem:[%s10489_s7 + $0x558] ss:$28 sps:$4 sm:$0xff]   ;;  %v7624_v2 = vld [vmem:[%s10489_s7 + $0x1d0] ss:$28 sps:$4 sm:$0xff]  }
 0x3a9   :  { %v7628_v4 = vld [vmem:[%s10489_s7 + $0x398] ss:$28 sps:$4 sm:$0xff]  }
 0x3ab   :  { %5609 = vmatpush1.bf16.msra.mxu1 %v7566_v5  ;;  %5773 = vmatpush1.bf16.msra.mxu0 %v7569_v6  ;;  %v7631_v5 = vld [vmem:[%s10489_s7 + $0x20c] ss:$28 sps:$4 sm:$0xff]  }
 0x3ac   :  { %5610 = vmatprep.subr.bf16.mxu1 %v7574_v11  ;;  %5774 = vmatprep.subr.bf16.mxu0 %v7577_v12  ;;  %v7632_v6 = vld [vmem:[%s10489_s7 + $0x590] ss:$28 sps:$4 sm:$0xff]   ;;  %v7636_v12 = vld [vmem:[%s10489_s7 + $0x244] ss:$28 sps:$4 sm:$0xff]  }
 0x3ad   :  { %v7633_v11 = vld [vmem:[%s10489_s7 + $0x3d0] ss:$28 sps:$4 sm:$0xff]  }
 0x3af   :  { %5611 = vmatpush1.bf16.msra.mxu1 %v7572_v15  ;;  %5775 = vmatpush1.bf16.msra.mxu0 %v7575_v55  ;;  %v7637_v15 = vld [vmem:[%s10489_s7 + $0x5c8] ss:$28 sps:$4 sm:$0xff]   ;;  %v7634_v55 = vld [vmem:[%s10489_s7 + $0x240] ss:$28 sps:$4 sm:$0xff]  }
 0x3b0   :  { %5612 = vmatprep.subr.bf16.mxu1 %v7580_v8  ;;  %5776 = vmatprep.subr.bf16.mxu0 %v7583_v9  ;;  %v7641_v8 = vld [vmem:[%s10489_s7 + $0x27c] ss:$28 sps:$4 sm:$0xff]  }
 0x3b1   :  { %v7642_v9 = vld [vmem:[%s10489_s7 + $0x600] ss:$28 sps:$4 sm:$0xff]  }
 0x3b3   :  { %5613 = vmatpush1.bf16.msra.mxu1 %v7578_v10  ;;  %5777 = vmatpush1.bf16.msra.mxu0 %v7581_v41  ;;  %v7639_v10 = vld [vmem:[%s10489_s7 + $0x278] ss:$28 sps:$4 sm:$0xff]   ;;  %v7643_v41 = vld [vmem:[%s10489_s7 + $0x440] ss:$28 sps:$4 sm:$0xff]  }
 0x3b4   :  { %5787 = vmatprep.subr.bf16.mxu1 %v7586_v16  ;;  %6924 = vmatprep.subr.bf16.mxu0 %v7587_v59  ;;  %v7647_v16 = vld [vmem:[%s10489_s7 + $0x638] ss:$28 sps:$4 sm:$0xff]   ;;  %v7644_v59 = vld [vmem:[%s10489_s7 + $0x2b0] ss:$28 sps:$4 sm:$0xff]  }
 0x3b6   :  { %5615 = vmatmul.mubr.bf16.vlgmr.msra.gmra.mrb[8].mxu1 %v9861_v21  ;;  %5779 = vmatmul.mubr.bf16.vlgmr.msra.gmra.mrb[20].mxu0 %v9861_v21 }
 0x3b7   :  { %5788 = vmatpush1.bf16.msra.mxu1 %v7584_v17  ;;  %5819 = vmatprep.mubr.bf16.mxu1 %v9234_v49  ;;  %v7648_v17 = vld [vmem:[%s10489_s7 + $0x478] ss:$28 sps:$4 sm:$0xff]  }
 0x3b8   :  { %6925 = vmatpush3.bf16.msra.mxu0 %v7588_v22  ;;  %5983 = vmatprep.mubr.bf16.mxu0 %v9234_v49  ;;  %v7598_v49 = vld [vmem:[%s10489_s7 + $0x88] ss:$28 sps:$4 sm:$0xff]  }
 0x3b9   :  { %5789 = vmatprep.subr.bf16.mxu1 %v7591_v27  ;;  %6926 = vmatprep.subr.bf16.mxu0 %v7592_v28  ;;  %v7651_v22 = vld [vmem:[%s10489_s7 + $0x2ec] ss:$28 sps:$4 sm:$0xff]  }
 0x3ba   :  { %v7652_v27 = vld [vmem:[%s10489_s7 + $0x670] ss:$28 sps:$4 sm:$0xff]   ;;  %v7649_v28 = vld [vmem:[%s10489_s7 + $0x2e8] ss:$28 sps:$4 sm:$0xff]  }
 0x3bb   :  { %5790 = vmatpush1.bf16.msra.mxu1 %v7589_v29  ;;  %v7653_v29 = vld [vmem:[%s10489_s7 + $0x4b0] ss:$28 sps:$4 sm:$0xff]  }
 0x3bc   :  { %6927 = vmatpush3.bf16.msra.mxu0 %v7593_v30  ;;  %5791 = vmatprep.subr.bf16.mxu1 %v7596_v31  ;;  %v7656_v30 = vld [vmem:[%s10489_s7 + $0x324] ss:$28 sps:$4 sm:$0xff]  }
 0x3bd   :  { %6928 = vmatprep.subr.bf16.mxu0 %v7597_v32  ;;  %v7657_v31 = vld [vmem:[%s10489_s7 + $0x6a8] ss:$28 sps:$4 sm:$0xff]   ;;  %v7654_v32 = vld [vmem:[%s10489_s7 + $0x320] ss:$28 sps:$4 sm:$0xff]  }
 0x3bf   :  { %5792 = vmatpush1.bf16.msra.mxu1 %v7594_v33  ;;  %v7658_v33 = vld [vmem:[%s10489_s7 + $0x4e8] ss:$28 sps:$4 sm:$0xff]  }
 0x3c0   :  { %6929 = vmatpush3.bf16.msra.mxu0 %v7598_v49  ;;  %5793 = vmatprep.subr.bf16.mxu1 %v7601_v34  ;;  %v7661_v49 = vld [vmem:[%s10489_s7 + $0x35c] ss:$28 sps:$4 sm:$0xff]  }
 0x3c1   :  { %6930 = vmatprep.subr.bf16.mxu0 %v7602_v36  ;;  %v7662_v34 = vld [vmem:[%s10489_s7 + $0x6e0] ss:$28 sps:$4 sm:$0xff]   ;;  %v7659_v36 = vld [vmem:[%s10489_s7 + $0x358] ss:$28 sps:$4 sm:$0xff]  }
 0x3c3   :  { %5794 = vmatpush1.bf16.msra.mxu1 %v7599_v37  ;;  %v7663_v37 = vld [vmem:[%s10489_s7 + $0x520] ss:$28 sps:$4 sm:$0xff]  }
 0x3c4   :  { %6931 = vmatpush3.bf16.msra.mxu0 %v7603_v38  ;;  %5795 = vmatprep.subr.bf16.mxu1 %v7606_v39  ;;  %v7666_v38 = vld [vmem:[%s10489_s7 + $0x394] ss:$28 sps:$4 sm:$0xff]  }
 0x3c5   :  { %6932 = vmatprep.subr.bf16.mxu0 %v7607_v0  ;;  %v7667_v39 = vld [vmem:[%s10489_s7 + $0x8d8] ss:$28 sps:$4 sm:$0xff]   ;;  %v7664_v0 = vld [vmem:[%s10489_s7 + $0x390] ss:$28 sps:$4 sm:$0xff]  }
 0x3c7   :  { %5796 = vmatpush1.bf16.msra.mxu1 %v7604_v42  ;;  %v7668_v42 = vld [vmem:[%s10489_s7 + $0x718] ss:$28 sps:$4 sm:$0xff]  }
 0x3c8   :  { %6933 = vmatpush3.bf16.msra.mxu0 %v7608_v44  ;;  %5797 = vmatprep.subr.bf16.mxu1 %v7611_v45  ;;  %v7671_v44 = vld [vmem:[%s10489_s7 + $0x3cc] ss:$28 sps:$4 sm:$0xff]  }
 0x3c9   :  { %6934 = vmatprep.subr.bf16.mxu0 %v7612_v46  ;;  %v7672_v45 = vld [vmem:[%s10489_s7 + $0x910] ss:$28 sps:$4 sm:$0xff]   ;;  %v7669_v46 = vld [vmem:[%s10489_s7 + $0x3c8] ss:$28 sps:$4 sm:$0xff]  }
 0x3cb   :  { %5798 = vmatpush1.bf16.msra.mxu1 %v7609_v47  ;;  %v7673_v47 = vld [vmem:[%s10489_s7 + $0x750] ss:$28 sps:$4 sm:$0xff]  }
 0x3cc   :  { %6935 = vmatpush3.bf16.msra.mxu0 %v7613_v48  ;;  %5799 = vmatprep.subr.bf16.mxu1 %v7616_v51  ;;  %v7677_v48 = vld [vmem:[%s10489_s7 + $0x948] ss:$28 sps:$4 sm:$0xff]  }
 0x3cd   :  { %6936 = vmatprep.subr.bf16.mxu0 %v7617_v52  ;;  %v7678_v51 = vld [vmem:[%s10489_s7 + $0x788] ss:$28 sps:$4 sm:$0xff]   ;;  %v7681_v52 = vld [vmem:[%s10489_s7 + $0x43c] ss:$28 sps:$4 sm:$0xff]  }
 0x3cf   :  { %5800 = vmatpush1.bf16.msra.mxu1 %v7614_v54  ;;  %v7682_v54 = vld [vmem:[%s10489_s7 + $0x980] ss:$28 sps:$4 sm:$0xff]  }
 0x3d0   :  { %6937 = vmatpush3.bf16.msra.mxu0 %v7618_v56  ;;  %5801 = vmatprep.subr.bf16.mxu1 %v7621_v25  ;;  %v7679_v56 = vld [vmem:[%s10489_s7 + $0x438] ss:$28 sps:$4 sm:$0xff]   ;;  %v7683_v25 = vld [vmem:[%s10489_s7 + $0x7c0] ss:$28 sps:$4 sm:$0xff]  }
 0x3d1   :  { %6938 = vmatprep.subr.bf16.mxu0 %v7622_v57  ;;  %v7686_v57 = vld [vmem:[%s10489_s7 + $0x474] ss:$28 sps:$4 sm:$0xff]  }
 0x3d3   :  { %5802 = vmatpush1.bf16.msra.mxu1 %v7619_v58  ;;  %v7687_v58 = vld [vmem:[%s10489_s7 + $0x9b8] ss:$28 sps:$4 sm:$0xff]  }
 0x3d4   :  { %6939 = vmatpush3.bf16.msra.mxu0 %v7623_v1  ;;  %5803 = vmatprep.subr.bf16.mxu1 %v7626_v23  ;;  %v7684_v1 = vld [vmem:[%s10489_s7 + $0x470] ss:$28 sps:$4 sm:$0xff]   ;;  %v7688_v23 = vld [vmem:[%s10489_s7 + $0x7f8] ss:$28 sps:$4 sm:$0xff]  }
 0x3d5   :  { %6946 = vmatprep.subr.bf16.mxu0 %v7627_v61  ;;  %v7691_v61 = vld [vmem:[%s10489_s7 + $0x4ac] ss:$28 sps:$4 sm:$0xff]  }
 0x3d7   :  { %5984 = vmatmul.mubr.bf16.vlgmr.msra.gmra.mrb[24].mxu0 %v9242_v14  ;;  %5804 = vmatpush1.bf16.msra.mxu1 %v7624_v2  ;;  %v7692_v2 = vld [vmem:[%s10489_s7 + $0x9f0] ss:$28 sps:$4 sm:$0xff]  }
 0x3d8   :  { %6947 = vmatpush3.bf16.msra.mxu0 %v7628_v4  ;;  %6023 = vmatprep.mubr.bf16.mxu0 %v9252_v19  ;;  %v7689_v4 = vld [vmem:[%s10489_s7 + $0x4a8] ss:$28 sps:$4 sm:$0xff]  }
 0x3d9   :  { %5805 = vmatprep.subr.bf16.mxu1 %v7631_v5  ;;  %6948 = vmatprep.subr.bf16.mxu0 %v7632_v6  ;;  %v7693_v5 = vld [vmem:[%s10489_s7 + $0x830] ss:$28 sps:$4 sm:$0xff]   ;;  %v7696_v6 = vld [vmem:[%s10489_s7 + $0x4e4] ss:$28 sps:$4 sm:$0xff]  }
 0x3db   :  { %5806 = vmatpush1.bf16.msra.mxu1 %v7629_v7  ;;  %v7697_v7 = vld [vmem:[%s10489_s7 + $0xa28] ss:$28 sps:$4 sm:$0xff]  }
 0x3dc   :  { %6949 = vmatpush3.bf16.msra.mxu0 %v7633_v11  ;;  %5807 = vmatprep.subr.bf16.mxu1 %v7636_v12  ;;  %v7694_v11 = vld [vmem:[%s10489_s7 + $0x4e0] ss:$28 sps:$4 sm:$0xff]   ;;  %v7698_v12 = vld [vmem:[%s10489_s7 + $0x868] ss:$28 sps:$4 sm:$0xff]  }
 0x3dd   :  { %6950 = vmatprep.subr.bf16.mxu0 %v7637_v15  ;;  %v7701_v15 = vld [vmem:[%s10489_s7 + $0x51c] ss:$28 sps:$4 sm:$0xff]  }
 0x3df   :  { %5808 = vmatpush1.bf16.msra.mxu1 %v7634_v55  ;;  %v7702_v55 = vld [vmem:[%s10489_s7 + $0xa60] ss:$28 sps:$4 sm:$0xff]  }
 0x3e0   :  { %6951 = vmatpush3.bf16.msra.mxu0 %v7638_v18  ;;  %5809 = vmatprep.subr.bf16.mxu1 %v7641_v8  ;;  %v7699_v18 = vld [vmem:[%s10489_s7 + $0x518] ss:$28 sps:$4 sm:$0xff]   ;;  %v7703_v8 = vld [vmem:[%s10489_s7 + $0x8a0] ss:$28 sps:$4 sm:$0xff]  }
 0x3e1   :  { %6952 = vmatprep.subr.bf16.mxu0 %v7642_v9  ;;  %v7706_v9 = vld [vmem:[%s10489_s7 + $0x554] ss:$28 sps:$4 sm:$0xff]  }
 0x3e3   :  { %5810 = vmatpush1.bf16.msra.mxu1 %v7639_v10  ;;  %v7707_v10 = vld [vmem:[%s10489_s7 + $0xc58] ss:$28 sps:$4 sm:$0xff]  }
 0x3e4   :  { %6953 = vmatpush3.bf16.msra.mxu0 %v7643_v41  ;;  %5811 = vmatprep.subr.bf16.mxu1 %v7646_v13  ;;  %v7704_v41 = vld [vmem:[%s10489_s7 + $0x550] ss:$28 sps:$4 sm:$0xff]   ;;  %v7708_v13 = vld [vmem:[%s10489_s7 + $0xa98] ss:$28 sps:$4 sm:$0xff]  }
 0x3e5   :  { %6954 = vmatprep.subr.bf16.mxu0 %v7647_v16  ;;  %v7711_v16 = vld [vmem:[%s10489_s7 + $0x58c] ss:$28 sps:$4 sm:$0xff]  }
 0x3e7   :  { %5812 = vmatpush1.bf16.msra.mxu1 %v7644_v59  ;;  %v7712_v59 = vld [vmem:[%s10489_s7 + $0xc90] ss:$28 sps:$4 sm:$0xff]  }
 0x3e8   :  { %6955 = vmatpush3.bf16.msra.mxu0 %v7648_v17  ;;  %5813 = vmatprep.subr.bf16.mxu1 %v7651_v22  ;;  %v7709_v17 = vld [vmem:[%s10489_s7 + $0x588] ss:$28 sps:$4 sm:$0xff]   ;;  %v7713_v22 = vld [vmem:[%s10489_s7 + $0xad0] ss:$28 sps:$4 sm:$0xff]  }
 0x3e9   :  { %6956 = vmatprep.subr.bf16.mxu0 %v7652_v27  ;;  %v7716_v27 = vld [vmem:[%s10489_s7 + $0x5c4] ss:$28 sps:$4 sm:$0xff]  }
 0x3eb   :  { %5814 = vmatpush1.bf16.msra.mxu1 %v7649_v28  ;;  %v7717_v28 = vld [vmem:[%s10489_s7 + $0xcc8] ss:$28 sps:$4 sm:$0xff]  }
 0x3ec   :  { %6957 = vmatpush3.bf16.msra.mxu0 %v7653_v29  ;;  %5815 = vmatprep.subr.bf16.mxu1 %v7656_v30  ;;  %v7714_v29 = vld [vmem:[%s10489_s7 + $0x5c0] ss:$28 sps:$4 sm:$0xff]   ;;  %v7718_v30 = vld [vmem:[%s10489_s7 + $0xb08] ss:$28 sps:$4 sm:$0xff]  }
 0x3ed   :  { %6958 = vmatprep.subr.bf16.mxu0 %v7657_v31  ;;  %v7721_v31 = vld [vmem:[%s10489_s7 + $0x5fc] ss:$28 sps:$4 sm:$0xff]  }
 0x3ef   :  { %5816 = vmatpush1.bf16.msra.mxu1 %v7654_v32  ;;  %v7722_v32 = vld [vmem:[%s10489_s7 + $0xd00] ss:$28 sps:$4 sm:$0xff]  }
 0x3f0   :  { %6959 = vmatpush3.bf16.msra.mxu0 %v7658_v33  ;;  %5817 = vmatprep.subr.bf16.mxu1 %v7661_v49  ;;  %v7719_v33 = vld [vmem:[%s10489_s7 + $0x5f8] ss:$28 sps:$4 sm:$0xff]   ;;  %v7723_v49 = vld [vmem:[%s10489_s7 + $0xb40] ss:$28 sps:$4 sm:$0xff]  }
 0x3f1   :  { %6960 = vmatprep.subr.bf16.mxu0 %v7662_v34  ;;  %v7726_v34 = vld [vmem:[%s10489_s7 + $0x634] ss:$28 sps:$4 sm:$0xff]  }
 0x3f3   :  { %5818 = vmatpush1.bf16.msra.mxu1 %v7659_v36  ;;  %v7727_v36 = vld [vmem:[%s10489_s7 + $0xd38] ss:$28 sps:$4 sm:$0xff]  }
 0x3f4   :  { %6961 = vmatpush3.bf16.msra.mxu0 %v7663_v37  ;;  %5828 = vmatprep.subr.bf16.mxu1 %v7666_v38  ;;  %v7724_v37 = vld [vmem:[%s10489_s7 + $0x630] ss:$28 sps:$4 sm:$0xff]   ;;  %v7728_v38 = vld [vmem:[%s10489_s7 + $0xb78] ss:$28 sps:$4 sm:$0xff]  }
 0x3f5   :  { %6968 = vmatprep.subr.bf16.mxu0 %v7667_v39  ;;  %v7731_v39 = vld [vmem:[%s10489_s7 + $0x66c] ss:$28 sps:$4 sm:$0xff]  }
 0x3f6   :  { %5820 = vmatmul.mubr.bf16.vlgmr.msra.gmra.mrb[12].mxu1 %v9242_v14  ;;  %v7676_v14 = vld [vmem:[%s10489_s7 + $0x404] ss:$28 sps:$4 sm:$0xff]  }
 0x3f7   :  { %6024 = vmatmul.mubr.bf16.vlgmr.msra.gmra.mrb[28].mxu0 %v9447_v26  ;;  %5829 = vmatpush1.bf16.msra.mxu1 %v7664_v0  ;;  %v7732_v0 = vld [vmem:[%s10489_s7 + $0xd70] ss:$28 sps:$4 sm:$0xff]  }
 0x3f8   :  { %5860 = vmatprep.mubr.bf16.mxu1 %v9252_v19  ;;  %6969 = vmatpush3.bf16.msra.mxu0 %v7668_v42  ;;  %v7674_v19 = vld [vmem:[%s10489_s7 + $0x400] ss:$28 sps:$4 sm:$0xff]   ;;  %v7729_v42 = vld [vmem:[%s10489_s7 + $0x668] ss:$28 sps:$4 sm:$0xff]  }
 0x3f9   :  { %6063 = vmatprep.mubr.bf16.mxu0 %v9649_v60  ;;  %5830 = vmatprep.subr.bf16.mxu1 %v7671_v44  ;;  %v7733_v44 = vld [vmem:[%s10489_s7 + $0xbb0] ss:$28 sps:$4 sm:$0xff]  }
 0x3fa   :  { %6970 = vmatprep.subr.bf16.mxu0 %v7672_v45  ;;  %v7736_v45 = vld [vmem:[%s10489_s7 + $0x6a4] ss:$28 sps:$4 sm:$0xff]  }
 0x3fb   :  { %5831 = vmatpush1.bf16.msra.mxu1 %v7669_v46  ;;  %v7737_v46 = vld [vmem:[%s10489_s7 + $0xda8] ss:$28 sps:$4 sm:$0xff]  }
 0x3fc   :  { %6971 = vmatpush3.bf16.msra.mxu0 %v7673_v47  ;;  %5832 = vmatprep.subr.bf16.mxu1 %v7676_v14  ;;  %v7734_v47 = vld [vmem:[%s10489_s7 + $0x6a0] ss:$28 sps:$4 sm:$0xff]   ;;  %v7738_v14 = vld [vmem:[%s10489_s7 + $0xbe8] ss:$28 sps:$4 sm:$0xff]  }
 0x3fd   :  { %6972 = vmatprep.subr.bf16.mxu0 %v7677_v48  ;;  %v7741_v48 = vld [vmem:[%s10489_s7 + $0x6dc] ss:$28 sps:$4 sm:$0xff]  }
 0x3ff   :  { %5833 = vmatpush1.bf16.msra.mxu1 %v7674_v19  ;;  %v7742_v19 = vld [vmem:[%s10489_s7 + $0xde0] ss:$28 sps:$4 sm:$0xff]  }
 0x400   :  { %6973 = vmatpush3.bf16.msra.mxu0 %v7678_v51  ;;  %5834 = vmatprep.subr.bf16.mxu1 %v7681_v52  ;;  %v7739_v51 = vld [vmem:[%s10489_s7 + $0x6d8] ss:$28 sps:$4 sm:$0xff]   ;;  %v7743_v52 = vld [vmem:[%s10489_s7 + $0xc20] ss:$28 sps:$4 sm:$0xff]  }
 0x401   :  { %6974 = vmatprep.subr.bf16.mxu0 %v7682_v54  ;;  %v7746_v54 = vld [vmem:[%s10489_s7 + $0x714] ss:$28 sps:$4 sm:$0xff]  }
 0x403   :  { %5835 = vmatpush1.bf16.msra.mxu1 %v7679_v56  ;;  %v7744_v56 = vld [vmem:[%s10489_s7 + $0x710] ss:$28 sps:$4 sm:$0xff]  }
 0x404   :  { %6975 = vmatpush3.bf16.msra.mxu0 %v7683_v25  ;;  %5836 = vmatprep.subr.bf16.mxu1 %v7686_v57  ;;  %v7749_v25 = vld [vmem:[%s10489_s7 + $0x74c] ss:$28 sps:$4 sm:$0xff]  }
 0x405   :  { %6976 = vmatprep.subr.bf16.mxu0 %v7687_v58  ;;  %v7747_v57 = vld [vmem:[%s10489_s7 + $0x748] ss:$28 sps:$4 sm:$0xff]  }
 0x406   :  { %v7752_v58 = vld [vmem:[%s10489_s7 + $0x784] ss:$28 sps:$4 sm:$0xff]  }
 0x407   :  { %5837 = vmatpush1.bf16.msra.mxu1 %v7684_v1  ;;  %v7750_v1 = vld [vmem:[%s10489_s7 + $0x780] ss:$28 sps:$4 sm:$0xff]  }
 0x408   :  { %6977 = vmatpush3.bf16.msra.mxu0 %v7688_v23  ;;  %5838 = vmatprep.subr.bf16.mxu1 %v7691_v61  ;;  %v7758_v23 = vld [vmem:[%s10489_s7 + $0x7f4] ss:$28 sps:$4 sm:$0xff]  }
 0x409   :  { %6978 = vmatprep.subr.bf16.mxu0 %v7692_v2  ;;  %v7756_v61 = vld [vmem:[%s10489_s7 + $0x7f0] ss:$28 sps:$4 sm:$0xff]  }
 0x40a   :  { %v7761_v2 = vld [vmem:[%s10489_s7 + $0x82c] ss:$28 sps:$4 sm:$0xff]  }
 0x40b   :  { %5839 = vmatpush1.bf16.msra.mxu1 %v7689_v4  ;;  %v7759_v4 = vld [vmem:[%s10489_s7 + $0x828] ss:$28 sps:$4 sm:$0xff]  }
 0x40c   :  { %6979 = vmatpush3.bf16.msra.mxu0 %v7693_v5  ;;  %5840 = vmatprep.subr.bf16.mxu1 %v7696_v6  ;;  %v7764_v5 = vld [vmem:[%s10489_s7 + $0x864] ss:$28 sps:$4 sm:$0xff]  }
 0x40d   :  { %6980 = vmatprep.subr.bf16.mxu0 %v7697_v7  ;;  %v7762_v6 = vld [vmem:[%s10489_s7 + $0x860] ss:$28 sps:$4 sm:$0xff]  }
 0x40e   :  { %v7767_v7 = vld [vmem:[%s10489_s7 + $0x89c] ss:$28 sps:$4 sm:$0xff]  }
 0x40f   :  { %5841 = vmatpush1.bf16.msra.mxu1 %v7694_v11  ;;  %v7765_v11 = vld [vmem:[%s10489_s7 + $0x898] ss:$28 sps:$4 sm:$0xff]  }
 0x410   :  { %6981 = vmatpush3.bf16.msra.mxu0 %v7698_v12  ;;  %5842 = vmatprep.subr.bf16.mxu1 %v7701_v15  ;;  %v7770_v12 = vld [vmem:[%s10489_s7 + $0x8d4] ss:$28 sps:$4 sm:$0xff]  }
 0x411   :  { %6982 = vmatprep.subr.bf16.mxu0 %v7702_v55  ;;  %v7768_v15 = vld [vmem:[%s10489_s7 + $0x8d0] ss:$28 sps:$4 sm:$0xff]  }
 0x412   :  { %v7773_v55 = vld [vmem:[%s10489_s7 + $0x90c] ss:$28 sps:$4 sm:$0xff]  }
 0x413   :  { %5843 = vmatpush1.bf16.msra.mxu1 %v7699_v18  ;;  %v7771_v18 = vld [vmem:[%s10489_s7 + $0x908] ss:$28 sps:$4 sm:$0xff]  }
 0x414   :  { %6983 = vmatpush3.bf16.msra.mxu0 %v7703_v8  ;;  %5844 = vmatprep.subr.bf16.mxu1 %v7706_v9  ;;  %v7776_v8 = vld [vmem:[%s10489_s7 + $0x944] ss:$28 sps:$4 sm:$0xff]  }
 0x415   :  { %6990 = vmatprep.subr.bf16.mxu0 %v7707_v10  ;;  %v7774_v9 = vld [vmem:[%s10489_s7 + $0x940] ss:$28 sps:$4 sm:$0xff]  }
 0x416   :  { %v7779_v10 = vld [vmem:[%s10489_s7 + $0x97c] ss:$28 sps:$4 sm:$0xff]  }
 0x417   :  { %6064 = vmatmul.mubr.bf16.vlgmr.msra.gmra.mrb[32].mxu0 %v9657_v62  ;;  %5845 = vmatpush1.bf16.msra.mxu1 %v7704_v41  ;;  %v7777_v41 = vld [vmem:[%s10489_s7 + $0x978] ss:$28 sps:$4 sm:$0xff]  }
 0x418   :  { %6991 = vmatpush3.bf16.msra.mxu0 %v7708_v13  ;;  %6103 = vmatprep.mubr.bf16.mxu0 %v9667_v3  ;;  %v7782_v13 = vld [vmem:[%s10489_s7 + $0x9b4] ss:$28 sps:$4 sm:$0xff]  }
 0x419   :  { %5846 = vmatprep.subr.bf16.mxu1 %v7711_v16  ;;  %6992 = vmatprep.subr.bf16.mxu0 %v7712_v59  ;;  %v7780_v16 = vld [vmem:[%s10489_s7 + $0x9b0] ss:$28 sps:$4 sm:$0xff]  }
 0x41a   :  { %v7785_v59 = vld [vmem:[%s10489_s7 + $0x9ec] ss:$28 sps:$4 sm:$0xff]  }
 0x41b   :  { %5847 = vmatpush1.bf16.msra.mxu1 %v7709_v17  ;;  %v7783_v17 = vld [vmem:[%s10489_s7 + $0x9e8] ss:$28 sps:$4 sm:$0xff]  }
 0x41c   :  { %6993 = vmatpush3.bf16.msra.mxu0 %v7713_v22  ;;  %5848 = vmatprep.subr.bf16.mxu1 %v7716_v27  ;;  %v7788_v22 = vld [vmem:[%s10489_s7 + $0xa24] ss:$28 sps:$4 sm:$0xff]  }
 0x41d   :  { %6994 = vmatprep.subr.bf16.mxu0 %v7717_v28  ;;  %v7786_v27 = vld [vmem:[%s10489_s7 + $0xa20] ss:$28 sps:$4 sm:$0xff]  }
 0x41e   :  { %v7791_v28 = vld [vmem:[%s10489_s7 + $0xa5c] ss:$28 sps:$4 sm:$0xff]  }
 0x41f   :  { %5849 = vmatpush1.bf16.msra.mxu1 %v7714_v29  ;;  %v7789_v29 = vld [vmem:[%s10489_s7 + $0xa58] ss:$28 sps:$4 sm:$0xff]  }
 0x420   :  { %6995 = vmatpush3.bf16.msra.mxu0 %v7718_v30  ;;  %5850 = vmatprep.subr.bf16.mxu1 %v7721_v31  ;;  %v7794_v30 = vld [vmem:[%s10489_s7 + $0xa94] ss:$28 sps:$4 sm:$0xff]  }
 0x421   :  { %6996 = vmatprep.subr.bf16.mxu0 %v7722_v32  ;;  %v7792_v31 = vld [vmem:[%s10489_s7 + $0xa90] ss:$28 sps:$4 sm:$0xff]  }
 0x422   :  { %v7797_v32 = vld [vmem:[%s10489_s7 + $0xacc] ss:$28 sps:$4 sm:$0xff]  }
 0x423   :  { %5851 = vmatpush1.bf16.msra.mxu1 %v7719_v33  ;;  %v7795_v33 = vld [vmem:[%s10489_s7 + $0xac8] ss:$28 sps:$4 sm:$0xff]  }
 0x424   :  { %6997 = vmatpush3.bf16.msra.mxu0 %v7723_v49  ;;  %5852 = vmatprep.subr.bf16.mxu1 %v7726_v34  ;;  %v7800_v49 = vld [vmem:[%s10489_s7 + $0xb04] ss:$28 sps:$4 sm:$0xff]  }
 0x425   :  { %6998 = vmatprep.subr.bf16.mxu0 %v7727_v36  ;;  %v7798_v34 = vld [vmem:[%s10489_s7 + $0xb00] ss:$28 sps:$4 sm:$0xff]   ;;  %v7806_v36 = vld [vmem:[%s10489_s7 + $0xb74] ss:$28 sps:$4 sm:$0xff]  }
 0x427   :  { %5853 = vmatpush1.bf16.msra.mxu1 %v7724_v37  ;;  %v7804_v37 = vld [vmem:[%s10489_s7 + $0xb70] ss:$28 sps:$4 sm:$0xff]  }
 0x428   :  { %6999 = vmatpush3.bf16.msra.mxu0 %v7728_v38  ;;  %5854 = vmatprep.subr.bf16.mxu1 %v7731_v39  ;;  %v10384_v38 = vld [vmem:[%s10490_s8] sm:$0x7f]  ;;  %v7809_v39 = vld [vmem:[%s10489_s7 + $0xbac] ss:$28 sps:$4 sm:$0xff]  }
 0x429   :  { %7000 = vmatprep.subr.bf16.mxu0 %v7732_v0  ;;  %v3123_v0 = vrot.slane %v10384_v38, %v8161_v40 }
 0x42b   :  { %5855 = vmatpush1.bf16.msra.mxu1 %v7729_v42  ;;  %v3131_v42 = vrot.slane %v10384_v38, %v8602_v50 }
 0x42c   :  { %7001 = vmatpush3.bf16.msra.mxu0 %v7733_v44  ;;  %5856 = vmatprep.subr.bf16.mxu1 %v7736_v45  ;;  %v3127_v44 = vrot.slane %v10384_v38, %v8167_v43  ;;  %v3135_v45 = vrot.slane %v10384_v38, %v8605_v53  ;;  %v7810_v53 = vld [vmem:[%s10489_s7 + $0xbe0] ss:$28 sps:$4 sm:$0xff]  }
 0x42d   :  { %7002 = vmatprep.subr.bf16.mxu0 %v7737_v46  ;;  %v7807_v46 = vld [vmem:[%s10489_s7 + $0xba8] ss:$28 sps:$4 sm:$0xff]  }
 0x42f   :  { %5857 = vmatpush1.bf16.msra.mxu1 %v7734_v47  ;;  %v7812_v47 = vld [vmem:[%s10489_s7 + $0xbe4] ss:$28 sps:$4 sm:$0xff]  }
 0x430   :  { %7003 = vmatpush3.bf16.msra.mxu0 %v7738_v14  ;;  %5858 = vmatprep.subr.bf16.mxu1 %v7741_v48 }
 0x431   :  { %7004 = vmatprep.subr.bf16.mxu0 %v7742_v19 }
 0x433   :  { %5859 = vmatpush1.bf16.msra.mxu1 %v7739_v51 }
 0x434   :  { %7005 = vmatpush3.bf16.msra.mxu0 %v7743_v52  ;;  %5869 = vmatprep.subr.bf16.mxu1 %v7746_v54 }
 0x436   :  { %5861 = vmatmul.mubr.bf16.vlgmr.msra.gmra.mrb[12].mxu1 %v9447_v26  ;;  %v7755_v26 = vld [vmem:[%s10489_s7 + $0x7bc] ss:$28 sps:$4 sm:$0xff]  }
 0x437   :  { %6104 = vmatmul.mubr.bf16.vlgmr.msra.gmra.mrb[36].mxu0 %v9861_v21  ;;  %5870 = vmatpush1.bf16.msra.mxu1 %v7744_v56 }
 0x438   :  { %5901 = vmatprep.mubr.bf16.mxu1 %v9649_v60  ;;  %5871 = vmatprep.subr.bf16.mxu1 %v7749_v25  ;;  %v7753_v60 = vld [vmem:[%s10489_s7 + $0x7b8] ss:$28 sps:$4 sm:$0xff]  }
 0x43b   :  { %5872 = vmatpush1.bf16.msra.mxu1 %v7747_v57 }
 0x43c   :  { %5873 = vmatprep.subr.bf16.mxu1 %v7752_v58  ;;  %v7815_v58 = vld [vmem:[%s10489_s7 + $0xc1c] ss:$28 sps:$4 sm:$0xff]  }
 0x43f   :  { %5874 = vmatpush1.bf16.msra.mxu1 %v7750_v1  ;;  %v7813_v1 = vld [vmem:[%s10489_s7 + $0xc18] ss:$28 sps:$4 sm:$0xff]  }
 0x440   :  { %5875 = vmatprep.subr.bf16.mxu1 %v7755_v26  ;;  %v7818_v26 = vld [vmem:[%s10489_s7 + $0xc54] ss:$28 sps:$4 sm:$0xff]  }
 0x443   :  { %5876 = vmatpush1.bf16.msra.mxu1 %v7753_v60  ;;  %v7816_v60 = vld [vmem:[%s10489_s7 + $0xc50] ss:$28 sps:$4 sm:$0xff]  }
 0x444   :  { %5877 = vmatprep.subr.bf16.mxu1 %v7758_v23  ;;  %v7821_v23 = vld [vmem:[%s10489_s7 + $0xc8c] ss:$28 sps:$4 sm:$0xff]  }
 0x447   :  { %5878 = vmatpush1.bf16.msra.mxu1 %v7756_v61 }
 0x448   :  { %5879 = vmatprep.subr.bf16.mxu1 %v7761_v2 }
 0x44b   :  { %5880 = vmatpush1.bf16.msra.mxu1 %v7759_v4  ;;  %v7819_v4 = vld [vmem:[%s10489_s7 + $0xc88] ss:$28 sps:$4 sm:$0xff]  }
 0x44c   :  { %5881 = vmatprep.subr.bf16.mxu1 %v7764_v5 }
 0x44f   :  { %5882 = vmatpush1.bf16.msra.mxu1 %v7762_v6  ;;  %v7824_v6 = vld [vmem:[%s10489_s7 + $0xcc4] ss:$28 sps:$4 sm:$0xff]  }
 0x450   :  { %5883 = vmatprep.subr.bf16.mxu1 %v7767_v7 }
 0x453   :  { %5884 = vmatpush1.bf16.msra.mxu1 %v7765_v11  ;;  %v7822_v11 = vld [vmem:[%s10489_s7 + $0xcc0] ss:$28 sps:$4 sm:$0xff]  }
 0x454   :  { %5885 = vmatprep.subr.bf16.mxu1 %v7770_v12  ;;  %v7827_v12 = vld [vmem:[%s10489_s7 + $0xcfc] ss:$28 sps:$4 sm:$0xff]  }
 0x457   :  { %5886 = vmatpush1.bf16.msra.mxu1 %v7768_v15  ;;  %v7825_v15 = vld [vmem:[%s10489_s7 + $0xcf8] ss:$28 sps:$4 sm:$0xff]  }
 0x458   :  { %5887 = vmatprep.subr.bf16.mxu1 %v7773_v55  ;;  %v7830_v55 = vld [vmem:[%s10489_s7 + $0xd34] ss:$28 sps:$4 sm:$0xff]  }
 0x45b   :  { %5888 = vmatpush1.bf16.msra.mxu1 %v7771_v18  ;;  %v7828_v18 = vld [vmem:[%s10489_s7 + $0xd30] ss:$28 sps:$4 sm:$0xff]  }
 0x45c   :  { %5889 = vmatprep.subr.bf16.mxu1 %v7776_v8  ;;  %v7833_v8 = vld [vmem:[%s10489_s7 + $0xd6c] ss:$28 sps:$4 sm:$0xff]  }
 0x45f   :  { %5890 = vmatpush1.bf16.msra.mxu1 %v7774_v9  ;;  %v7831_v9 = vld [vmem:[%s10489_s7 + $0xd68] ss:$28 sps:$4 sm:$0xff]  }
 0x460   :  { %5891 = vmatprep.subr.bf16.mxu1 %v7779_v10  ;;  %v7836_v10 = vld [vmem:[%s10489_s7 + $0xda4] ss:$28 sps:$4 sm:$0xff]  }
 0x463   :  { %5892 = vmatpush1.bf16.msra.mxu1 %v7777_v41 }
 0x464   :  { %5893 = vmatprep.subr.bf16.mxu1 %v7782_v13 }
 0x467   :  { %5894 = vmatpush1.bf16.msra.mxu1 %v7780_v16  ;;  %v7834_v16 = vld [vmem:[%s10489_s7 + $0xda0] ss:$28 sps:$4 sm:$0xff]  }
 0x468   :  { %5895 = vmatprep.subr.bf16.mxu1 %v7785_v59 }
 0x46b   :  { %5896 = vmatpush1.bf16.msra.mxu1 %v7783_v17 }
 0x46c   :  { %5897 = vmatprep.subr.bf16.mxu1 %v7788_v22  ;;  %v7839_v22 = vld [vmem:[%s10489_s7 + $0xddc] ss:$28 sps:$4 sm:$0xff]  }
 0x46f   :  { %5898 = vmatpush1.bf16.msra.mxu1 %v7786_v27 }
 0x470   :  { %5899 = vmatprep.subr.bf16.mxu1 %v7791_v28  ;;  %v7837_v28 = vld [vmem:[%s10489_s7 + $0xdd8] ss:$28 sps:$4 sm:$0xff]  }
 0x473   :  { %5900 = vmatpush1.bf16.msra.mxu1 %v7789_v29  ;;  %v3147_v29 = vrot.slane %v10384_v38, %v968_v63 }
 0x474   :  { %5910 = vmatprep.subr.bf16.mxu1 %v7794_v30 }
 0x476   :  { %5902 = vmatmul.mubr.bf16.vlgmr.msra.gmra.mrb[12].mxu1 %v9657_v62  ;;  %v7803_v62 = vld [vmem:[%s10489_s7 + $0xb3c] ss:$28 sps:$4 sm:$0xff]  }
 0x477   :  { %5911 = vmatpush1.bf16.msra.mxu1 %v7792_v31  ;;  %5942 = vmatprep.mubr.bf16.mxu1 %v9667_v3  ;;  %v7801_v3 = vld [vmem:[%s10489_s7 + $0xb38] ss:$28 sps:$4 sm:$0xff]   ;;  %s7879_s7 = smov [#allocation2]  }
 0x478   :  { %5912 = vmatprep.subr.bf16.mxu1 %v7797_v32  ;;  %s6132_s19 = sshll.u32 %s7879_s7, 4  ;;  %s6133_s19 = int_to_ptr.vmem [resolvable:$true] %s6132_s19 }
 0x479   :  { %s7854_s20 = scalar_lea.vmem %s6133_s19, 896  ;;  %p7859_p1 = scmp.lt.s32.totalorder %s6133_s19, %s6133_s19 }
 0x47a   :  { %p7855_p0 = scmp.ne.s32.totalorder %s6133_s19, %s7854_s20  ;;  %p7860_p2 = scmp.lt.s32.totalorder %s7854_s20, %s7854_s20 }
 0x47b   :  { %5913 = vmatpush1.bf16.msra.mxu1 %v7795_v33 }
 0x47c   :  { %5914 = vmatprep.subr.bf16.mxu1 %v7800_v49  ;;  %p7861_p3 = por %p7860_p2, %p7859_p1 }
 0x47e   :  { %p7862_p4 = pnand %p7861_p3, %p7855_p0 }
 0x47f   :  { %5915 = vmatpush1.bf16.msra.mxu1 %v7798_v34 }
 0x480   :  { %5916 = vmatprep.subr.bf16.mxu1 %v7803_v62 }
 0x483   :  { %5917 = vmatpush1.bf16.msra.mxu1 %v7801_v3 }
 0x484   :  { %5918 = vmatprep.subr.bf16.mxu1 %v7806_v36 }
 0x487   :  { %5919 = vmatpush1.bf16.msra.mxu1 %v7804_v37 }
 0x488   :  { %5920 = vmatprep.subr.bf16.mxu1 %v7809_v39 }
 0x489   :  { %v5616_v40 = vpop.f32.mrb[8].mxu1  ;;  %v5780_v14 = vpop.f32.mrb[20].mxu0 }
 0x48a   :  { %v7020_v48 = vadd.f32 %v5616_v40, %v3123_v0  ;;  %v7022_v50 = vadd.f32 %v5780_v14, %v3131_v42  ;;  %v5618_v19 = vpop.f32.mrb[9].mxu1  ;;  %v5782_v51 = vpop.f32.mrb[21].mxu0  ;;  %v3139_v14 = vrot.slane %v10384_v38, %v960_v20 }
 0x48b   :  { %v7021_v52 = vadd.f32 %v5618_v19, %v3127_v44  ;;  %v7023_v43 = vadd.f32 %v5782_v51, %v3135_v45  ;;  %v5620_v54 = vpop.f32.mrb[10].mxu1  ;;  %v5784_v56 = vpop.f32.mrb[22].mxu0  ;;  %5921 = vmatpush1.bf16.msra.mxu1 %v7807_v46 }
 0x48c   :  { %7840 = vtanh.f32 %v7020_v48  ;;  %v5621_v25 = vpop.f32.mrb[11].mxu1  ;;  %v5785_v57 = vpop.f32.mrb[23].mxu0  ;;  %5922 = vmatprep.subr.bf16.mxu1 %v7812_v47  ;;  %v3143_v48 = vrot.slane %v10384_v38, %v964_v24 }
 0x48d   :  { %7842 = vtanh.f32 %v7022_v50 }
 0x48e   :  { %7844 = vtanh.f32 %v7021_v52 }
 0x48f   :  { %7846 = vtanh.f32 %v7023_v43  ;;  %5923 = vmatpush1.bf16.msra.mxu1 %v7810_v53 }
 0x490   :  { %5924 = vmatprep.subr.bf16.mxu1 %v7815_v58 }
 0x493   :  { %5925 = vmatpush1.bf16.msra.mxu1 %v7813_v1 }
 0x494   :  { %5926 = vmatprep.subr.bf16.mxu1 %v7818_v26 }
 0x496   :  { %v7841_v61 = vpop.eup %7840 }
 0x497   :  { %v7843_v2 = vpop.eup %7842  ;;  %6118 = vst [vmem:[#allocation2] sm:$0xff] %v7841_v61  ;;  %5927 = vmatpush1.bf16.msra.mxu1 %v7816_v60 }
 0x498   :  { %v7845_v5 = vpop.eup %7844  ;;  %6120 = vst [vmem:[#allocation2 + $0x10] sm:$0xff] %v7843_v2  ;;  %5928 = vmatprep.subr.bf16.mxu1 %v7821_v23 }
 0x499   :  { %v7847_v7 = vpop.eup %7846  ;;  %6119 = vst [vmem:[#allocation2 + $0x8] sm:$0xff] %v7845_v5 }
 0x49a   :  { %6121 = vst [vmem:[#allocation2 + $0x18] sm:$0xff] %v7847_v7 }
 0x49b   :  { %5929 = vmatpush1.bf16.msra.mxu1 %v7819_v4 }
 0x49c   :  { %5930 = vmatprep.subr.bf16.mxu1 %v7824_v6 }
 0x49f   :  { %5931 = vmatpush1.bf16.msra.mxu1 %v7822_v11 }
 0x4a0   :  { %5932 = vmatprep.subr.bf16.mxu1 %v7827_v12 }
 0x4a3   :  { %5933 = vmatpush1.bf16.msra.mxu1 %v7825_v15 }
 0x4a4   :  { %5934 = vmatprep.subr.bf16.mxu1 %v7830_v55 }
 0x4a7   :  { %5935 = vmatpush1.bf16.msra.mxu1 %v7828_v18 }
 0x4a8   :  { %5936 = vmatprep.subr.bf16.mxu1 %v7833_v8 }
 0x4aa   :  { %v6940_v41 = vpop.f32.mrb[24].mxu0 }
 0x4ab   :  { %v6941_v13 = vpop.f32.mrb[25].mxu0  ;;  %5937 = vmatpush1.bf16.msra.mxu1 %v7831_v9 }
 0x4ac   :  { %v6942_v59 = vadd.f32 %v6941_v13, %v6940_v41  ;;  %v6943_v17 = vpop.f32.mrb[26].mxu0  ;;  %5938 = vmatprep.subr.bf16.mxu1 %v7836_v10 }
 0x4ad   :  { %v6944_v27 = vpop.f32.mrb[27].mxu0 }
 0x4ae   :  { %v5986_v32 = vadd.f32 %v6942_v59, %v3147_v29 }
 0x4af   :  { %5939 = vmatpush1.bf16.msra.mxu1 %v7834_v16 }
 0x4b0   :  { %5940 = vmatprep.subr.bf16.mxu1 %v7839_v22 }
 0x4b3   :  { %5941 = vmatpush1.bf16.msra.mxu1 %v7837_v28 }
 0x4b6   :  { %5943 = vmatmul.mubr.bf16.vlgmr.msra.gmra.mrb[12].mxu1 %v9861_v21 }
 0x4ca   :  { %v6962_v30 = vpop.f32.mrb[28].mxu0 }
 0x4cb   :  { %v6963_v31 = vpop.f32.mrb[29].mxu0 }
 0x4cc   :  { %v6964_v33 = vadd.f32 %v6963_v31, %v6962_v30  ;;  %v6965_v49 = vpop.f32.mrb[30].mxu0 }
 0x4cd   :  { %v6966_v34 = vpop.f32.mrb[31].mxu0 }
 0x4ce   :  { %v6026_v62 = vadd.f32 %v6964_v33, %v5986_v32 }
 0x4ea   :  { %v6984_v3 = vpop.f32.mrb[32].mxu0 }
 0x4eb   :  { %v6985_v36 = vpop.f32.mrb[33].mxu0 }
 0x4ec   :  { %v6986_v37 = vadd.f32 %v6985_v36, %v6984_v3  ;;  %v6987_v39 = vpop.f32.mrb[34].mxu0 }
 0x4ed   :  { %v6988_v0 = vpop.f32.mrb[35].mxu0 }
 0x4ee   :  { %v6066_v42 = vadd.f32 %v6986_v37, %v6026_v62 }
 0x50a   :  { %v7006_v44 = vpop.f32.mrb[36].mxu0 }
 0x50b   :  { %v7007_v45 = vpop.f32.mrb[37].mxu0 }
 0x50c   :  { %v7008_v21 = vadd.f32 %v7007_v45, %v7006_v44  ;;  %v7009_v46 = vpop.f32.mrb[38].mxu0 }
 0x50d   :  { %v7010_v47 = vpop.f32.mrb[39].mxu0 }
 0x50e   :  { %v6106_v40 = vadd.f32 %v7008_v21, %v6066_v42 }
 0x510   :  { %7848 = vtanh.f32 %v6106_v40 }
 0x51a   :  { %v7849_v63 = vpop.eup %7848 }
 0x51b   :  { %6125 = vst.msk [vmem:[#allocation2 + $0x30] sm:$0xff] %vm6124_vm0, %v7849_v63 }
 0x589   :  { %v5944_v50 = vpop.f32.mrb[12].mxu1 }
 0x58a   :  { %v7024_v19 = vadd.f32 %v5944_v50, %v3139_v14  ;;  %v5946_v51 = vpop.f32.mrb[13].mxu1 }
 0x58b   :  { %v7025_v52 = vadd.f32 %v5946_v51, %v3143_v48  ;;  %v5948_v43 = vpop.f32.mrb[14].mxu1 }
 0x58c   :  { %7850 = vtanh.f32 %v7024_v19  ;;  %v5949_v54 = vpop.f32.mrb[15].mxu1 }
 0x58d   :  { %7852 = vtanh.f32 %v7025_v52 }
 0x596   :  { %v7851_v56 = vpop.eup %7850 }
 0x597   :  { %v7853_v53 = vpop.eup %7852  ;;  %6122 = vst [vmem:[#allocation2 + $0x20] sm:$0xff] %v7851_v56 }
 0x598   :  { %6123 = vst [vmem:[#allocation2 + $0x28] sm:$0xff] %v7853_v53 }
 0x599   :  { %7865 = shalt.err (!%p7862_p4)
}
 0x59a   :  { %s7866_s23 = scalar_lea.hbm %s10491_s9, 896 }
 0x59b   :  { %p7867_p5 = scmp.ne.s32.totalorder %s10491_s9, %s7866_s23  ;;  %p7870_p6 = scmp.lt.u32.totalorder %s7866_s23, %s10491_s9 }
 0x59d   :  { %p7872_p7 = pnand %p7870_p6, %p7867_p5 }
 0x59f   :  { %7875 = shalt.err (!%p7872_p7)
}
 0x5a0   :  { %6135 = dma.vmem_to_hbm [thread:$0]  %s6133_s19, 896, %s10491_s9, [#allocation3]  }
 0x5a1   :  { %7876 = dma.done.wait [#allocation3], 896  }
 0x5a2   :  { %7877 = vsyncadd [#allocation3], 4294966400 }
 0x5a3   :  { %6139 = vsyncpa [#allocation3], 1 }

</bundles_post_ra>
